<compile_context>
chip_gen: v7x
topology: tpu7x:2x2x1
jax: 0.10.0
libtpu: 0.0.40
codegen_flags: <defaults>
</compile_context>

<pallas_src>
import jax
import jax.numpy as jnp
from jax import lax
from jax.experimental import pallas as pl
from jax.experimental.pallas import tpu as pltpu

# ----------------------------- hyper params ---------------------------------
SEP_ID = 3
B = 2            # batch (logical)
B_PAD = 8        # batch padded to full sublane width
T_IN = 8         # encoder sequence length
T_OUT = 8        # decoder sequence length
V_IN = 64        # input vocab size
V_OUT = 32       # output vocab size
V_PAD = 128      # output vocab padded to full lane width (lane-dense store)
D_IN = 32        # encoder_input_dim (embedding dim)
H_ENC = 32       # encoder_hidden_dim
D_DEC = 32       # decoder_input_dim
H_DEC = 32       # decoder_hidden_dim (== decoder_input_dim in the module)
N_HEADS = 4      # cross_attn_num_heads
HEAD_DIM = H_ENC // N_HEADS

LANE = 128       # one packed-weight chunk = 128 lanes
N_CHUNKS = 8     # enc_ih | enc_hh | dec_ih | dec_hh | k|v | q|ch | wo|cc | w_out

_VMEM = pl.BlockSpec(memory_space=pltpu.MemorySpace.VMEM)


# ----------------------------- fused kernel ---------------------------------
def _lstm_recurrence(gx_ref, w_hh, h0, c0, h_out_ref, T, H):
    """LSTM over T steps.  gx_ref[t] already holds x_t @ W_ih + b (hoisted), so
    the serial chain only carries h @ W_hh + the gate nonlinearities."""

    def step(t, carry):
        h, c = carry
        gates = gx_ref[t] + jnp.dot(h, w_hh, preferred_element_type=jnp.float32)
        i = jax.nn.sigmoid(gates[:, 0 * H:1 * H])
        f = jax.nn.sigmoid(gates[:, 1 * H:2 * H])
        g = jnp.tanh(gates[:, 2 * H:3 * H])
        o = jax.nn.sigmoid(gates[:, 3 * H:4 * H])
        c_new = f * c + i * g
        h_new = o * jnp.tanh(c_new)
        h_out_ref[t] = h_new
        return (h_new, c_new)

    return lax.fori_loop(0, T, step, (h0, c0), unroll=True)


def _nl2sql_kernel(x_ref, y_ref, bias_ref, w_ref, b_ref, out_ref,
                   gx_enc_ref, gx_dec_ref, enc_h_ref, dec_h_ref):
    # x_ref:   [Tin , Bp, Din]        y_ref: [Tout, Bp, Ddec]
    # bias_ref:[Tout*Bp, Tin*Bp]      additive attn bias (batch block-diag + pad)
    # w_ref:   [32, 8*128]            packed, 128-lane-aligned weight chunks
    # b_ref:   [8, 128]               row0 enc_b, row1 dec_b, row2 out_b
    # out_ref: [Tout*Bp, V_PAD]       lane-dense, written with one store

    # ---- packed weight chunks (128-aligned, full-vreg loads) ----
    w_enc_ih = w_ref[:, 0 * LANE:1 * LANE]        # [32,128]
    w_enc_hh = w_ref[:, 1 * LANE:2 * LANE]
    w_dec_ih = w_ref[:, 2 * LANE:3 * LANE]
    w_dec_hh = w_ref[:, 3 * LANE:4 * LANE]
    w_kv = w_ref[:, 4 * LANE:5 * LANE]            # lanes 0..31 k, 32..63 v, rest 0
    w_qc = w_ref[:, 5 * LANE:6 * LANE]            # lanes 0..31 wq*scale, 32..63 wc_h
    w_oc = w_ref[:, 6 * LANE:7 * LANE]            # lanes 0..31 wo, 32..63 wc_c
    w_out = w_ref[:, 7 * LANE:8 * LANE]           # [32,128] (vocab padded)

    enc_b = b_ref[0:1, :]
    dec_b = b_ref[1:2, :]
    out_b = b_ref[2:3, :]

    # ---- hoisted input projections (off the recurrence critical path) ----
    x2 = x_ref[...].reshape(T_IN * B_PAD, D_IN)
    gx_enc_ref[...] = (
        jnp.dot(x2, w_enc_ih, preferred_element_type=jnp.float32)
        + enc_b).reshape(T_IN, B_PAD, 4 * H_ENC)
    y2 = y_ref[...].reshape(T_OUT * B_PAD, D_DEC)
    gx_dec_ref[...] = (
        jnp.dot(y2, w_dec_ih, preferred_element_type=jnp.float32)
        + dec_b).reshape(T_OUT, B_PAD, 4 * H_DEC)

    # ---- encoder LSTM recurrence ----
    h0 = jnp.zeros((B_PAD, H_ENC), jnp.float32)
    c0 = jnp.zeros((B_PAD, H_ENC), jnp.float32)
    h_last, c_last = _lstm_recurrence(gx_enc_ref, w_enc_hh, h0, c0,
                                      enc_h_ref, T_IN, H_ENC)

    # ---- decoder LSTM recurrence (initialized with encoder final state) ----
    _lstm_recurrence(gx_dec_ref, w_dec_hh, h_last, c_last,
                     dec_h_ref, T_OUT, H_DEC)

    # ---- cross attention + projections, batched over all Tout steps ----
    enc2 = enc_h_ref[...].reshape(T_IN * B_PAD, H_ENC)    # rows = (t_in , b)
    hd2 = dec_h_ref[...].reshape(T_OUT * B_PAD, H_DEC)    # rows = (t_out, b)

    kv = jnp.dot(enc2, w_kv, preferred_element_type=jnp.float32)  # [Tin*Bp ,128]
    qc = jnp.dot(hd2, w_qc, preferred_element_type=jnp.float32)   # [Tout*Bp,128]

    bias = bias_ref[...]
    ctx_p = jnp.zeros((T_OUT * B_PAD, H_DEC), jnp.float32)
    for hh in range(N_HEADS):
        lo = hh * HEAD_DIM
        qh = qc[:, lo:lo + HEAD_DIM]                      # pre-scaled q head
        kh = kv[:, lo:lo + HEAD_DIM]
        vh = kv[:, H_ENC + lo:H_ENC + lo + HEAD_DIM]
        # All-pairs scores as one 2-D matmul; the additive bias keeps only
        # same-batch, non-padded keys (everything else gets -1e9).
        s = lax.dot_general(qh, kh, (((1,), (1,)), ((), ())),
                            preferred_element_type=jnp.float32) + bias
        s = s - jnp.max(s, axis=-1, keepdims=True)
        p = jnp.exp(s)
        p = p * pl.reciprocal(jnp.sum(p, axis=-1, keepdims=True), approx=True)
        ctx_h = jnp.dot(p, vh, preferred_element_type=jnp.float32)
        # fold the per-head slice of the output projection in here
        # (avoids a lane-axis concatenate of the head contexts)
        ctx_p = ctx_p + jnp.dot(ctx_h, w_oc[lo:lo + HEAD_DIM, 0:H_DEC],
                                preferred_element_type=jnp.float32)

    comb_h = qc[:, H_ENC:H_ENC + H_DEC]          # hd2 @ wc_h from the fused proj
    wc_c = w_oc[:, H_DEC:2 * H_DEC]
    comb = jnp.tanh(comb_h
                    + jnp.dot(ctx_p, wc_c, preferred_element_type=jnp.float32))
    logits = (jnp.dot(comb, w_out, preferred_element_type=jnp.float32) + out_b)
    out_ref[...] = logits        # single lane-dense [Tout*Bp, 128] store


def _nl2sql_pallas(x_tbd, y_tbd, attn_bias, w_all, b_all):
    return pl.pallas_call(
        _nl2sql_kernel,
        out_shape=jax.ShapeDtypeStruct((T_OUT * B_PAD, V_PAD), jnp.float32),
        in_specs=[_VMEM] * 5,
        out_specs=_VMEM,
        scratch_shapes=[
            pltpu.VMEM((T_IN, B_PAD, 4 * H_ENC), jnp.float32),   # hoisted enc gates
            pltpu.VMEM((T_OUT, B_PAD, 4 * H_DEC), jnp.float32),  # hoisted dec gates
            pltpu.VMEM((T_IN, B_PAD, H_ENC), jnp.float32),       # encoder hiddens
            pltpu.VMEM((T_OUT, B_PAD, H_DEC), jnp.float32),      # decoder hiddens
        ],
    )(x_tbd, y_tbd, attn_bias, w_all, b_all)


# ----------------------------- glue / wrapper --------------------------------
def get_segment_and_position_ids(encoder_input_ids):
    """Mirror of NL2SQL.get_segment_and_position_ids (position_ids -> None)."""
    _, input_size = encoder_input_ids.shape
    position_ids = jnp.arange(input_size, dtype=jnp.int32)[None, :]
    seg1_end_pos = jnp.argmax(encoder_input_ids == SEP_ID, axis=1)  # first SEP
    segment_ids = (position_ids > seg1_end_pos[:, None]).astype(jnp.int32)
    return segment_ids, None


def init_params(key):
    def rnd(k, shape, scale=0.1):
        return (scale * jax.random.normal(k, shape)).astype(jnp.float32)

    ks = jax.random.split(key, 16)
    return {
        # embeddings
        'tok_emb': rnd(ks[0], (V_IN, D_IN)),
        'seg_emb': rnd(ks[1], (2, D_IN)),
        'out_emb': rnd(ks[2], (V_OUT, D_DEC)),
        # encoder LSTM
        'enc_w_ih': rnd(ks[3], (D_IN, 4 * H_ENC)),
        'enc_w_hh': rnd(ks[4], (H_ENC, 4 * H_ENC)),
        'enc_b':    jnp.zeros((1, 4 * H_ENC), jnp.float32),
        # decoder LSTM
        'dec_w_ih': rnd(ks[5], (D_DEC, 4 * H_DEC)),
        'dec_w_hh': rnd(ks[6], (H_DEC, 4 * H_DEC)),
        'dec_b':    jnp.zeros((1, 4 * H_DEC), jnp.float32),
        # cross attention
        'wq': rnd(ks[7], (H_DEC, H_ENC)),
        'wk': rnd(ks[8], (H_ENC, H_ENC)),
        'wv': rnd(ks[9], (H_ENC, H_ENC)),
        'wo': rnd(ks[10], (H_ENC, H_DEC)),
        # combine + output projection
        'wc':    rnd(ks[11], (2 * H_DEC, H_DEC)),
        'w_out': rnd(ks[12], (H_DEC, V_OUT)),
        'b_out': jnp.zeros((1, V_OUT), jnp.float32),
    }


def _pack_weights(params):
    """Pack every weight matrix (all have 32 rows) into one lane-aligned slab
    of 128-lane chunks; pack the bias rows into one [8, 128] slab."""

    def pad_lanes(w):
        return jnp.pad(w, ((0, 0), (0, LANE - w.shape[1])))

    scale = 1.0 / (HEAD_DIM ** 0.5)
    wc_h = params['wc'][:H_DEC, :]
    wc_c = params['wc'][H_DEC:, :]
    chunks = [
        params['enc_w_ih'],                                            # c0
        params['enc_w_hh'],                                            # c1
        params['dec_w_ih'],                                            # c2
        params['dec_w_hh'],                                            # c3
        pad_lanes(jnp.concatenate([params['wk'], params['wv']], 1)),   # c4
        pad_lanes(jnp.concatenate([params['wq'] * scale, wc_h], 1)),   # c5
        pad_lanes(jnp.concatenate([params['wo'], wc_c], 1)),           # c6
        jnp.pad(params['w_out'], ((0, 0), (0, V_PAD - V_OUT))),        # c7
    ]
    w_all = jnp.concatenate(chunks, axis=1).astype(jnp.float32)        # [32,1024]

    b_all = jnp.zeros((8, LANE), jnp.float32)
    b_all = b_all.at[0, :].set(params['enc_b'][0])
    b_all = b_all.at[1, :].set(params['dec_b'][0])
    b_all = b_all.at[2, :V_OUT].set(params['b_out'][0])
    return w_all, b_all


@jax.jit
def nl2sql_forward(params, inputs, input_masks, decoder_input_ids):
    batch = inputs.shape[0]
    assert batch <= B_PAD

    # 1. segment ids (glue)
    segment_ids, _ = get_segment_and_position_ids(inputs)

    # 2. encoder / decoder embeddings (glue gathers)
    inputs_embedded = (jnp.take(params['tok_emb'], inputs, axis=0)
                       + jnp.take(params['seg_emb'], segment_ids, axis=0)
                       ).astype(jnp.float32)                      # [B, Tin, D]
    targets_embedded = jnp.take(params['out_emb'], decoder_input_ids,
                                axis=0).astype(jnp.float32)       # [B, Tout, D]

    # 3. pad batch to full sublane width and go time-major for the kernel
    pad_b = B_PAD - batch
    x_btd = jnp.pad(inputs_embedded, ((0, pad_b), (0, 0), (0, 0)))
    y_btd = jnp.pad(targets_embedded, ((0, pad_b), (0, 0), (0, 0)))
    mask_p = jnp.pad(input_masks.astype(jnp.float32), ((0, pad_b), (0, 0)))
    x_tbd = jnp.transpose(x_btd, (1, 0, 2))                       # [Tin , Bp, D]
    y_tbd = jnp.transpose(y_btd, (1, 0, 2))                       # [Tout, Bp, D]

    # 4. combined additive attention bias (batch block-diagonal + padding mask)
    #    rows = (t_out, b), cols = (t_in, b'); 0 where b==b' and key not padded.
    same_b = jnp.eye(B_PAD, dtype=bool)
    same_b_full = jnp.tile(same_b, (T_OUT, T_IN))                 # [Tout*Bp, Tin*Bp]
    mask_col = jnp.transpose(mask_p, (1, 0)).reshape(T_IN * B_PAD) > 0.5
    attn_bias = jnp.where(same_b_full & mask_col[None, :],
                          0.0, -1e9).astype(jnp.float32)

    # 5. pack weights / biases into two lane-aligned slabs (5 kernel operands)
    w_all, b_all = _pack_weights(params)

    # 6. single fused Pallas kernel (encoder + decoder + attention + projection)
    out_flat = _nl2sql_pallas(x_tbd, y_tbd, attn_bias, w_all, b_all)

    # 7. un-pad and go back to batch-first [B, Tout, Vout]
    logits = out_flat.reshape(T_OUT, B_PAD, V_PAD)[:, :batch, :V_OUT]
    return jnp.transpose(logits, (1, 0, 2))


if __name__ == "__main__":
    key = jax.random.PRNGKey(0)
    k_par, k_in, k_dec = jax.random.split(key, 3)

    params = init_params(k_par)

    # encoder input ids: random ids in [5, V_IN), with exactly two SEP tokens
    # per row (positions 4 and T_IN-1), matching the reference's SEP logic.
    inputs = jax.random.randint(k_in, (B, T_IN), 5, V_IN, dtype=jnp.int32)
    inputs = inputs.at[:, 4].set(SEP_ID).at[:, T_IN - 1].set(SEP_ID)

    input_masks = jnp.ones((B, T_IN), jnp.float32)
    input_masks = input_masks.at[1, T_IN - 1].set(0.0)           # one pad token

    decoder_input_ids = jax.random.randint(
        k_dec, (B, T_OUT), 0, V_OUT, dtype=jnp.int32)

    out = nl2sql_forward(params, inputs, input_masks, decoder_input_ids)
    jax.block_until_ready(out)
    assert out.shape == (B, T_OUT, V_OUT)
    assert jnp.all(jnp.isfinite(out))
    print("KERNEL_OK")
</pallas_src>

<mosaic_0001>
module attributes {stable_mosaic.version = 11 : i64} {
  func.func @_nl2sql_kernel(%arg0: memref<8x8x32xf32, #tpu.memory_space<vmem>>, %arg1: memref<8x8x32xf32, #tpu.memory_space<vmem>>, %arg2: memref<64x64xf32, #tpu.memory_space<vmem>>, %arg3: memref<32x1024xf32, #tpu.memory_space<vmem>>, %arg4: memref<8x128xf32, #tpu.memory_space<vmem>>, %arg5: memref<64x128xf32, #tpu.memory_space<vmem>>, %arg6: memref<8x8x128xf32, #tpu.memory_space<vmem>>, %arg7: memref<8x8x128xf32, #tpu.memory_space<vmem>>, %arg8: memref<8x8x32xf32, #tpu.memory_space<vmem>>, %arg9: memref<8x8x32xf32, #tpu.memory_space<vmem>>) attributes {dimension_semantics = [], scalar_prefetch = 0 : i64, scratch_operands = 4 : i64, tpu.core_type = #tpu.core_type<tc>} {
    %c0 = arith.constant 0 : index
    %c0_0 = arith.constant 0 : index
    %0 = vector.load %arg3[%c0, %c0_0] : memref<32x1024xf32, #tpu.memory_space<vmem>>, vector<32x128xf32>
    %c0_1 = arith.constant 0 : index
    %c128 = arith.constant 128 : index
    %1 = vector.load %arg3[%c0_1, %c128] : memref<32x1024xf32, #tpu.memory_space<vmem>>, vector<32x128xf32>
    %c0_2 = arith.constant 0 : index
    %c256 = arith.constant 256 : index
    %2 = vector.load %arg3[%c0_2, %c256] : memref<32x1024xf32, #tpu.memory_space<vmem>>, vector<32x128xf32>
    %c0_3 = arith.constant 0 : index
    %c384 = arith.constant 384 : index
    %3 = vector.load %arg3[%c0_3, %c384] : memref<32x1024xf32, #tpu.memory_space<vmem>>, vector<32x128xf32>
    %c0_4 = arith.constant 0 : index
    %c512 = arith.constant 512 : index
    %4 = vector.load %arg3[%c0_4, %c512] : memref<32x1024xf32, #tpu.memory_space<vmem>>, vector<32x128xf32>
    %c0_5 = arith.constant 0 : index
    %c640 = arith.constant 640 : index
    %5 = vector.load %arg3[%c0_5, %c640] : memref<32x1024xf32, #tpu.memory_space<vmem>>, vector<32x128xf32>
    %c0_6 = arith.constant 0 : index
    %c768 = arith.constant 768 : index
    %6 = vector.load %arg3[%c0_6, %c768] : memref<32x1024xf32, #tpu.memory_space<vmem>>, vector<32x128xf32>
    %c0_7 = arith.constant 0 : index
    %c896 = arith.constant 896 : index
    %7 = vector.load %arg3[%c0_7, %c896] : memref<32x1024xf32, #tpu.memory_space<vmem>>, vector<32x128xf32>
    %c0_8 = arith.constant 0 : index
    %c0_9 = arith.constant 0 : index
    %8 = vector.load %arg4[%c0_8, %c0_9] : memref<8x128xf32, #tpu.memory_space<vmem>>, vector<1x128xf32>
    %c1 = arith.constant 1 : index
    %c0_10 = arith.constant 0 : index
    %9 = vector.load %arg4[%c1, %c0_10] : memref<8x128xf32, #tpu.memory_space<vmem>>, vector<1x128xf32>
    %c2 = arith.constant 2 : index
    %c0_11 = arith.constant 0 : index
    %10 = vector.load %arg4[%c2, %c0_11] : memref<8x128xf32, #tpu.memory_space<vmem>>, vector<1x128xf32>
    %c0_12 = arith.constant 0 : index
    %c0_13 = arith.constant 0 : index
    %c0_14 = arith.constant 0 : index
    %11 = vector.load %arg0[%c0_12, %c0_13, %c0_14] : memref<8x8x32xf32, #tpu.memory_space<vmem>>, vector<8x8x32xf32>
    %12 = vector.shape_cast %11 : vector<8x8x32xf32> to vector<64x32xf32>
    %cst = arith.constant dense<0.000000e+00> : vector<64x128xf32>
    %13 = tpu.matmul %12, %0, %cst {dimension_numbers = #tpu.dot_dimension_numbers<[1], [0], [0], [1], [0, 0, 1, 1], [], []>} : vector<64x32xf32>, vector<32x128xf32>, vector<64x128xf32> -> vector<64x128xf32>
    %14 = vector.broadcast %8 : vector<1x128xf32> to vector<64x128xf32>
    %15 = arith.addf %13, %14 : vector<64x128xf32>
    %16 = vector.shape_cast %15 : vector<64x128xf32> to vector<8x8x128xf32>
    %c0_15 = arith.constant 0 : index
    %c0_16 = arith.constant 0 : index
    %c0_17 = arith.constant 0 : index
    %17 = vector.load %arg6[%c0_15, %c0_16, %c0_17] : memref<8x8x128xf32, #tpu.memory_space<vmem>>, vector<8x8x128xf32>
    tpu.vector_store %arg6[%c0_15, %c0_16, %c0_17], %16 {strides = array<i32>} : memref<8x8x128xf32, #tpu.memory_space<vmem>>, vector<8x8x128xf32>,
    %c0_18 = arith.constant 0 : index
    %c0_19 = arith.constant 0 : index
    %c0_20 = arith.constant 0 : index
    %18 = vector.load %arg1[%c0_18, %c0_19, %c0_20] : memref<8x8x32xf32, #tpu.memory_space<vmem>>, vector<8x8x32xf32>
    %19 = vector.shape_cast %18 : vector<8x8x32xf32> to vector<64x32xf32>
    %cst_21 = arith.constant dense<0.000000e+00> : vector<64x128xf32>
    %20 = tpu.matmul %19, %2, %cst_21 {dimension_numbers = #tpu.dot_dimension_numbers<[1], [0], [0], [1], [0, 0, 1, 1], [], []>} : vector<64x32xf32>, vector<32x128xf32>, vector<64x128xf32> -> vector<64x128xf32>
    %21 = vector.broadcast %9 : vector<1x128xf32> to vector<64x128xf32>
    %22 = arith.addf %20, %21 : vector<64x128xf32>
    %23 = vector.shape_cast %22 : vector<64x128xf32> to vector<8x8x128xf32>
    %c0_22 = arith.constant 0 : index
    %c0_23 = arith.constant 0 : index
    %c0_24 = arith.constant 0 : index
    %24 = vector.load %arg7[%c0_22, %c0_23, %c0_24] : memref<8x8x128xf32, #tpu.memory_space<vmem>>, vector<8x8x128xf32>
    tpu.vector_store %arg7[%c0_22, %c0_23, %c0_24], %23 {strides = array<i32>} : memref<8x8x128xf32, #tpu.memory_space<vmem>>, vector<8x8x128xf32>,
    %cst_25 = arith.constant 0.000000e+00 : f32
    %25 = vector.broadcast %cst_25 : f32 to vector<8x32xf32>
    %cst_26 = arith.constant 0.000000e+00 : f32
    %26 = vector.broadcast %cst_26 : f32 to vector<8x32xf32>
    %c0_i32 = arith.constant 0 : i32
    %27 = arith.index_cast %c0_i32 : i32 to index
    %c0_27 = arith.constant 0 : index
    %c0_28 = arith.constant 0 : index
    %28 = vector.load %arg6[%27, %c0_27, %c0_28] : memref<8x8x128xf32, #tpu.memory_space<vmem>>, vector<1x8x128xf32>
    %29 = vector.shape_cast %28 : vector<1x8x128xf32> to vector<8x128xf32>
    %cst_29 = arith.constant dense<0.000000e+00> : vector<8x128xf32>
    %30 = tpu.matmul %25, %1, %cst_29 {dimension_numbers = #tpu.dot_dimension_numbers<[1], [0], [0], [1], [0, 0, 1, 1], [], []>} : vector<8x32xf32>, vector<32x128xf32>, vector<8x128xf32> -> vector<8x128xf32>
    %31 = arith.addf %29, %30 : vector<8x128xf32>
    %32 = vector.extract_strided_slice %31 {offsets = [0, 0], sizes = [8, 32], strides = [1, 1]} : vector<8x128xf32> to vector<8x32xf32>
    %33 = arith.negf %32 : vector<8x32xf32>
    %34 = math.exp %33 : vector<8x32xf32>
    %cst_30 = arith.constant 1.000000e+00 : f32
    %35 = vector.broadcast %cst_30 : f32 to vector<8x32xf32>
    %36 = arith.addf %35, %34 : vector<8x32xf32>
    %37 = arith.divf %35, %36 : vector<8x32xf32>
    %38 = vector.extract_strided_slice %31 {offsets = [0, 32], sizes = [8, 32], strides = [1, 1]} : vector<8x128xf32> to vector<8x32xf32>
    %39 = arith.negf %38 : vector<8x32xf32>
    %40 = math.exp %39 : vector<8x32xf32>
    %cst_31 = arith.constant 1.000000e+00 : f32
    %41 = vector.broadcast %cst_31 : f32 to vector<8x32xf32>
    %42 = arith.addf %41, %40 : vector<8x32xf32>
    %43 = arith.divf %41, %42 : vector<8x32xf32>
    %44 = vector.extract_strided_slice %31 {offsets = [0, 64], sizes = [8, 32], strides = [1, 1]} : vector<8x128xf32> to vector<8x32xf32>
    %45 = math.tanh %44 : vector<8x32xf32>
    %46 = vector.extract_strided_slice %31 {offsets = [0, 96], sizes = [8, 32], strides = [1, 1]} : vector<8x128xf32> to vector<8x32xf32>
    %47 = arith.negf %46 : vector<8x32xf32>
    %48 = math.exp %47 : vector<8x32xf32>
    %cst_32 = arith.constant 1.000000e+00 : f32
    %49 = vector.broadcast %cst_32 : f32 to vector<8x32xf32>
    %50 = arith.addf %49, %48 : vector<8x32xf32>
    %51 = arith.divf %49, %50 : vector<8x32xf32>
    %52 = arith.mulf %43, %26 : vector<8x32xf32>
    %53 = arith.mulf %37, %45 : vector<8x32xf32>
    %54 = arith.addf %52, %53 : vector<8x32xf32>
    %55 = math.tanh %54 : vector<8x32xf32>
    %56 = arith.mulf %51, %55 : vector<8x32xf32>
    %57 = arith.index_cast %c0_i32 : i32 to index
    %c0_33 = arith.constant 0 : index
    %c0_34 = arith.constant 0 : index
    %58 = vector.load %arg8[%57, %c0_33, %c0_34] : memref<8x8x32xf32, #tpu.memory_space<vmem>>, vector<1x8x32xf32>
    %59 = vector.shape_cast %58 : vector<1x8x32xf32> to vector<8x32xf32>
    %60 = vector.shape_cast %56 : vector<8x32xf32> to vector<1x8x32xf32>
    tpu.vector_store %arg8[%57, %c0_33, %c0_34], %60 {strides = array<i32>} : memref<8x8x32xf32, #tpu.memory_space<vmem>>, vector<1x8x32xf32>,
    %c1_i32 = arith.constant 1 : i32
    %61 = arith.index_cast %c1_i32 : i32 to index
    %c0_35 = arith.constant 0 : index
    %c0_36 = arith.constant 0 : index
    %62 = vector.load %arg6[%61, %c0_35, %c0_36] : memref<8x8x128xf32, #tpu.memory_space<vmem>>, vector<1x8x128xf32>
    %63 = vector.shape_cast %62 : vector<1x8x128xf32> to vector<8x128xf32>
    %cst_37 = arith.constant dense<0.000000e+00> : vector<8x128xf32>
    %64 = tpu.matmul %56, %1, %cst_37 {dimension_numbers = #tpu.dot_dimension_numbers<[1], [0], [0], [1], [0, 0, 1, 1], [], []>} : vector<8x32xf32>, vector<32x128xf32>, vector<8x128xf32> -> vector<8x128xf32>
    %65 = arith.addf %63, %64 : vector<8x128xf32>
    %66 = vector.extract_strided_slice %65 {offsets = [0, 0], sizes = [8, 32], strides = [1, 1]} : vector<8x128xf32> to vector<8x32xf32>
    %67 = arith.negf %66 : vector<8x32xf32>
    %68 = math.exp %67 : vector<8x32xf32>
    %cst_38 = arith.constant 1.000000e+00 : f32
    %69 = vector.broadcast %cst_38 : f32 to vector<8x32xf32>
    %70 = arith.addf %69, %68 : vector<8x32xf32>
    %71 = arith.divf %69, %70 : vector<8x32xf32>
    %72 = vector.extract_strided_slice %65 {offsets = [0, 32], sizes = [8, 32], strides = [1, 1]} : vector<8x128xf32> to vector<8x32xf32>
    %73 = arith.negf %72 : vector<8x32xf32>
    %74 = math.exp %73 : vector<8x32xf32>
    %cst_39 = arith.constant 1.000000e+00 : f32
    %75 = vector.broadcast %cst_39 : f32 to vector<8x32xf32>
    %76 = arith.addf %75, %74 : vector<8x32xf32>
    %77 = arith.divf %75, %76 : vector<8x32xf32>
    %78 = vector.extract_strided_slice %65 {offsets = [0, 64], sizes = [8, 32], strides = [1, 1]} : vector<8x128xf32> to vector<8x32xf32>
    %79 = math.tanh %78 : vector<8x32xf32>
    %80 = vector.extract_strided_slice %65 {offsets = [0, 96], sizes = [8, 32], strides = [1, 1]} : vector<8x128xf32> to vector<8x32xf32>
    %81 = arith.negf %80 : vector<8x32xf32>
    %82 = math.exp %81 : vector<8x32xf32>
    %cst_40 = arith.constant 1.000000e+00 : f32
    %83 = vector.broadcast %cst_40 : f32 to vector<8x32xf32>
    %84 = arith.addf %83, %82 : vector<8x32xf32>
    %85 = arith.divf %83, %84 : vector<8x32xf32>
    %86 = arith.mulf %77, %54 : vector<8x32xf32>
    %87 = arith.mulf %71, %79 : vector<8x32xf32>
    %88 = arith.addf %86, %87 : vector<8x32xf32>
    %89 = math.tanh %88 : vector<8x32xf32>
    %90 = arith.mulf %85, %89 : vector<8x32xf32>
    %91 = arith.index_cast %c1_i32 : i32 to index
    %c0_41 = arith.constant 0 : index
    %c0_42 = arith.constant 0 : index
    %92 = vector.load %arg8[%91, %c0_41, %c0_42] : memref<8x8x32xf32, #tpu.memory_space<vmem>>, vector<1x8x32xf32>
    %93 = vector.shape_cast %92 : vector<1x8x32xf32> to vector<8x32xf32>
    %94 = vector.shape_cast %90 : vector<8x32xf32> to vector<1x8x32xf32>
    tpu.vector_store %arg8[%91, %c0_41, %c0_42], %94 {strides = array<i32>} : memref<8x8x32xf32, #tpu.memory_space<vmem>>, vector<1x8x32xf32>,
    %c2_i32 = arith.constant 2 : i32
    %95 = arith.index_cast %c2_i32 : i32 to index
    %c0_43 = arith.constant 0 : index
    %c0_44 = arith.constant 0 : index
    %96 = vector.load %arg6[%95, %c0_43, %c0_44] : memref<8x8x128xf32, #tpu.memory_space<vmem>>, vector<1x8x128xf32>
    %97 = vector.shape_cast %96 : vector<1x8x128xf32> to vector<8x128xf32>
    %cst_45 = arith.constant dense<0.000000e+00> : vector<8x128xf32>
    %98 = tpu.matmul %90, %1, %cst_45 {dimension_numbers = #tpu.dot_dimension_numbers<[1], [0], [0], [1], [0, 0, 1, 1], [], []>} : vector<8x32xf32>, vector<32x128xf32>, vector<8x128xf32> -> vector<8x128xf32>
    %99 = arith.addf %97, %98 : vector<8x128xf32>
    %100 = vector.extract_strided_slice %99 {offsets = [0, 0], sizes = [8, 32], strides = [1, 1]} : vector<8x128xf32> to vector<8x32xf32>
    %101 = arith.negf %100 : vector<8x32xf32>
    %102 = math.exp %101 : vector<8x32xf32>
    %cst_46 = arith.constant 1.000000e+00 : f32
    %103 = vector.broadcast %cst_46 : f32 to vector<8x32xf32>
    %104 = arith.addf %103, %102 : vector<8x32xf32>
    %105 = arith.divf %103, %104 : vector<8x32xf32>
    %106 = vector.extract_strided_slice %99 {offsets = [0, 32], sizes = [8, 32], strides = [1, 1]} : vector<8x128xf32> to vector<8x32xf32>
    %107 = arith.negf %106 : vector<8x32xf32>
    %108 = math.exp %107 : vector<8x32xf32>
    %cst_47 = arith.constant 1.000000e+00 : f32
    %109 = vector.broadcast %cst_47 : f32 to vector<8x32xf32>
    %110 = arith.addf %109, %108 : vector<8x32xf32>
    %111 = arith.divf %109, %110 : vector<8x32xf32>
    %112 = vector.extract_strided_slice %99 {offsets = [0, 64], sizes = [8, 32], strides = [1, 1]} : vector<8x128xf32> to vector<8x32xf32>
    %113 = math.tanh %112 : vector<8x32xf32>
    %114 = vector.extract_strided_slice %99 {offsets = [0, 96], sizes = [8, 32], strides = [1, 1]} : vector<8x128xf32> to vector<8x32xf32>
    %115 = arith.negf %114 : vector<8x32xf32>
    %116 = math.exp %115 : vector<8x32xf32>
    %cst_48 = arith.constant 1.000000e+00 : f32
    %117 = vector.broadcast %cst_48 : f32 to vector<8x32xf32>
    %118 = arith.addf %117, %116 : vector<8x32xf32>
    %119 = arith.divf %117, %118 : vector<8x32xf32>
    %120 = arith.mulf %111, %88 : vector<8x32xf32>
    %121 = arith.mulf %105, %113 : vector<8x32xf32>
    %122 = arith.addf %120, %121 : vector<8x32xf32>
    %123 = math.tanh %122 : vector<8x32xf32>
    %124 = arith.mulf %119, %123 : vector<8x32xf32>
    %125 = arith.index_cast %c2_i32 : i32 to index
    %c0_49 = arith.constant 0 : index
    %c0_50 = arith.constant 0 : index
    %126 = vector.load %arg8[%125, %c0_49, %c0_50] : memref<8x8x32xf32, #tpu.memory_space<vmem>>, vector<1x8x32xf32>
    %127 = vector.shape_cast %126 : vector<1x8x32xf32> to vector<8x32xf32>
    %128 = vector.shape_cast %124 : vector<8x32xf32> to vector<1x8x32xf32>
    tpu.vector_store %arg8[%125, %c0_49, %c0_50], %128 {strides = array<i32>} : memref<8x8x32xf32, #tpu.memory_space<vmem>>, vector<1x8x32xf32>,
    %c3_i32 = arith.constant 3 : i32
    %129 = arith.index_cast %c3_i32 : i32 to index
    %c0_51 = arith.constant 0 : index
    %c0_52 = arith.constant 0 : index
    %130 = vector.load %arg6[%129, %c0_51, %c0_52] : memref<8x8x128xf32, #tpu.memory_space<vmem>>, vector<1x8x128xf32>
    %131 = vector.shape_cast %130 : vector<1x8x128xf32> to vector<8x128xf32>
    %cst_53 = arith.constant dense<0.000000e+00> : vector<8x128xf32>
    %132 = tpu.matmul %124, %1, %cst_53 {dimension_numbers = #tpu.dot_dimension_numbers<[1], [0], [0], [1], [0, 0, 1, 1], [], []>} : vector<8x32xf32>, vector<32x128xf32>, vector<8x128xf32> -> vector<8x128xf32>
    %133 = arith.addf %131, %132 : vector<8x128xf32>
    %134 = vector.extract_strided_slice %133 {offsets = [0, 0], sizes = [8, 32], strides = [1, 1]} : vector<8x128xf32> to vector<8x32xf32>
    %135 = arith.negf %134 : vector<8x32xf32>
    %136 = math.exp %135 : vector<8x32xf32>
    %cst_54 = arith.constant 1.000000e+00 : f32
    %137 = vector.broadcast %cst_54 : f32 to vector<8x32xf32>
    %138 = arith.addf %137, %136 : vector<8x32xf32>
    %139 = arith.divf %137, %138 : vector<8x32xf32>
    %140 = vector.extract_strided_slice %133 {offsets = [0, 32], sizes = [8, 32], strides = [1, 1]} : vector<8x128xf32> to vector<8x32xf32>
    %141 = arith.negf %140 : vector<8x32xf32>
    %142 = math.exp %141 : vector<8x32xf32>
    %cst_55 = arith.constant 1.000000e+00 : f32
    %143 = vector.broadcast %cst_55 : f32 to vector<8x32xf32>
    %144 = arith.addf %143, %142 : vector<8x32xf32>
    %145 = arith.divf %143, %144 : vector<8x32xf32>
    %146 = vector.extract_strided_slice %133 {offsets = [0, 64], sizes = [8, 32], strides = [1, 1]} : vector<8x128xf32> to vector<8x32xf32>
    %147 = math.tanh %146 : vector<8x32xf32>
    %148 = vector.extract_strided_slice %133 {offsets = [0, 96], sizes = [8, 32], strides = [1, 1]} : vector<8x128xf32> to vector<8x32xf32>
    %149 = arith.negf %148 : vector<8x32xf32>
    %150 = math.exp %149 : vector<8x32xf32>
    %cst_56 = arith.constant 1.000000e+00 : f32
    %151 = vector.broadcast %cst_56 : f32 to vector<8x32xf32>
    %152 = arith.addf %151, %150 : vector<8x32xf32>
    %153 = arith.divf %151, %152 : vector<8x32xf32>
    %154 = arith.mulf %145, %122 : vector<8x32xf32>
    %155 = arith.mulf %139, %147 : vector<8x32xf32>
    %156 = arith.addf %154, %155 : vector<8x32xf32>
    %157 = math.tanh %156 : vector<8x32xf32>
    %158 = arith.mulf %153, %157 : vector<8x32xf32>
    %159 = arith.index_cast %c3_i32 : i32 to index
    %c0_57 = arith.constant 0 : index
    %c0_58 = arith.constant 0 : index
    %160 = vector.load %arg8[%159, %c0_57, %c0_58] : memref<8x8x32xf32, #tpu.memory_space<vmem>>, vector<1x8x32xf32>
    %161 = vector.shape_cast %160 : vector<1x8x32xf32> to vector<8x32xf32>
    %162 = vector.shape_cast %158 : vector<8x32xf32> to vector<1x8x32xf32>
    tpu.vector_store %arg8[%159, %c0_57, %c0_58], %162 {strides = array<i32>} : memref<8x8x32xf32, #tpu.memory_space<vmem>>, vector<1x8x32xf32>,
    %c4_i32 = arith.constant 4 : i32
    %163 = arith.index_cast %c4_i32 : i32 to index
    %c0_59 = arith.constant 0 : index
    %c0_60 = arith.constant 0 : index
    %164 = vector.load %arg6[%163, %c0_59, %c0_60] : memref<8x8x128xf32, #tpu.memory_space<vmem>>, vector<1x8x128xf32>
    %165 = vector.shape_cast %164 : vector<1x8x128xf32> to vector<8x128xf32>
    %cst_61 = arith.constant dense<0.000000e+00> : vector<8x128xf32>
    %166 = tpu.matmul %158, %1, %cst_61 {dimension_numbers = #tpu.dot_dimension_numbers<[1], [0], [0], [1], [0, 0, 1, 1], [], []>} : vector<8x32xf32>, vector<32x128xf32>, vector<8x128xf32> -> vector<8x128xf32>
    %167 = arith.addf %165, %166 : vector<8x128xf32>
    %168 = vector.extract_strided_slice %167 {offsets = [0, 0], sizes = [8, 32], strides = [1, 1]} : vector<8x128xf32> to vector<8x32xf32>
    %169 = arith.negf %168 : vector<8x32xf32>
    %170 = math.exp %169 : vector<8x32xf32>
    %cst_62 = arith.constant 1.000000e+00 : f32
    %171 = vector.broadcast %cst_62 : f32 to vector<8x32xf32>
    %172 = arith.addf %171, %170 : vector<8x32xf32>
    %173 = arith.divf %171, %172 : vector<8x32xf32>
    %174 = vector.extract_strided_slice %167 {offsets = [0, 32], sizes = [8, 32], strides = [1, 1]} : vector<8x128xf32> to vector<8x32xf32>
    %175 = arith.negf %174 : vector<8x32xf32>
    %176 = math.exp %175 : vector<8x32xf32>
    %cst_63 = arith.constant 1.000000e+00 : f32
    %177 = vector.broadcast %cst_63 : f32 to vector<8x32xf32>
    %178 = arith.addf %177, %176 : vector<8x32xf32>
    %179 = arith.divf %177, %178 : vector<8x32xf32>
    %180 = vector.extract_strided_slice %167 {offsets = [0, 64], sizes = [8, 32], strides = [1, 1]} : vector<8x128xf32> to vector<8x32xf32>
    %181 = math.tanh %180 : vector<8x32xf32>
    %182 = vector.extract_strided_slice %167 {offsets = [0, 96], sizes = [8, 32], strides = [1, 1]} : vector<8x128xf32> to vector<8x32xf32>
    %183 = arith.negf %182 : vector<8x32xf32>
    %184 = math.exp %183 : vector<8x32xf32>
    %cst_64 = arith.constant 1.000000e+00 : f32
    %185 = vector.broadcast %cst_64 : f32 to vector<8x32xf32>
    %186 = arith.addf %185, %184 : vector<8x32xf32>
    %187 = arith.divf %185, %186 : vector<8x32xf32>
    %188 = arith.mulf %179, %156 : vector<8x32xf32>
    %189 = arith.mulf %173, %181 : vector<8x32xf32>
    %190 = arith.addf %188, %189 : vector<8x32xf32>
    %191 = math.tanh %190 : vector<8x32xf32>
    %192 = arith.mulf %187, %191 : vector<8x32xf32>
    %193 = arith.index_cast %c4_i32 : i32 to index
    %c0_65 = arith.constant 0 : index
    %c0_66 = arith.constant 0 : index
    %194 = vector.load %arg8[%193, %c0_65, %c0_66] : memref<8x8x32xf32, #tpu.memory_space<vmem>>, vector<1x8x32xf32>
    %195 = vector.shape_cast %194 : vector<1x8x32xf32> to vector<8x32xf32>
    %196 = vector.shape_cast %192 : vector<8x32xf32> to vector<1x8x32xf32>
    tpu.vector_store %arg8[%193, %c0_65, %c0_66], %196 {strides = array<i32>} : memref<8x8x32xf32, #tpu.memory_space<vmem>>, vector<1x8x32xf32>,
    %c5_i32 = arith.constant 5 : i32
    %197 = arith.index_cast %c5_i32 : i32 to index
    %c0_67 = arith.constant 0 : index
    %c0_68 = arith.constant 0 : index
    %198 = vector.load %arg6[%197, %c0_67, %c0_68] : memref<8x8x128xf32, #tpu.memory_space<vmem>>, vector<1x8x128xf32>
    %199 = vector.shape_cast %198 : vector<1x8x128xf32> to vector<8x128xf32>
    %cst_69 = arith.constant dense<0.000000e+00> : vector<8x128xf32>
    %200 = tpu.matmul %192, %1, %cst_69 {dimension_numbers = #tpu.dot_dimension_numbers<[1], [0], [0], [1], [0, 0, 1, 1], [], []>} : vector<8x32xf32>, vector<32x128xf32>, vector<8x128xf32> -> vector<8x128xf32>
    %201 = arith.addf %199, %200 : vector<8x128xf32>
    %202 = vector.extract_strided_slice %201 {offsets = [0, 0], sizes = [8, 32], strides = [1, 1]} : vector<8x128xf32> to vector<8x32xf32>
    %203 = arith.negf %202 : vector<8x32xf32>
    %204 = math.exp %203 : vector<8x32xf32>
    %cst_70 = arith.constant 1.000000e+00 : f32
    %205 = vector.broadcast %cst_70 : f32 to vector<8x32xf32>
    %206 = arith.addf %205, %204 : vector<8x32xf32>
    %207 = arith.divf %205, %206 : vector<8x32xf32>
    %208 = vector.extract_strided_slice %201 {offsets = [0, 32], sizes = [8, 32], strides = [1, 1]} : vector<8x128xf32> to vector<8x32xf32>
    %209 = arith.negf %208 : vector<8x32xf32>
    %210 = math.exp %209 : vector<8x32xf32>
    %cst_71 = arith.constant 1.000000e+00 : f32
    %211 = vector.broadcast %cst_71 : f32 to vector<8x32xf32>
    %212 = arith.addf %211, %210 : vector<8x32xf32>
    %213 = arith.divf %211, %212 : vector<8x32xf32>
    %214 = vector.extract_strided_slice %201 {offsets = [0, 64], sizes = [8, 32], strides = [1, 1]} : vector<8x128xf32> to vector<8x32xf32>
    %215 = math.tanh %214 : vector<8x32xf32>
    %216 = vector.extract_strided_slice %201 {offsets = [0, 96], sizes = [8, 32], strides = [1, 1]} : vector<8x128xf32> to vector<8x32xf32>
    %217 = arith.negf %216 : vector<8x32xf32>
    %218 = math.exp %217 : vector<8x32xf32>
    %cst_72 = arith.constant 1.000000e+00 : f32
    %219 = vector.broadcast %cst_72 : f32 to vector<8x32xf32>
    %220 = arith.addf %219, %218 : vector<8x32xf32>
    %221 = arith.divf %219, %220 : vector<8x32xf32>
    %222 = arith.mulf %213, %190 : vector<8x32xf32>
    %223 = arith.mulf %207, %215 : vector<8x32xf32>
    %224 = arith.addf %222, %223 : vector<8x32xf32>
    %225 = math.tanh %224 : vector<8x32xf32>
    %226 = arith.mulf %221, %225 : vector<8x32xf32>
    %227 = arith.index_cast %c5_i32 : i32 to index
    %c0_73 = arith.constant 0 : index
    %c0_74 = arith.constant 0 : index
    %228 = vector.load %arg8[%227, %c0_73, %c0_74] : memref<8x8x32xf32, #tpu.memory_space<vmem>>, vector<1x8x32xf32>
    %229 = vector.shape_cast %228 : vector<1x8x32xf32> to vector<8x32xf32>
    %230 = vector.shape_cast %226 : vector<8x32xf32> to vector<1x8x32xf32>
    tpu.vector_store %arg8[%227, %c0_73, %c0_74], %230 {strides = array<i32>} : memref<8x8x32xf32, #tpu.memory_space<vmem>>, vector<1x8x32xf32>,
    %c6_i32 = arith.constant 6 : i32
    %231 = arith.index_cast %c6_i32 : i32 to index
    %c0_75 = arith.constant 0 : index
    %c0_76 = arith.constant 0 : index
    %232 = vector.load %arg6[%231, %c0_75, %c0_76] : memref<8x8x128xf32, #tpu.memory_space<vmem>>, vector<1x8x128xf32>
    %233 = vector.shape_cast %232 : vector<1x8x128xf32> to vector<8x128xf32>
    %cst_77 = arith.constant dense<0.000000e+00> : vector<8x128xf32>
    %234 = tpu.matmul %226, %1, %cst_77 {dimension_numbers = #tpu.dot_dimension_numbers<[1], [0], [0], [1], [0, 0, 1, 1], [], []>} : vector<8x32xf32>, vector<32x128xf32>, vector<8x128xf32> -> vector<8x128xf32>
    %235 = arith.addf %233, %234 : vector<8x128xf32>
    %236 = vector.extract_strided_slice %235 {offsets = [0, 0], sizes = [8, 32], strides = [1, 1]} : vector<8x128xf32> to vector<8x32xf32>
    %237 = arith.negf %236 : vector<8x32xf32>
    %238 = math.exp %237 : vector<8x32xf32>
    %cst_78 = arith.constant 1.000000e+00 : f32
    %239 = vector.broadcast %cst_78 : f32 to vector<8x32xf32>
    %240 = arith.addf %239, %238 : vector<8x32xf32>
    %241 = arith.divf %239, %240 : vector<8x32xf32>
    %242 = vector.extract_strided_slice %235 {offsets = [0, 32], sizes = [8, 32], strides = [1, 1]} : vector<8x128xf32> to vector<8x32xf32>
    %243 = arith.negf %242 : vector<8x32xf32>
    %244 = math.exp %243 : vector<8x32xf32>
    %cst_79 = arith.constant 1.000000e+00 : f32
    %245 = vector.broadcast %cst_79 : f32 to vector<8x32xf32>
    %246 = arith.addf %245, %244 : vector<8x32xf32>
    %247 = arith.divf %245, %246 : vector<8x32xf32>
    %248 = vector.extract_strided_slice %235 {offsets = [0, 64], sizes = [8, 32], strides = [1, 1]} : vector<8x128xf32> to vector<8x32xf32>
    %249 = math.tanh %248 : vector<8x32xf32>
    %250 = vector.extract_strided_slice %235 {offsets = [0, 96], sizes = [8, 32], strides = [1, 1]} : vector<8x128xf32> to vector<8x32xf32>
    %251 = arith.negf %250 : vector<8x32xf32>
    %252 = math.exp %251 : vector<8x32xf32>
    %cst_80 = arith.constant 1.000000e+00 : f32
    %253 = vector.broadcast %cst_80 : f32 to vector<8x32xf32>
    %254 = arith.addf %253, %252 : vector<8x32xf32>
    %255 = arith.divf %253, %254 : vector<8x32xf32>
    %256 = arith.mulf %247, %224 : vector<8x32xf32>
    %257 = arith.mulf %241, %249 : vector<8x32xf32>
    %258 = arith.addf %256, %257 : vector<8x32xf32>
    %259 = math.tanh %258 : vector<8x32xf32>
    %260 = arith.mulf %255, %259 : vector<8x32xf32>
    %261 = arith.index_cast %c6_i32 : i32 to index
    %c0_81 = arith.constant 0 : index
    %c0_82 = arith.constant 0 : index
    %262 = vector.load %arg8[%261, %c0_81, %c0_82] : memref<8x8x32xf32, #tpu.memory_space<vmem>>, vector<1x8x32xf32>
    %263 = vector.shape_cast %262 : vector<1x8x32xf32> to vector<8x32xf32>
    %264 = vector.shape_cast %260 : vector<8x32xf32> to vector<1x8x32xf32>
    tpu.vector_store %arg8[%261, %c0_81, %c0_82], %264 {strides = array<i32>} : memref<8x8x32xf32, #tpu.memory_space<vmem>>, vector<1x8x32xf32>,
    %c7_i32 = arith.constant 7 : i32
    %265 = arith.index_cast %c7_i32 : i32 to index
    %c0_83 = arith.constant 0 : index
    %c0_84 = arith.constant 0 : index
    %266 = vector.load %arg6[%265, %c0_83, %c0_84] : memref<8x8x128xf32, #tpu.memory_space<vmem>>, vector<1x8x128xf32>
    %267 = vector.shape_cast %266 : vector<1x8x128xf32> to vector<8x128xf32>
    %cst_85 = arith.constant dense<0.000000e+00> : vector<8x128xf32>
    %268 = tpu.matmul %260, %1, %cst_85 {dimension_numbers = #tpu.dot_dimension_numbers<[1], [0], [0], [1], [0, 0, 1, 1], [], []>} : vector<8x32xf32>, vector<32x128xf32>, vector<8x128xf32> -> vector<8x128xf32>
    %269 = arith.addf %267, %268 : vector<8x128xf32>
    %270 = vector.extract_strided_slice %269 {offsets = [0, 0], sizes = [8, 32], strides = [1, 1]} : vector<8x128xf32> to vector<8x32xf32>
    %271 = arith.negf %270 : vector<8x32xf32>
    %272 = math.exp %271 : vector<8x32xf32>
    %cst_86 = arith.constant 1.000000e+00 : f32
    %273 = vector.broadcast %cst_86 : f32 to vector<8x32xf32>
    %274 = arith.addf %273, %272 : vector<8x32xf32>
    %275 = arith.divf %273, %274 : vector<8x32xf32>
    %276 = vector.extract_strided_slice %269 {offsets = [0, 32], sizes = [8, 32], strides = [1, 1]} : vector<8x128xf32> to vector<8x32xf32>
    %277 = arith.negf %276 : vector<8x32xf32>
    %278 = math.exp %277 : vector<8x32xf32>
    %cst_87 = arith.constant 1.000000e+00 : f32
    %279 = vector.broadcast %cst_87 : f32 to vector<8x32xf32>
    %280 = arith.addf %279, %278 : vector<8x32xf32>
    %281 = arith.divf %279, %280 : vector<8x32xf32>
    %282 = vector.extract_strided_slice %269 {offsets = [0, 64], sizes = [8, 32], strides = [1, 1]} : vector<8x128xf32> to vector<8x32xf32>
    %283 = math.tanh %282 : vector<8x32xf32>
    %284 = vector.extract_strided_slice %269 {offsets = [0, 96], sizes = [8, 32], strides = [1, 1]} : vector<8x128xf32> to vector<8x32xf32>
    %285 = arith.negf %284 : vector<8x32xf32>
    %286 = math.exp %285 : vector<8x32xf32>
    %cst_88 = arith.constant 1.000000e+00 : f32
    %287 = vector.broadcast %cst_88 : f32 to vector<8x32xf32>
    %288 = arith.addf %287, %286 : vector<8x32xf32>
    %289 = arith.divf %287, %288 : vector<8x32xf32>
    %290 = arith.mulf %281, %258 : vector<8x32xf32>
    %291 = arith.mulf %275, %283 : vector<8x32xf32>
    %292 = arith.addf %290, %291 : vector<8x32xf32>
    %293 = math.tanh %292 : vector<8x32xf32>
    %294 = arith.mulf %289, %293 : vector<8x32xf32>
    %295 = arith.index_cast %c7_i32 : i32 to index
    %c0_89 = arith.constant 0 : index
    %c0_90 = arith.constant 0 : index
    %296 = vector.load %arg8[%295, %c0_89, %c0_90] : memref<8x8x32xf32, #tpu.memory_space<vmem>>, vector<1x8x32xf32>
    %297 = vector.shape_cast %296 : vector<1x8x32xf32> to vector<8x32xf32>
    %298 = vector.shape_cast %294 : vector<8x32xf32> to vector<1x8x32xf32>
    tpu.vector_store %arg8[%295, %c0_89, %c0_90], %298 {strides = array<i32>} : memref<8x8x32xf32, #tpu.memory_space<vmem>>, vector<1x8x32xf32>,
    %c8_i32 = arith.constant 8 : i32
    %c0_i32_91 = arith.constant 0 : i32
    %299 = arith.index_cast %c0_i32_91 : i32 to index
    %c0_92 = arith.constant 0 : index
    %c0_93 = arith.constant 0 : index
    %300 = vector.load %arg7[%299, %c0_92, %c0_93] : memref<8x8x128xf32, #tpu.memory_space<vmem>>, vector<1x8x128xf32>
    %301 = vector.shape_cast %300 : vector<1x8x128xf32> to vector<8x128xf32>
    %cst_94 = arith.constant dense<0.000000e+00> : vector<8x128xf32>
    %302 = tpu.matmul %294, %3, %cst_94 {dimension_numbers = #tpu.dot_dimension_numbers<[1], [0], [0], [1], [0, 0, 1, 1], [], []>} : vector<8x32xf32>, vector<32x128xf32>, vector<8x128xf32> -> vector<8x128xf32>
    %303 = arith.addf %301, %302 : vector<8x128xf32>
    %304 = vector.extract_strided_slice %303 {offsets = [0, 0], sizes = [8, 32], strides = [1, 1]} : vector<8x128xf32> to vector<8x32xf32>
    %305 = arith.negf %304 : vector<8x32xf32>
    %306 = math.exp %305 : vector<8x32xf32>
    %cst_95 = arith.constant 1.000000e+00 : f32
    %307 = vector.broadcast %cst_95 : f32 to vector<8x32xf32>
    %308 = arith.addf %307, %306 : vector<8x32xf32>
    %309 = arith.divf %307, %308 : vector<8x32xf32>
    %310 = vector.extract_strided_slice %303 {offsets = [0, 32], sizes = [8, 32], strides = [1, 1]} : vector<8x128xf32> to vector<8x32xf32>
    %311 = arith.negf %310 : vector<8x32xf32>
    %312 = math.exp %311 : vector<8x32xf32>
    %cst_96 = arith.constant 1.000000e+00 : f32
    %313 = vector.broadcast %cst_96 : f32 to vector<8x32xf32>
    %314 = arith.addf %313, %312 : vector<8x32xf32>
    %315 = arith.divf %313, %314 : vector<8x32xf32>
    %316 = vector.extract_strided_slice %303 {offsets = [0, 64], sizes = [8, 32], strides = [1, 1]} : vector<8x128xf32> to vector<8x32xf32>
    %317 = math.tanh %316 : vector<8x32xf32>
    %318 = vector.extract_strided_slice %303 {offsets = [0, 96], sizes = [8, 32], strides = [1, 1]} : vector<8x128xf32> to vector<8x32xf32>
    %319 = arith.negf %318 : vector<8x32xf32>
    %320 = math.exp %319 : vector<8x32xf32>
    %cst_97 = arith.constant 1.000000e+00 : f32
    %321 = vector.broadcast %cst_97 : f32 to vector<8x32xf32>
    %322 = arith.addf %321, %320 : vector<8x32xf32>
    %323 = arith.divf %321, %322 : vector<8x32xf32>
    %324 = arith.mulf %315, %292 : vector<8x32xf32>
    %325 = arith.mulf %309, %317 : vector<8x32xf32>
    %326 = arith.addf %324, %325 : vector<8x32xf32>
    %327 = math.tanh %326 : vector<8x32xf32>
    %328 = arith.mulf %323, %327 : vector<8x32xf32>
    %329 = arith.index_cast %c0_i32_91 : i32 to index
    %c0_98 = arith.constant 0 : index
    %c0_99 = arith.constant 0 : index
    %330 = vector.load %arg9[%329, %c0_98, %c0_99] : memref<8x8x32xf32, #tpu.memory_space<vmem>>, vector<1x8x32xf32>
    %331 = vector.shape_cast %330 : vector<1x8x32xf32> to vector<8x32xf32>
    %332 = vector.shape_cast %328 : vector<8x32xf32> to vector<1x8x32xf32>
    tpu.vector_store %arg9[%329, %c0_98, %c0_99], %332 {strides = array<i32>} : memref<8x8x32xf32, #tpu.memory_space<vmem>>, vector<1x8x32xf32>,
    %c1_i32_100 = arith.constant 1 : i32
    %333 = arith.index_cast %c1_i32_100 : i32 to index
    %c0_101 = arith.constant 0 : index
    %c0_102 = arith.constant 0 : index
    %334 = vector.load %arg7[%333, %c0_101, %c0_102] : memref<8x8x128xf32, #tpu.memory_space<vmem>>, vector<1x8x128xf32>
    %335 = vector.shape_cast %334 : vector<1x8x128xf32> to vector<8x128xf32>
    %cst_103 = arith.constant dense<0.000000e+00> : vector<8x128xf32>
    %336 = tpu.matmul %328, %3, %cst_103 {dimension_numbers = #tpu.dot_dimension_numbers<[1], [0], [0], [1], [0, 0, 1, 1], [], []>} : vector<8x32xf32>, vector<32x128xf32>, vector<8x128xf32> -> vector<8x128xf32>
    %337 = arith.addf %335, %336 : vector<8x128xf32>
    %338 = vector.extract_strided_slice %337 {offsets = [0, 0], sizes = [8, 32], strides = [1, 1]} : vector<8x128xf32> to vector<8x32xf32>
    %339 = arith.negf %338 : vector<8x32xf32>
    %340 = math.exp %339 : vector<8x32xf32>
    %cst_104 = arith.constant 1.000000e+00 : f32
    %341 = vector.broadcast %cst_104 : f32 to vector<8x32xf32>
    %342 = arith.addf %341, %340 : vector<8x32xf32>
    %343 = arith.divf %341, %342 : vector<8x32xf32>
    %344 = vector.extract_strided_slice %337 {offsets = [0, 32], sizes = [8, 32], strides = [1, 1]} : vector<8x128xf32> to vector<8x32xf32>
    %345 = arith.negf %344 : vector<8x32xf32>
    %346 = math.exp %345 : vector<8x32xf32>
    %cst_105 = arith.constant 1.000000e+00 : f32
    %347 = vector.broadcast %cst_105 : f32 to vector<8x32xf32>
    %348 = arith.addf %347, %346 : vector<8x32xf32>
    %349 = arith.divf %347, %348 : vector<8x32xf32>
    %350 = vector.extract_strided_slice %337 {offsets = [0, 64], sizes = [8, 32], strides = [1, 1]} : vector<8x128xf32> to vector<8x32xf32>
    %351 = math.tanh %350 : vector<8x32xf32>
    %352 = vector.extract_strided_slice %337 {offsets = [0, 96], sizes = [8, 32], strides = [1, 1]} : vector<8x128xf32> to vector<8x32xf32>
    %353 = arith.negf %352 : vector<8x32xf32>
    %354 = math.exp %353 : vector<8x32xf32>
    %cst_106 = arith.constant 1.000000e+00 : f32
    %355 = vector.broadcast %cst_106 : f32 to vector<8x32xf32>
    %356 = arith.addf %355, %354 : vector<8x32xf32>
    %357 = arith.divf %355, %356 : vector<8x32xf32>
    %358 = arith.mulf %349, %326 : vector<8x32xf32>
    %359 = arith.mulf %343, %351 : vector<8x32xf32>
    %360 = arith.addf %358, %359 : vector<8x32xf32>
    %361 = math.tanh %360 : vector<8x32xf32>
    %362 = arith.mulf %357, %361 : vector<8x32xf32>
    %363 = arith.index_cast %c1_i32_100 : i32 to index
    %c0_107 = arith.constant 0 : index
    %c0_108 = arith.constant 0 : index
    %364 = vector.load %arg9[%363, %c0_107, %c0_108] : memref<8x8x32xf32, #tpu.memory_space<vmem>>, vector<1x8x32xf32>
    %365 = vector.shape_cast %364 : vector<1x8x32xf32> to vector<8x32xf32>
    %366 = vector.shape_cast %362 : vector<8x32xf32> to vector<1x8x32xf32>
    tpu.vector_store %arg9[%363, %c0_107, %c0_108], %366 {strides = array<i32>} : memref<8x8x32xf32, #tpu.memory_space<vmem>>, vector<1x8x32xf32>,
    %c2_i32_109 = arith.constant 2 : i32
    %367 = arith.index_cast %c2_i32_109 : i32 to index
    %c0_110 = arith.constant 0 : index
    %c0_111 = arith.constant 0 : index
    %368 = vector.load %arg7[%367, %c0_110, %c0_111] : memref<8x8x128xf32, #tpu.memory_space<vmem>>, vector<1x8x128xf32>
    %369 = vector.shape_cast %368 : vector<1x8x128xf32> to vector<8x128xf32>
    %cst_112 = arith.constant dense<0.000000e+00> : vector<8x128xf32>
    %370 = tpu.matmul %362, %3, %cst_112 {dimension_numbers = #tpu.dot_dimension_numbers<[1], [0], [0], [1], [0, 0, 1, 1], [], []>} : vector<8x32xf32>, vector<32x128xf32>, vector<8x128xf32> -> vector<8x128xf32>
    %371 = arith.addf %369, %370 : vector<8x128xf32>
    %372 = vector.extract_strided_slice %371 {offsets = [0, 0], sizes = [8, 32], strides = [1, 1]} : vector<8x128xf32> to vector<8x32xf32>
    %373 = arith.negf %372 : vector<8x32xf32>
    %374 = math.exp %373 : vector<8x32xf32>
    %cst_113 = arith.constant 1.000000e+00 : f32
    %375 = vector.broadcast %cst_113 : f32 to vector<8x32xf32>
    %376 = arith.addf %375, %374 : vector<8x32xf32>
    %377 = arith.divf %375, %376 : vector<8x32xf32>
    %378 = vector.extract_strided_slice %371 {offsets = [0, 32], sizes = [8, 32], strides = [1, 1]} : vector<8x128xf32> to vector<8x32xf32>
    %379 = arith.negf %378 : vector<8x32xf32>
    %380 = math.exp %379 : vector<8x32xf32>
    %cst_114 = arith.constant 1.000000e+00 : f32
    %381 = vector.broadcast %cst_114 : f32 to vector<8x32xf32>
    %382 = arith.addf %381, %380 : vector<8x32xf32>
    %383 = arith.divf %381, %382 : vector<8x32xf32>
    %384 = vector.extract_strided_slice %371 {offsets = [0, 64], sizes = [8, 32], strides = [1, 1]} : vector<8x128xf32> to vector<8x32xf32>
    %385 = math.tanh %384 : vector<8x32xf32>
    %386 = vector.extract_strided_slice %371 {offsets = [0, 96], sizes = [8, 32], strides = [1, 1]} : vector<8x128xf32> to vector<8x32xf32>
    %387 = arith.negf %386 : vector<8x32xf32>
    %388 = math.exp %387 : vector<8x32xf32>
    %cst_115 = arith.constant 1.000000e+00 : f32
    %389 = vector.broadcast %cst_115 : f32 to vector<8x32xf32>
    %390 = arith.addf %389, %388 : vector<8x32xf32>
    %391 = arith.divf %389, %390 : vector<8x32xf32>
    %392 = arith.mulf %383, %360 : vector<8x32xf32>
    %393 = arith.mulf %377, %385 : vector<8x32xf32>
    %394 = arith.addf %392, %393 : vector<8x32xf32>
    %395 = math.tanh %394 : vector<8x32xf32>
    %396 = arith.mulf %391, %395 : vector<8x32xf32>
    %397 = arith.index_cast %c2_i32_109 : i32 to index
    %c0_116 = arith.constant 0 : index
    %c0_117 = arith.constant 0 : index
    %398 = vector.load %arg9[%397, %c0_116, %c0_117] : memref<8x8x32xf32, #tpu.memory_space<vmem>>, vector<1x8x32xf32>
    %399 = vector.shape_cast %398 : vector<1x8x32xf32> to vector<8x32xf32>
    %400 = vector.shape_cast %396 : vector<8x32xf32> to vector<1x8x32xf32>
    tpu.vector_store %arg9[%397, %c0_116, %c0_117], %400 {strides = array<i32>} : memref<8x8x32xf32, #tpu.memory_space<vmem>>, vector<1x8x32xf32>,
    %c3_i32_118 = arith.constant 3 : i32
    %401 = arith.index_cast %c3_i32_118 : i32 to index
    %c0_119 = arith.constant 0 : index
    %c0_120 = arith.constant 0 : index
    %402 = vector.load %arg7[%401, %c0_119, %c0_120] : memref<8x8x128xf32, #tpu.memory_space<vmem>>, vector<1x8x128xf32>
    %403 = vector.shape_cast %402 : vector<1x8x128xf32> to vector<8x128xf32>
    %cst_121 = arith.constant dense<0.000000e+00> : vector<8x128xf32>
    %404 = tpu.matmul %396, %3, %cst_121 {dimension_numbers = #tpu.dot_dimension_numbers<[1], [0], [0], [1], [0, 0, 1, 1], [], []>} : vector<8x32xf32>, vector<32x128xf32>, vector<8x128xf32> -> vector<8x128xf32>
    %405 = arith.addf %403, %404 : vector<8x128xf32>
    %406 = vector.extract_strided_slice %405 {offsets = [0, 0], sizes = [8, 32], strides = [1, 1]} : vector<8x128xf32> to vector<8x32xf32>
    %407 = arith.negf %406 : vector<8x32xf32>
    %408 = math.exp %407 : vector<8x32xf32>
    %cst_122 = arith.constant 1.000000e+00 : f32
    %409 = vector.broadcast %cst_122 : f32 to vector<8x32xf32>
    %410 = arith.addf %409, %408 : vector<8x32xf32>
    %411 = arith.divf %409, %410 : vector<8x32xf32>
    %412 = vector.extract_strided_slice %405 {offsets = [0, 32], sizes = [8, 32], strides = [1, 1]} : vector<8x128xf32> to vector<8x32xf32>
    %413 = arith.negf %412 : vector<8x32xf32>
    %414 = math.exp %413 : vector<8x32xf32>
    %cst_123 = arith.constant 1.000000e+00 : f32
    %415 = vector.broadcast %cst_123 : f32 to vector<8x32xf32>
    %416 = arith.addf %415, %414 : vector<8x32xf32>
    %417 = arith.divf %415, %416 : vector<8x32xf32>
    %418 = vector.extract_strided_slice %405 {offsets = [0, 64], sizes = [8, 32], strides = [1, 1]} : vector<8x128xf32> to vector<8x32xf32>
    %419 = math.tanh %418 : vector<8x32xf32>
    %420 = vector.extract_strided_slice %405 {offsets = [0, 96], sizes = [8, 32], strides = [1, 1]} : vector<8x128xf32> to vector<8x32xf32>
    %421 = arith.negf %420 : vector<8x32xf32>
    %422 = math.exp %421 : vector<8x32xf32>
    %cst_124 = arith.constant 1.000000e+00 : f32
    %423 = vector.broadcast %cst_124 : f32 to vector<8x32xf32>
    %424 = arith.addf %423, %422 : vector<8x32xf32>
    %425 = arith.divf %423, %424 : vector<8x32xf32>
    %426 = arith.mulf %417, %394 : vector<8x32xf32>
    %427 = arith.mulf %411, %419 : vector<8x32xf32>
    %428 = arith.addf %426, %427 : vector<8x32xf32>
    %429 = math.tanh %428 : vector<8x32xf32>
    %430 = arith.mulf %425, %429 : vector<8x32xf32>
    %431 = arith.index_cast %c3_i32_118 : i32 to index
    %c0_125 = arith.constant 0 : index
    %c0_126 = arith.constant 0 : index
    %432 = vector.load %arg9[%431, %c0_125, %c0_126] : memref<8x8x32xf32, #tpu.memory_space<vmem>>, vector<1x8x32xf32>
    %433 = vector.shape_cast %432 : vector<1x8x32xf32> to vector<8x32xf32>
    %434 = vector.shape_cast %430 : vector<8x32xf32> to vector<1x8x32xf32>
    tpu.vector_store %arg9[%431, %c0_125, %c0_126], %434 {strides = array<i32>} : memref<8x8x32xf32, #tpu.memory_space<vmem>>, vector<1x8x32xf32>,
    %c4_i32_127 = arith.constant 4 : i32
    %435 = arith.index_cast %c4_i32_127 : i32 to index
    %c0_128 = arith.constant 0 : index
    %c0_129 = arith.constant 0 : index
    %436 = vector.load %arg7[%435, %c0_128, %c0_129] : memref<8x8x128xf32, #tpu.memory_space<vmem>>, vector<1x8x128xf32>
    %437 = vector.shape_cast %436 : vector<1x8x128xf32> to vector<8x128xf32>
    %cst_130 = arith.constant dense<0.000000e+00> : vector<8x128xf32>
    %438 = tpu.matmul %430, %3, %cst_130 {dimension_numbers = #tpu.dot_dimension_numbers<[1], [0], [0], [1], [0, 0, 1, 1], [], []>} : vector<8x32xf32>, vector<32x128xf32>, vector<8x128xf32> -> vector<8x128xf32>
    %439 = arith.addf %437, %438 : vector<8x128xf32>
    %440 = vector.extract_strided_slice %439 {offsets = [0, 0], sizes = [8, 32], strides = [1, 1]} : vector<8x128xf32> to vector<8x32xf32>
    %441 = arith.negf %440 : vector<8x32xf32>
    %442 = math.exp %441 : vector<8x32xf32>
    %cst_131 = arith.constant 1.000000e+00 : f32
    %443 = vector.broadcast %cst_131 : f32 to vector<8x32xf32>
    %444 = arith.addf %443, %442 : vector<8x32xf32>
    %445 = arith.divf %443, %444 : vector<8x32xf32>
    %446 = vector.extract_strided_slice %439 {offsets = [0, 32], sizes = [8, 32], strides = [1, 1]} : vector<8x128xf32> to vector<8x32xf32>
    %447 = arith.negf %446 : vector<8x32xf32>
    %448 = math.exp %447 : vector<8x32xf32>
    %cst_132 = arith.constant 1.000000e+00 : f32
    %449 = vector.broadcast %cst_132 : f32 to vector<8x32xf32>
    %450 = arith.addf %449, %448 : vector<8x32xf32>
    %451 = arith.divf %449, %450 : vector<8x32xf32>
    %452 = vector.extract_strided_slice %439 {offsets = [0, 64], sizes = [8, 32], strides = [1, 1]} : vector<8x128xf32> to vector<8x32xf32>
    %453 = math.tanh %452 : vector<8x32xf32>
    %454 = vector.extract_strided_slice %439 {offsets = [0, 96], sizes = [8, 32], strides = [1, 1]} : vector<8x128xf32> to vector<8x32xf32>
    %455 = arith.negf %454 : vector<8x32xf32>
    %456 = math.exp %455 : vector<8x32xf32>
    %cst_133 = arith.constant 1.000000e+00 : f32
    %457 = vector.broadcast %cst_133 : f32 to vector<8x32xf32>
    %458 = arith.addf %457, %456 : vector<8x32xf32>
    %459 = arith.divf %457, %458 : vector<8x32xf32>
    %460 = arith.mulf %451, %428 : vector<8x32xf32>
    %461 = arith.mulf %445, %453 : vector<8x32xf32>
    %462 = arith.addf %460, %461 : vector<8x32xf32>
    %463 = math.tanh %462 : vector<8x32xf32>
    %464 = arith.mulf %459, %463 : vector<8x32xf32>
    %465 = arith.index_cast %c4_i32_127 : i32 to index
    %c0_134 = arith.constant 0 : index
    %c0_135 = arith.constant 0 : index
    %466 = vector.load %arg9[%465, %c0_134, %c0_135] : memref<8x8x32xf32, #tpu.memory_space<vmem>>, vector<1x8x32xf32>
    %467 = vector.shape_cast %466 : vector<1x8x32xf32> to vector<8x32xf32>
    %468 = vector.shape_cast %464 : vector<8x32xf32> to vector<1x8x32xf32>
    tpu.vector_store %arg9[%465, %c0_134, %c0_135], %468 {strides = array<i32>} : memref<8x8x32xf32, #tpu.memory_space<vmem>>, vector<1x8x32xf32>,
    %c5_i32_136 = arith.constant 5 : i32
    %469 = arith.index_cast %c5_i32_136 : i32 to index
    %c0_137 = arith.constant 0 : index
    %c0_138 = arith.constant 0 : index
    %470 = vector.load %arg7[%469, %c0_137, %c0_138] : memref<8x8x128xf32, #tpu.memory_space<vmem>>, vector<1x8x128xf32>
    %471 = vector.shape_cast %470 : vector<1x8x128xf32> to vector<8x128xf32>
    %cst_139 = arith.constant dense<0.000000e+00> : vector<8x128xf32>
    %472 = tpu.matmul %464, %3, %cst_139 {dimension_numbers = #tpu.dot_dimension_numbers<[1], [0], [0], [1], [0, 0, 1, 1], [], []>} : vector<8x32xf32>, vector<32x128xf32>, vector<8x128xf32> -> vector<8x128xf32>
    %473 = arith.addf %471, %472 : vector<8x128xf32>
    %474 = vector.extract_strided_slice %473 {offsets = [0, 0], sizes = [8, 32], strides = [1, 1]} : vector<8x128xf32> to vector<8x32xf32>
    %475 = arith.negf %474 : vector<8x32xf32>
    %476 = math.exp %475 : vector<8x32xf32>
    %cst_140 = arith.constant 1.000000e+00 : f32
    %477 = vector.broadcast %cst_140 : f32 to vector<8x32xf32>
    %478 = arith.addf %477, %476 : vector<8x32xf32>
    %479 = arith.divf %477, %478 : vector<8x32xf32>
    %480 = vector.extract_strided_slice %473 {offsets = [0, 32], sizes = [8, 32], strides = [1, 1]} : vector<8x128xf32> to vector<8x32xf32>
    %481 = arith.negf %480 : vector<8x32xf32>
    %482 = math.exp %481 : vector<8x32xf32>
    %cst_141 = arith.constant 1.000000e+00 : f32
    %483 = vector.broadcast %cst_141 : f32 to vector<8x32xf32>
    %484 = arith.addf %483, %482 : vector<8x32xf32>
    %485 = arith.divf %483, %484 : vector<8x32xf32>
    %486 = vector.extract_strided_slice %473 {offsets = [0, 64], sizes = [8, 32], strides = [1, 1]} : vector<8x128xf32> to vector<8x32xf32>
    %487 = math.tanh %486 : vector<8x32xf32>
    %488 = vector.extract_strided_slice %473 {offsets = [0, 96], sizes = [8, 32], strides = [1, 1]} : vector<8x128xf32> to vector<8x32xf32>
    %489 = arith.negf %488 : vector<8x32xf32>
    %490 = math.exp %489 : vector<8x32xf32>
    %cst_142 = arith.constant 1.000000e+00 : f32
    %491 = vector.broadcast %cst_142 : f32 to vector<8x32xf32>
    %492 = arith.addf %491, %490 : vector<8x32xf32>
    %493 = arith.divf %491, %492 : vector<8x32xf32>
    %494 = arith.mulf %485, %462 : vector<8x32xf32>
    %495 = arith.mulf %479, %487 : vector<8x32xf32>
    %496 = arith.addf %494, %495 : vector<8x32xf32>
    %497 = math.tanh %496 : vector<8x32xf32>
    %498 = arith.mulf %493, %497 : vector<8x32xf32>
    %499 = arith.index_cast %c5_i32_136 : i32 to index
    %c0_143 = arith.constant 0 : index
    %c0_144 = arith.constant 0 : index
    %500 = vector.load %arg9[%499, %c0_143, %c0_144] : memref<8x8x32xf32, #tpu.memory_space<vmem>>, vector<1x8x32xf32>
    %501 = vector.shape_cast %500 : vector<1x8x32xf32> to vector<8x32xf32>
    %502 = vector.shape_cast %498 : vector<8x32xf32> to vector<1x8x32xf32>
    tpu.vector_store %arg9[%499, %c0_143, %c0_144], %502 {strides = array<i32>} : memref<8x8x32xf32, #tpu.memory_space<vmem>>, vector<1x8x32xf32>,
    %c6_i32_145 = arith.constant 6 : i32
    %503 = arith.index_cast %c6_i32_145 : i32 to index
    %c0_146 = arith.constant 0 : index
    %c0_147 = arith.constant 0 : index
    %504 = vector.load %arg7[%503, %c0_146, %c0_147] : memref<8x8x128xf32, #tpu.memory_space<vmem>>, vector<1x8x128xf32>
    %505 = vector.shape_cast %504 : vector<1x8x128xf32> to vector<8x128xf32>
    %cst_148 = arith.constant dense<0.000000e+00> : vector<8x128xf32>
    %506 = tpu.matmul %498, %3, %cst_148 {dimension_numbers = #tpu.dot_dimension_numbers<[1], [0], [0], [1], [0, 0, 1, 1], [], []>} : vector<8x32xf32>, vector<32x128xf32>, vector<8x128xf32> -> vector<8x128xf32>
    %507 = arith.addf %505, %506 : vector<8x128xf32>
    %508 = vector.extract_strided_slice %507 {offsets = [0, 0], sizes = [8, 32], strides = [1, 1]} : vector<8x128xf32> to vector<8x32xf32>
    %509 = arith.negf %508 : vector<8x32xf32>
    %510 = math.exp %509 : vector<8x32xf32>
    %cst_149 = arith.constant 1.000000e+00 : f32
    %511 = vector.broadcast %cst_149 : f32 to vector<8x32xf32>
    %512 = arith.addf %511, %510 : vector<8x32xf32>
    %513 = arith.divf %511, %512 : vector<8x32xf32>
    %514 = vector.extract_strided_slice %507 {offsets = [0, 32], sizes = [8, 32], strides = [1, 1]} : vector<8x128xf32> to vector<8x32xf32>
    %515 = arith.negf %514 : vector<8x32xf32>
    %516 = math.exp %515 : vector<8x32xf32>
    %cst_150 = arith.constant 1.000000e+00 : f32
    %517 = vector.broadcast %cst_150 : f32 to vector<8x32xf32>
    %518 = arith.addf %517, %516 : vector<8x32xf32>
    %519 = arith.divf %517, %518 : vector<8x32xf32>
    %520 = vector.extract_strided_slice %507 {offsets = [0, 64], sizes = [8, 32], strides = [1, 1]} : vector<8x128xf32> to vector<8x32xf32>
    %521 = math.tanh %520 : vector<8x32xf32>
    %522 = vector.extract_strided_slice %507 {offsets = [0, 96], sizes = [8, 32], strides = [1, 1]} : vector<8x128xf32> to vector<8x32xf32>
    %523 = arith.negf %522 : vector<8x32xf32>
    %524 = math.exp %523 : vector<8x32xf32>
    %cst_151 = arith.constant 1.000000e+00 : f32
    %525 = vector.broadcast %cst_151 : f32 to vector<8x32xf32>
    %526 = arith.addf %525, %524 : vector<8x32xf32>
    %527 = arith.divf %525, %526 : vector<8x32xf32>
    %528 = arith.mulf %519, %496 : vector<8x32xf32>
    %529 = arith.mulf %513, %521 : vector<8x32xf32>
    %530 = arith.addf %528, %529 : vector<8x32xf32>
    %531 = math.tanh %530 : vector<8x32xf32>
    %532 = arith.mulf %527, %531 : vector<8x32xf32>
    %533 = arith.index_cast %c6_i32_145 : i32 to index
    %c0_152 = arith.constant 0 : index
    %c0_153 = arith.constant 0 : index
    %534 = vector.load %arg9[%533, %c0_152, %c0_153] : memref<8x8x32xf32, #tpu.memory_space<vmem>>, vector<1x8x32xf32>
    %535 = vector.shape_cast %534 : vector<1x8x32xf32> to vector<8x32xf32>
    %536 = vector.shape_cast %532 : vector<8x32xf32> to vector<1x8x32xf32>
    tpu.vector_store %arg9[%533, %c0_152, %c0_153], %536 {strides = array<i32>} : memref<8x8x32xf32, #tpu.memory_space<vmem>>, vector<1x8x32xf32>,
    %c7_i32_154 = arith.constant 7 : i32
    %537 = arith.index_cast %c7_i32_154 : i32 to index
    %c0_155 = arith.constant 0 : index
    %c0_156 = arith.constant 0 : index
    %538 = vector.load %arg7[%537, %c0_155, %c0_156] : memref<8x8x128xf32, #tpu.memory_space<vmem>>, vector<1x8x128xf32>
    %539 = vector.shape_cast %538 : vector<1x8x128xf32> to vector<8x128xf32>
    %cst_157 = arith.constant dense<0.000000e+00> : vector<8x128xf32>
    %540 = tpu.matmul %532, %3, %cst_157 {dimension_numbers = #tpu.dot_dimension_numbers<[1], [0], [0], [1], [0, 0, 1, 1], [], []>} : vector<8x32xf32>, vector<32x128xf32>, vector<8x128xf32> -> vector<8x128xf32>
    %541 = arith.addf %539, %540 : vector<8x128xf32>
    %542 = vector.extract_strided_slice %541 {offsets = [0, 0], sizes = [8, 32], strides = [1, 1]} : vector<8x128xf32> to vector<8x32xf32>
    %543 = arith.negf %542 : vector<8x32xf32>
    %544 = math.exp %543 : vector<8x32xf32>
    %cst_158 = arith.constant 1.000000e+00 : f32
    %545 = vector.broadcast %cst_158 : f32 to vector<8x32xf32>
    %546 = arith.addf %545, %544 : vector<8x32xf32>
    %547 = arith.divf %545, %546 : vector<8x32xf32>
    %548 = vector.extract_strided_slice %541 {offsets = [0, 32], sizes = [8, 32], strides = [1, 1]} : vector<8x128xf32> to vector<8x32xf32>
    %549 = arith.negf %548 : vector<8x32xf32>
    %550 = math.exp %549 : vector<8x32xf32>
    %cst_159 = arith.constant 1.000000e+00 : f32
    %551 = vector.broadcast %cst_159 : f32 to vector<8x32xf32>
    %552 = arith.addf %551, %550 : vector<8x32xf32>
    %553 = arith.divf %551, %552 : vector<8x32xf32>
    %554 = vector.extract_strided_slice %541 {offsets = [0, 64], sizes = [8, 32], strides = [1, 1]} : vector<8x128xf32> to vector<8x32xf32>
    %555 = math.tanh %554 : vector<8x32xf32>
    %556 = vector.extract_strided_slice %541 {offsets = [0, 96], sizes = [8, 32], strides = [1, 1]} : vector<8x128xf32> to vector<8x32xf32>
    %557 = arith.negf %556 : vector<8x32xf32>
    %558 = math.exp %557 : vector<8x32xf32>
    %cst_160 = arith.constant 1.000000e+00 : f32
    %559 = vector.broadcast %cst_160 : f32 to vector<8x32xf32>
    %560 = arith.addf %559, %558 : vector<8x32xf32>
    %561 = arith.divf %559, %560 : vector<8x32xf32>
    %562 = arith.mulf %553, %530 : vector<8x32xf32>
    %563 = arith.mulf %547, %555 : vector<8x32xf32>
    %564 = arith.addf %562, %563 : vector<8x32xf32>
    %565 = math.tanh %564 : vector<8x32xf32>
    %566 = arith.mulf %561, %565 : vector<8x32xf32>
    %567 = arith.index_cast %c7_i32_154 : i32 to index
    %c0_161 = arith.constant 0 : index
    %c0_162 = arith.constant 0 : index
    %568 = vector.load %arg9[%567, %c0_161, %c0_162] : memref<8x8x32xf32, #tpu.memory_space<vmem>>, vector<1x8x32xf32>
    %569 = vector.shape_cast %568 : vector<1x8x32xf32> to vector<8x32xf32>
    %570 = vector.shape_cast %566 : vector<8x32xf32> to vector<1x8x32xf32>
    tpu.vector_store %arg9[%567, %c0_161, %c0_162], %570 {strides = array<i32>} : memref<8x8x32xf32, #tpu.memory_space<vmem>>, vector<1x8x32xf32>,
    %c8_i32_163 = arith.constant 8 : i32
    %c0_164 = arith.constant 0 : index
    %c0_165 = arith.constant 0 : index
    %c0_166 = arith.constant 0 : index
    %571 = vector.load %arg8[%c0_164, %c0_165, %c0_166] : memref<8x8x32xf32, #tpu.memory_space<vmem>>, vector<8x8x32xf32>
    %572 = vector.shape_cast %571 : vector<8x8x32xf32> to vector<64x32xf32>
    %c0_167 = arith.constant 0 : index
    %c0_168 = arith.constant 0 : index
    %c0_169 = arith.constant 0 : index
    %573 = vector.load %arg9[%c0_167, %c0_168, %c0_169] : memref<8x8x32xf32, #tpu.memory_space<vmem>>, vector<8x8x32xf32>
    %574 = vector.shape_cast %573 : vector<8x8x32xf32> to vector<64x32xf32>
    %cst_170 = arith.constant dense<0.000000e+00> : vector<64x128xf32>
    %575 = tpu.matmul %572, %4, %cst_170 {dimension_numbers = #tpu.dot_dimension_numbers<[1], [0], [0], [1], [0, 0, 1, 1], [], []>} : vector<64x32xf32>, vector<32x128xf32>, vector<64x128xf32> -> vector<64x128xf32>
    %cst_171 = arith.constant dense<0.000000e+00> : vector<64x128xf32>
    %576 = tpu.matmul %574, %5, %cst_171 {dimension_numbers = #tpu.dot_dimension_numbers<[1], [0], [0], [1], [0, 0, 1, 1], [], []>} : vector<64x32xf32>, vector<32x128xf32>, vector<64x128xf32> -> vector<64x128xf32>
    %c0_172 = arith.constant 0 : index
    %c0_173 = arith.constant 0 : index
    %577 = vector.load %arg2[%c0_172, %c0_173] : memref<64x64xf32, #tpu.memory_space<vmem>>, vector<64x64xf32>
    %cst_174 = arith.constant 0.000000e+00 : f32
    %578 = vector.broadcast %cst_174 : f32 to vector<64x32xf32>
    %579 = vector.extract_strided_slice %576 {offsets = [0, 0], sizes = [64, 8], strides = [1, 1]} : vector<64x128xf32> to vector<64x8xf32>
    %580 = vector.extract_strided_slice %575 {offsets = [0, 0], sizes = [64, 8], strides = [1, 1]} : vector<64x128xf32> to vector<64x8xf32>
    %581 = vector.extract_strided_slice %575 {offsets = [0, 32], sizes = [64, 8], strides = [1, 1]} : vector<64x128xf32> to vector<64x8xf32>
    %cst_175 = arith.constant dense<0.000000e+00> : vector<64x64xf32>
    %582 = tpu.matmul %579, %580, %cst_175 {dimension_numbers = #tpu.dot_dimension_numbers<[1], [1], [0], [0], [0, 0, 1, 0], [], []>} : vector<64x8xf32>, vector<64x8xf32>, vector<64x64xf32> -> vector<64x64xf32>
    %583 = arith.addf %582, %577 : vector<64x64xf32>
    %cst_176 = arith.constant dense<0xFF800000> : vector<64xf32>
    %584 = vector.multi_reduction <maximumf>, %583, %cst_176 [1] : vector<64x64xf32> to vector<64xf32>
    %585 = vector.shape_cast %584 : vector<64xf32> to vector<64x1xf32>
    %586 = vector.broadcast %585 : vector<64x1xf32> to vector<64x64xf32>
    %587 = arith.subf %583, %586 : vector<64x64xf32>
    %588 = math.exp %587 : vector<64x64xf32>
    %cst_177 = arith.constant dense<0.000000e+00> : vector<64xf32>
    %589 = vector.multi_reduction <add>, %588, %cst_177 [1] : vector<64x64xf32> to vector<64xf32>
    %590 = vector.shape_cast %589 : vector<64xf32> to vector<64x1xf32>
    %591 = tpu.reciprocal %590 {approx = true} : vector<64x1xf32> -> vector<64x1xf32>
    %592 = vector.broadcast %591 : vector<64x1xf32> to vector<64x64xf32>
    %593 = arith.mulf %588, %592 : vector<64x64xf32>
    %cst_178 = arith.constant dense<0.000000e+00> : vector<64x8xf32>
    %594 = tpu.matmul %593, %581, %cst_178 {dimension_numbers = #tpu.dot_dimension_numbers<[1], [0], [0], [1], [0, 0, 1, 1], [], []>} : vector<64x64xf32>, vector<64x8xf32>, vector<64x8xf32> -> vector<64x8xf32>
    %595 = vector.extract_strided_slice %6 {offsets = [0, 0], sizes = [8, 32], strides = [1, 1]} : vector<32x128xf32> to vector<8x32xf32>
    %cst_179 = arith.constant dense<0.000000e+00> : vector<64x32xf32>
    %596 = tpu.matmul %594, %595, %cst_179 {dimension_numbers = #tpu.dot_dimension_numbers<[1], [0], [0], [1], [0, 0, 1, 1], [], []>} : vector<64x8xf32>, vector<8x32xf32>, vector<64x32xf32> -> vector<64x32xf32>
    %597 = arith.addf %578, %596 : vector<64x32xf32>
    %598 = vector.extract_strided_slice %576 {offsets = [0, 8], sizes = [64, 8], strides = [1, 1]} : vector<64x128xf32> to vector<64x8xf32>
    %599 = vector.extract_strided_slice %575 {offsets = [0, 8], sizes = [64, 8], strides = [1, 1]} : vector<64x128xf32> to vector<64x8xf32>
    %600 = vector.extract_strided_slice %575 {offsets = [0, 40], sizes = [64, 8], strides = [1, 1]} : vector<64x128xf32> to vector<64x8xf32>
    %cst_180 = arith.constant dense<0.000000e+00> : vector<64x64xf32>
    %601 = tpu.matmul %598, %599, %cst_180 {dimension_numbers = #tpu.dot_dimension_numbers<[1], [1], [0], [0], [0, 0, 1, 0], [], []>} : vector<64x8xf32>, vector<64x8xf32>, vector<64x64xf32> -> vector<64x64xf32>
    %602 = arith.addf %601, %577 : vector<64x64xf32>
    %cst_181 = arith.constant dense<0xFF800000> : vector<64xf32>
    %603 = vector.multi_reduction <maximumf>, %602, %cst_181 [1] : vector<64x64xf32> to vector<64xf32>
    %604 = vector.shape_cast %603 : vector<64xf32> to vector<64x1xf32>
    %605 = vector.broadcast %604 : vector<64x1xf32> to vector<64x64xf32>
    %606 = arith.subf %602, %605 : vector<64x64xf32>
    %607 = math.exp %606 : vector<64x64xf32>
    %cst_182 = arith.constant dense<0.000000e+00> : vector<64xf32>
    %608 = vector.multi_reduction <add>, %607, %cst_182 [1] : vector<64x64xf32> to vector<64xf32>
    %609 = vector.shape_cast %608 : vector<64xf32> to vector<64x1xf32>
    %610 = tpu.reciprocal %609 {approx = true} : vector<64x1xf32> -> vector<64x1xf32>
    %611 = vector.broadcast %610 : vector<64x1xf32> to vector<64x64xf32>
    %612 = arith.mulf %607, %611 : vector<64x64xf32>
    %cst_183 = arith.constant dense<0.000000e+00> : vector<64x8xf32>
    %613 = tpu.matmul %612, %600, %cst_183 {dimension_numbers = #tpu.dot_dimension_numbers<[1], [0], [0], [1], [0, 0, 1, 1], [], []>} : vector<64x64xf32>, vector<64x8xf32>, vector<64x8xf32> -> vector<64x8xf32>
    %614 = vector.extract_strided_slice %6 {offsets = [8, 0], sizes = [8, 32], strides = [1, 1]} : vector<32x128xf32> to vector<8x32xf32>
    %cst_184 = arith.constant dense<0.000000e+00> : vector<64x32xf32>
    %615 = tpu.matmul %613, %614, %cst_184 {dimension_numbers = #tpu.dot_dimension_numbers<[1], [0], [0], [1], [0, 0, 1, 1], [], []>} : vector<64x8xf32>, vector<8x32xf32>, vector<64x32xf32> -> vector<64x32xf32>
    %616 = arith.addf %597, %615 : vector<64x32xf32>
    %617 = vector.extract_strided_slice %576 {offsets = [0, 16], sizes = [64, 8], strides = [1, 1]} : vector<64x128xf32> to vector<64x8xf32>
    %618 = vector.extract_strided_slice %575 {offsets = [0, 16], sizes = [64, 8], strides = [1, 1]} : vector<64x128xf32> to vector<64x8xf32>
    %619 = vector.extract_strided_slice %575 {offsets = [0, 48], sizes = [64, 8], strides = [1, 1]} : vector<64x128xf32> to vector<64x8xf32>
    %cst_185 = arith.constant dense<0.000000e+00> : vector<64x64xf32>
    %620 = tpu.matmul %617, %618, %cst_185 {dimension_numbers = #tpu.dot_dimension_numbers<[1], [1], [0], [0], [0, 0, 1, 0], [], []>} : vector<64x8xf32>, vector<64x8xf32>, vector<64x64xf32> -> vector<64x64xf32>
    %621 = arith.addf %620, %577 : vector<64x64xf32>
    %cst_186 = arith.constant dense<0xFF800000> : vector<64xf32>
    %622 = vector.multi_reduction <maximumf>, %621, %cst_186 [1] : vector<64x64xf32> to vector<64xf32>
    %623 = vector.shape_cast %622 : vector<64xf32> to vector<64x1xf32>
    %624 = vector.broadcast %623 : vector<64x1xf32> to vector<64x64xf32>
    %625 = arith.subf %621, %624 : vector<64x64xf32>
    %626 = math.exp %625 : vector<64x64xf32>
    %cst_187 = arith.constant dense<0.000000e+00> : vector<64xf32>
    %627 = vector.multi_reduction <add>, %626, %cst_187 [1] : vector<64x64xf32> to vector<64xf32>
    %628 = vector.shape_cast %627 : vector<64xf32> to vector<64x1xf32>
    %629 = tpu.reciprocal %628 {approx = true} : vector<64x1xf32> -> vector<64x1xf32>
    %630 = vector.broadcast %629 : vector<64x1xf32> to vector<64x64xf32>
    %631 = arith.mulf %626, %630 : vector<64x64xf32>
    %cst_188 = arith.constant dense<0.000000e+00> : vector<64x8xf32>
    %632 = tpu.matmul %631, %619, %cst_188 {dimension_numbers = #tpu.dot_dimension_numbers<[1], [0], [0], [1], [0, 0, 1, 1], [], []>} : vector<64x64xf32>, vector<64x8xf32>, vector<64x8xf32> -> vector<64x8xf32>
    %633 = vector.extract_strided_slice %6 {offsets = [16, 0], sizes = [8, 32], strides = [1, 1]} : vector<32x128xf32> to vector<8x32xf32>
    %cst_189 = arith.constant dense<0.000000e+00> : vector<64x32xf32>
    %634 = tpu.matmul %632, %633, %cst_189 {dimension_numbers = #tpu.dot_dimension_numbers<[1], [0], [0], [1], [0, 0, 1, 1], [], []>} : vector<64x8xf32>, vector<8x32xf32>, vector<64x32xf32> -> vector<64x32xf32>
    %635 = arith.addf %616, %634 : vector<64x32xf32>
    %636 = vector.extract_strided_slice %576 {offsets = [0, 24], sizes = [64, 8], strides = [1, 1]} : vector<64x128xf32> to vector<64x8xf32>
    %637 = vector.extract_strided_slice %575 {offsets = [0, 24], sizes = [64, 8], strides = [1, 1]} : vector<64x128xf32> to vector<64x8xf32>
    %638 = vector.extract_strided_slice %575 {offsets = [0, 56], sizes = [64, 8], strides = [1, 1]} : vector<64x128xf32> to vector<64x8xf32>
    %cst_190 = arith.constant dense<0.000000e+00> : vector<64x64xf32>
    %639 = tpu.matmul %636, %637, %cst_190 {dimension_numbers = #tpu.dot_dimension_numbers<[1], [1], [0], [0], [0, 0, 1, 0], [], []>} : vector<64x8xf32>, vector<64x8xf32>, vector<64x64xf32> -> vector<64x64xf32>
    %640 = arith.addf %639, %577 : vector<64x64xf32>
    %cst_191 = arith.constant dense<0xFF800000> : vector<64xf32>
    %641 = vector.multi_reduction <maximumf>, %640, %cst_191 [1] : vector<64x64xf32> to vector<64xf32>
    %642 = vector.shape_cast %641 : vector<64xf32> to vector<64x1xf32>
    %643 = vector.broadcast %642 : vector<64x1xf32> to vector<64x64xf32>
    %644 = arith.subf %640, %643 : vector<64x64xf32>
    %645 = math.exp %644 : vector<64x64xf32>
    %cst_192 = arith.constant dense<0.000000e+00> : vector<64xf32>
    %646 = vector.multi_reduction <add>, %645, %cst_192 [1] : vector<64x64xf32> to vector<64xf32>
    %647 = vector.shape_cast %646 : vector<64xf32> to vector<64x1xf32>
    %648 = tpu.reciprocal %647 {approx = true} : vector<64x1xf32> -> vector<64x1xf32>
    %649 = vector.broadcast %648 : vector<64x1xf32> to vector<64x64xf32>
    %650 = arith.mulf %645, %649 : vector<64x64xf32>
    %cst_193 = arith.constant dense<0.000000e+00> : vector<64x8xf32>
    %651 = tpu.matmul %650, %638, %cst_193 {dimension_numbers = #tpu.dot_dimension_numbers<[1], [0], [0], [1], [0, 0, 1, 1], [], []>} : vector<64x64xf32>, vector<64x8xf32>, vector<64x8xf32> -> vector<64x8xf32>
    %652 = vector.extract_strided_slice %6 {offsets = [24, 0], sizes = [8, 32], strides = [1, 1]} : vector<32x128xf32> to vector<8x32xf32>
    %cst_194 = arith.constant dense<0.000000e+00> : vector<64x32xf32>
    %653 = tpu.matmul %651, %652, %cst_194 {dimension_numbers = #tpu.dot_dimension_numbers<[1], [0], [0], [1], [0, 0, 1, 1], [], []>} : vector<64x8xf32>, vector<8x32xf32>, vector<64x32xf32> -> vector<64x32xf32>
    %654 = arith.addf %635, %653 : vector<64x32xf32>
    %655 = vector.extract_strided_slice %576 {offsets = [0, 32], sizes = [64, 32], strides = [1, 1]} : vector<64x128xf32> to vector<64x32xf32>
    %656 = vector.extract_strided_slice %6 {offsets = [0, 32], sizes = [32, 32], strides = [1, 1]} : vector<32x128xf32> to vector<32x32xf32>
    %cst_195 = arith.constant dense<0.000000e+00> : vector<64x32xf32>
    %657 = tpu.matmul %654, %656, %cst_195 {dimension_numbers = #tpu.dot_dimension_numbers<[1], [0], [0], [1], [0, 0, 1, 1], [], []>} : vector<64x32xf32>, vector<32x32xf32>, vector<64x32xf32> -> vector<64x32xf32>
    %658 = arith.addf %655, %657 : vector<64x32xf32>
    %659 = math.tanh %658 : vector<64x32xf32>
    %cst_196 = arith.constant dense<0.000000e+00> : vector<64x128xf32>
    %660 = tpu.matmul %659, %7, %cst_196 {dimension_numbers = #tpu.dot_dimension_numbers<[1], [0], [0], [1], [0, 0, 1, 1], [], []>} : vector<64x32xf32>, vector<32x128xf32>, vector<64x128xf32> -> vector<64x128xf32>
    %661 = vector.broadcast %10 : vector<1x128xf32> to vector<64x128xf32>
    %662 = arith.addf %660, %661 : vector<64x128xf32>
    %c0_197 = arith.constant 0 : index
    %c0_198 = arith.constant 0 : index
    %663 = vector.load %arg5[%c0_197, %c0_198] : memref<64x128xf32, #tpu.memory_space<vmem>>, vector<64x128xf32>
    tpu.vector_store %arg5[%c0_197, %c0_198], %662 {strides = array<i32>} : memref<64x128xf32, #tpu.memory_space<vmem>>, vector<64x128xf32>,
    return
  }
}

</mosaic_0001>

<bundles_post_ra>
// kernel: tile.8
= control target key start
LH: loop header
LB: loop body
LE: loop exit
PB: predicated region body
PF: predicated region fallthrough
CT: control target
= control target key end

     0   :  { %v429_v10 = vmov 0   ;;  %s638_s0 = inlined_call_operand.vmem [shape: pred[8,8], index: 0, kind: input, shape index: {}]   ;;  %s639_s1 = inlined_call_operand.vmem [shape: pred[8,8,8,8], index: 1, kind: output, shape index: {}]  }
   0x1   :  { %v4_v0 = vld [vmem:[%s638_s0] ss:$0 sm:$0xff]  ;;  %v391_v1 = vld [vmem:[%s638_s0 + $0x1] ss:$0 sm:$0xff] }
   0x2   :  { %v7_v2 = vand.u32 255, %v4_v0  ;;  %v49_v3 = vshra.s32 %v4_v0, 8  ;;  %v93_v4 = vshra.s32 %v4_v0, 16  ;;  %v382_v5 = vshrl.u32 %v4_v0, 24 }
   0x3   :  { %v183_v6 = vand.u32 255, %v391_v1  ;;  %v227_v7 = vshra.s32 %v391_v1, 8  ;;  %v272_v8 = vshra.s32 %v391_v1, 16  ;;  %v419_v9 = vshrl.u32 %v391_v1, 24 }
   0x4   :  { %v8_v11 = vpack.c.b16 %v429_v10, %v7_v2  ;;  %v50_v12 = vand.u32 255, %v49_v3  ;;  %v94_v13 = vand.u32 255, %v93_v4  ;;  %v140_v14 = vpack.c.b16 %v429_v10, %v382_v5 }
   0x5   :  { %v185_v15 = vpack.c.b16 %v429_v10, %v183_v6  ;;  %v228_v16 = vand.u32 255, %v227_v7  ;;  %v273_v17 = vand.u32 255, %v272_v8  ;;  %v320_v18 = vpack.c.b16 %v429_v10, %v419_v9 }
   0x6   :  { %v9_v19 = vpack.c.b8 %v429_v10, %v8_v11  ;;  %v52_v20 = vpack.c.b16 %v429_v10, %v50_v12  ;;  %v96_v21 = vpack.c.b16 %v429_v10, %v94_v13  ;;  %v141_v22 = vpack.c.b8 %v429_v10, %v140_v14 }
   0x7   :  { %v186_v23 = vpack.c.b8 %v429_v10, %v185_v15  ;;  %v230_v24 = vpack.c.b16 %v429_v10, %v228_v16  ;;  %v275_v25 = vpack.c.b16 %v429_v10, %v273_v17  ;;  %v321_v26 = vpack.c.b8 %v429_v10, %v320_v18 }
   0x8   :  { %11 = vst [vmem:[%s639_s1] sm:$0x3] %v9_v19  ;;  %359 = vst [vmem:[%s639_s1 + $0x10] sm:$0x3] %v9_v19  ;;  %v53_v27 = vpack.c.b8 %v429_v10, %v52_v20  ;;  %v97_v28 = vpack.c.b8 %v429_v10, %v96_v21 }
   0x9   :  { %360 = vst [vmem:[%s639_s1 + $0x20] sm:$0x3] %v9_v19  ;;  %361 = vst [vmem:[%s639_s1 + $0x30] sm:$0x3] %v9_v19  ;;  %v231_v29 = vpack.c.b8 %v429_v10, %v230_v24  ;;  %v276_v30 = vpack.c.b8 %v429_v10, %v275_v25 }
   0xa   :  { %362 = vst [vmem:[%s639_s1 + $0x40] sm:$0x3] %v9_v19  ;;  %363 = vst [vmem:[%s639_s1 + $0x50] sm:$0x3] %v9_v19 }
   0xb   :  { %364 = vst [vmem:[%s639_s1 + $0x60] sm:$0x3] %v9_v19  ;;  %365 = vst [vmem:[%s639_s1 + $0x70] sm:$0x3] %v9_v19 }
   0xc   :  { %383 = vst [vmem:[%s639_s1 + $0x6] sm:$0x3] %v141_v22  ;;  %384 = vst [vmem:[%s639_s1 + $0x16] sm:$0x3] %v141_v22 }
   0xd   :  { %385 = vst [vmem:[%s639_s1 + $0x26] sm:$0x3] %v141_v22  ;;  %386 = vst [vmem:[%s639_s1 + $0x36] sm:$0x3] %v141_v22 }
   0xe   :  { %387 = vst [vmem:[%s639_s1 + $0x46] sm:$0x3] %v141_v22  ;;  %388 = vst [vmem:[%s639_s1 + $0x56] sm:$0x3] %v141_v22 }
   0xf   :  { %389 = vst [vmem:[%s639_s1 + $0x66] sm:$0x3] %v141_v22  ;;  %390 = vst [vmem:[%s639_s1 + $0x76] sm:$0x3] %v141_v22 }
  0x10   :  { %392 = vst [vmem:[%s639_s1 + $0x8] sm:$0x3] %v186_v23  ;;  %393 = vst [vmem:[%s639_s1 + $0x18] sm:$0x3] %v186_v23 }
  0x11   :  { %394 = vst [vmem:[%s639_s1 + $0x28] sm:$0x3] %v186_v23  ;;  %395 = vst [vmem:[%s639_s1 + $0x38] sm:$0x3] %v186_v23 }
  0x12   :  { %396 = vst [vmem:[%s639_s1 + $0x48] sm:$0x3] %v186_v23  ;;  %397 = vst [vmem:[%s639_s1 + $0x58] sm:$0x3] %v186_v23 }
  0x13   :  { %398 = vst [vmem:[%s639_s1 + $0x68] sm:$0x3] %v186_v23  ;;  %399 = vst [vmem:[%s639_s1 + $0x78] sm:$0x3] %v186_v23 }
  0x14   :  { %420 = vst [vmem:[%s639_s1 + $0xe] sm:$0x3] %v321_v26  ;;  %421 = vst [vmem:[%s639_s1 + $0x1e] sm:$0x3] %v321_v26 }
  0x15   :  { %422 = vst [vmem:[%s639_s1 + $0x2e] sm:$0x3] %v321_v26  ;;  %423 = vst [vmem:[%s639_s1 + $0x3e] sm:$0x3] %v321_v26 }
  0x16   :  { %424 = vst [vmem:[%s639_s1 + $0x4e] sm:$0x3] %v321_v26  ;;  %425 = vst [vmem:[%s639_s1 + $0x5e] sm:$0x3] %v321_v26 }
  0x17   :  { %426 = vst [vmem:[%s639_s1 + $0x6e] sm:$0x3] %v321_v26  ;;  %427 = vst [vmem:[%s639_s1 + $0x7e] sm:$0x3] %v321_v26 }
  0x18   :  { %366 = vst [vmem:[%s639_s1 + $0x2] sm:$0x3] %v53_v27  ;;  %367 = vst [vmem:[%s639_s1 + $0x12] sm:$0x3] %v53_v27 }
  0x19   :  { %368 = vst [vmem:[%s639_s1 + $0x22] sm:$0x3] %v53_v27  ;;  %369 = vst [vmem:[%s639_s1 + $0x32] sm:$0x3] %v53_v27 }
  0x1a   :  { %370 = vst [vmem:[%s639_s1 + $0x42] sm:$0x3] %v53_v27  ;;  %371 = vst [vmem:[%s639_s1 + $0x52] sm:$0x3] %v53_v27 }
  0x1b   :  { %372 = vst [vmem:[%s639_s1 + $0x62] sm:$0x3] %v53_v27  ;;  %373 = vst [vmem:[%s639_s1 + $0x72] sm:$0x3] %v53_v27 }
  0x1c   :  { %374 = vst [vmem:[%s639_s1 + $0x4] sm:$0x3] %v97_v28  ;;  %375 = vst [vmem:[%s639_s1 + $0x14] sm:$0x3] %v97_v28 }
  0x1d   :  { %376 = vst [vmem:[%s639_s1 + $0x24] sm:$0x3] %v97_v28  ;;  %377 = vst [vmem:[%s639_s1 + $0x34] sm:$0x3] %v97_v28 }
  0x1e   :  { %378 = vst [vmem:[%s639_s1 + $0x44] sm:$0x3] %v97_v28  ;;  %379 = vst [vmem:[%s639_s1 + $0x54] sm:$0x3] %v97_v28 }
  0x1f   :  { %380 = vst [vmem:[%s639_s1 + $0x64] sm:$0x3] %v97_v28  ;;  %381 = vst [vmem:[%s639_s1 + $0x74] sm:$0x3] %v97_v28 }
  0x20   :  { %401 = vst [vmem:[%s639_s1 + $0xa] sm:$0x3] %v231_v29  ;;  %402 = vst [vmem:[%s639_s1 + $0x1a] sm:$0x3] %v231_v29 }
  0x21   :  { %403 = vst [vmem:[%s639_s1 + $0x2a] sm:$0x3] %v231_v29  ;;  %404 = vst [vmem:[%s639_s1 + $0x3a] sm:$0x3] %v231_v29 }
  0x22   :  { %405 = vst [vmem:[%s639_s1 + $0x4a] sm:$0x3] %v231_v29  ;;  %406 = vst [vmem:[%s639_s1 + $0x5a] sm:$0x3] %v231_v29 }
  0x23   :  { %407 = vst [vmem:[%s639_s1 + $0x6a] sm:$0x3] %v231_v29  ;;  %408 = vst [vmem:[%s639_s1 + $0x7a] sm:$0x3] %v231_v29 }
  0x24   :  { %410 = vst [vmem:[%s639_s1 + $0xc] sm:$0x3] %v276_v30  ;;  %411 = vst [vmem:[%s639_s1 + $0x1c] sm:$0x3] %v276_v30 }
  0x25   :  { %412 = vst [vmem:[%s639_s1 + $0x2c] sm:$0x3] %v276_v30  ;;  %413 = vst [vmem:[%s639_s1 + $0x3c] sm:$0x3] %v276_v30 }
  0x26   :  { %414 = vst [vmem:[%s639_s1 + $0x4c] sm:$0x3] %v276_v30  ;;  %415 = vst [vmem:[%s639_s1 + $0x5c] sm:$0x3] %v276_v30 }
  0x27   :  { %416 = vst [vmem:[%s639_s1 + $0x6c] sm:$0x3] %v276_v30  ;;  %417 = vst [vmem:[%s639_s1 + $0x7c] sm:$0x3] %v276_v30 }

// kernel: tile.9
= control target key start
LH: loop header
LB: loop body
LE: loop exit
PB: predicated region body
PF: predicated region fallthrough
CT: control target
= control target key end

     0   :  { %vm1027_vm0 = vcmask 1047556   ;;  %s1913_s9 = smov 56   ;;  %s1915_s12 = smov 40   ;;  %vm1029_vm1 = vcmask 64512   ;;  %vm1102_vm2 = vcmask 523712   ;;  %vm1189_vm3 = vcmask 458112   ;;  %s2196_s0 = inlined_call_operand.vmem [shape: pred[8,8,8,8], index: 0, kind: input, shape index: {}]   ;;  %s2197_s1 = inlined_call_operand.vmem [shape: pred[64,64], index: 1, kind: output, shape index: {}]  }
   0x1   :  { %v1891_v0 = vld [vmem:[%s2196_s0 + $0xe] sm:$0xff]   ;;  %v1892_v1 = vld [vmem:[%s2196_s0 + $0x6] sm:$0xff]   ;;  %v1950_v8 = vld [vmem:[%s2196_s0 + $0x1e] sm:$0xff]   ;;  %s1916_s13 = smov 32   ;;  %s1917_s14 = smov 24   ;;  %vm1276_vm4 = vcmask 392512  }
   0x2   :  { %v1940_v2 = vld [vmem:[%s2196_s0 + $0x2] ss:$100 sps:$4 sm:$0xff]   ;;  %v911_v3 = vunpack.c.0.s8 %v1891_v0  ;;  %v927_v4 = vunpack.c.3.s8 %v1892_v1  ;;  %v943_v5 = vunpack.c.2.s8 %v1892_v1  ;;  %v959_v6 = vunpack.c.1.s8 %v1892_v1  ;;  %v1945_v7 = vld [vmem:[%s2196_s0] ss:$114 sps:$2 sm:$0xf]   ;;  %v1884_v9 = vld [vmem:[%s2196_s0 + $0x16] sm:$0xff]  }
   0x3   :  { %v975_v10 = vunpack.c.0.s8 %v1892_v1  ;;  %v991_v11 = vunpack.c.1.s8 %v1940_v2  ;;  %v1006_v12 = vunpack.c.0.s8 %v1940_v2  ;;  %v1020_v13 = vunpack.c.0.s8 %v1945_v7  ;;  %v1961_v14 = vld [vmem:[%s2196_s0 + $0x4e] sm:$0xff]   ;;  %v1860_v15 = vld [vmem:[%s2196_s0 + $0x46] sm:$0xff]   ;;  %v1970_v20 = vld [vmem:[%s2196_s0 + $0x3e] sm:$0xff]   ;;  %s1918_s15 = smov 16   ;;  %s1919_s16 = smov 8  }
   0x4   :  { %916 = vst [vmem:[#allocation1 + $0x38] sm:$0xff] %v911_v3  ;;  %932 = vst [vmem:[#allocation1 + $0x30] sm:$0xff] %v927_v4  ;;  %v783_v16 = vunpack.c.0.s8 %v1950_v8  ;;  %v799_v17 = vunpack.c.3.s8 %v1884_v9  ;;  %v815_v18 = vunpack.c.2.s8 %v1884_v9  ;;  %v831_v19 = vunpack.c.1.s8 %v1884_v9  ;;  %v1975_v25 = vld [vmem:[%s2196_s0 + $0x5e] sm:$0xff]   ;;  %v1852_v26 = vld [vmem:[%s2196_s0 + $0x56] sm:$0xff]  }
   0x5   :  { %948 = vst [vmem:[#allocation1 + $0x28] sm:$0xff] %v943_v5  ;;  %964 = vst [vmem:[#allocation1 + $0x20] sm:$0xff] %v959_v6  ;;  %v847_v21 = vunpack.c.0.s8 %v1884_v9  ;;  %v863_v22 = vunpack.c.3.s8 %v1891_v0  ;;  %v879_v23 = vunpack.c.2.s8 %v1891_v0  ;;  %v895_v24 = vunpack.c.1.s8 %v1891_v0  ;;  %v1987_v35 = vld [vmem:[%s2196_s0 + $0x2e] sm:$0xff]   ;;  %v1876_v36 = vld [vmem:[%s2196_s0 + $0x26] sm:$0xff]  }
   0x6   :  { %980 = vst [vmem:[#allocation1 + $0x18] sm:$0xff] %v975_v10  ;;  %996 = vst [vmem:[#allocation1 + $0x10] sm:$0xff] %v991_v11  ;;  %v399_v27 = vunpack.c.0.s8 %v1961_v14  ;;  %v415_v28 = vunpack.c.3.s8 %v1860_v15  ;;  %v431_v29 = vunpack.c.2.s8 %v1860_v15  ;;  %v447_v30 = vunpack.c.1.s8 %v1860_v15  ;;  %v1999_v45 = vld [vmem:[%s2196_s0 + $0x6a] sm:$0xff]   ;;  %v1868_v55 = vld [vmem:[%s2196_s0 + $0x36] sm:$0xff]  }
   0x7   :  { %1011 = vst [vmem:[#allocation1 + $0x8] sm:$0xff] %v1006_v12  ;;  %1024 = vst [vmem:[#allocation1] sm:$0xff] %v1020_v13  ;;  %v463_v31 = vunpack.c.0.s8 %v1860_v15  ;;  %v479_v32 = vunpack.c.3.s8 %v1970_v20  ;;  %v495_v33 = vunpack.c.2.s8 %v1970_v20  ;;  %v511_v34 = vunpack.c.1.s8 %v1970_v20  ;;  %v1839_v9 = vld [vmem:[%s2196_s0 + $0x74] sm:$0xf]  }
   0x8   :  { %788 = vst [vmem:[#allocation1 + $0x78] sm:$0xff] %v783_v16  ;;  %804 = vst [vmem:[#allocation1 + $0x70] sm:$0xff] %v799_v17  ;;  %v271_v37 = vunpack.c.0.s8 %v1975_v25  ;;  %v287_v38 = vunpack.c.3.s8 %v1852_v26  ;;  %v303_v39 = vunpack.c.2.s8 %v1852_v26  ;;  %v319_v40 = vunpack.c.1.s8 %v1852_v26 }
   0x9   :  { %820 = vst [vmem:[#allocation1 + $0x68] sm:$0xff] %v815_v18  ;;  %836 = vst [vmem:[#allocation1 + $0x60] sm:$0xff] %v831_v19  ;;  %v335_v41 = vunpack.c.0.s8 %v1852_v26  ;;  %v351_v42 = vunpack.c.3.s8 %v1961_v14  ;;  %v367_v43 = vunpack.c.2.s8 %v1961_v14  ;;  %v383_v44 = vunpack.c.1.s8 %v1961_v14 }
   0xa   :  { %852 = vst [vmem:[#allocation1 + $0x58] sm:$0xff] %v847_v21  ;;  %868 = vst [vmem:[#allocation1 + $0x50] sm:$0xff] %v863_v22  ;;  %v655_v46 = vunpack.c.0.s8 %v1987_v35  ;;  %v671_v47 = vunpack.c.3.s8 %v1876_v36  ;;  %v687_v48 = vunpack.c.2.s8 %v1876_v36  ;;  %v703_v49 = vunpack.c.1.s8 %v1876_v36 }
   0xb   :  { %884 = vst [vmem:[#allocation1 + $0x48] sm:$0xff] %v879_v23  ;;  %900 = vst [vmem:[#allocation1 + $0x40] sm:$0xff] %v895_v24  ;;  %v719_v51 = vunpack.c.0.s8 %v1876_v36  ;;  %v735_v52 = vunpack.c.3.s8 %v1950_v8  ;;  %v751_v53 = vunpack.c.2.s8 %v1950_v8  ;;  %v767_v54 = vunpack.c.1.s8 %v1950_v8 }
   0xc   :  { %404 = vst [vmem:[#allocation1 + $0x138] sm:$0xff] %v399_v27  ;;  %420 = vst [vmem:[#allocation1 + $0x130] sm:$0xff] %v415_v28  ;;  %v1097_v50 = vld [vmem:[#allocation1 + $0x7] ss:$8 sm:$0xf0]   ;;  %v143_v57 = vunpack.c.2.s8 %v1999_v45  ;;  %v159_v58 = vunpack.c.1.s8 %v1999_v45  ;;  %v175_v59 = vunpack.c.0.s8 %v1999_v45  ;;  %v191_v60 = vunpack.c.3.s8 %v1940_v2 }
   0xd   :  { %436 = vst [vmem:[#allocation1 + $0x128] sm:$0xff] %v431_v29  ;;  %452 = vst [vmem:[#allocation1 + $0x120] sm:$0xff] %v447_v30  ;;  %v207_v63 = vunpack.c.2.s8 %v1940_v2  ;;  %v223_v0 = vunpack.c.3.s8 %v1975_v25  ;;  %v239_v1 = vunpack.c.2.s8 %v1975_v25  ;;  %v1835_v2 = vld [vmem:[%s2196_s0 + $0x78] sm:$0xff]   ;;  %v255_v4 = vunpack.c.1.s8 %v1975_v25  ;;  %s1914_s0 = smov 48  }
   0xe   :  { %468 = vst [vmem:[#allocation1 + $0x118] sm:$0xff] %v463_v31  ;;  %484 = vst [vmem:[#allocation1 + $0x110] sm:$0xff] %v479_v32  ;;  %v1095_v56 = vld [vmem:[#allocation1 + $0x7] ss:$8 sm:$0xf]   ;;  %v527_v5 = vunpack.c.0.s8 %v1970_v20  ;;  %v543_v6 = vunpack.c.3.s8 %v1868_v55  ;;  %v559_v8 = vunpack.c.2.s8 %v1868_v55  ;;  %v575_v12 = vunpack.c.1.s8 %v1868_v55 }
   0xf   :  { %500 = vst [vmem:[#allocation1 + $0x108] sm:$0xff] %v495_v33  ;;  %516 = vst [vmem:[#allocation1 + $0x100] sm:$0xff] %v511_v34  ;;  %v1099_v61 = vsel %vm1027_vm0, %v1097_v50, %v1095_v56  ;;  %v591_v13 = vunpack.c.0.s8 %v1868_v55  ;;  %v607_v14 = vunpack.c.3.s8 %v1987_v35  ;;  %v623_v16 = vunpack.c.2.s8 %v1987_v35  ;;  %v1184_v36 = vld [vmem:[#allocation1 + $0x6] ss:$8 sm:$0xf0]  }
  0x10   :  { %276 = vst [vmem:[#allocation1 + $0x178] sm:$0xff] %v271_v37  ;;  %292 = vst [vmem:[#allocation1 + $0x170] sm:$0xff] %v287_v38  ;;  %v1118_v62 = vld [vmem:[#allocation1 + $0x47] ss:$8 sm:$0xf0]   ;;  %1100 = vrot.lane.b32.xlu0 %v1099_v61, %s1913_s9  ;;  %v639_v17 = vunpack.c.1.s8 %v1987_v35  ;;  %v15_v18 = vunpack.c.3.s8 %v1835_v2  ;;  %v31_v19 = vunpack.c.2.s8 %v1835_v2  ;;  %v47_v22 = vunpack.c.1.s8 %v1835_v2 }
  0x11   :  { %308 = vst [vmem:[#allocation1 + $0x168] sm:$0xff] %v303_v39  ;;  %324 = vst [vmem:[#allocation1 + $0x160] sm:$0xff] %v319_v40  ;;  %v63_v23 = vunpack.c.0.s8 %v1835_v2  ;;  %v79_v24 = vunpack.c.1.s8 %v1839_v9  ;;  %v95_v26 = vunpack.c.0.s8 %v1839_v9  ;;  %v111_v7 = vunpack.c.1.s8 %v1945_v7  ;;  %v1182_v38 = vld [vmem:[#allocation1 + $0x6] ss:$8 sm:$0xf]  }
  0x12   :  { %340 = vst [vmem:[#allocation1 + $0x158] sm:$0xff] %v335_v41  ;;  %356 = vst [vmem:[#allocation1 + $0x150] sm:$0xff] %v351_v42  ;;  %v1116_v3 = vld [vmem:[#allocation1 + $0x47] ss:$8 sm:$0xf]   ;;  %v127_v27 = vunpack.c.3.s8 %v1999_v45  ;;  %v1186_v45 = vsel %vm1027_vm0, %v1184_v36, %v1182_v38  ;;  %vm1363_vm5 = vcmask 326912  }
  0x13   :  { %372 = vst [vmem:[#allocation1 + $0x148] sm:$0xff] %v367_v43  ;;  %388 = vst [vmem:[#allocation1 + $0x140] sm:$0xff] %v383_v44  ;;  %v1120_v10 = vsel %vm1027_vm0, %v1118_v62, %v1116_v3  ;;  %vm1450_vm6 = vcmask 261312   ;;  %vm1537_vm7 = vcmask 195712   ;;  %vm1624_vm8 = vcmask 130112  }
  0x14   :  { %660 = vst [vmem:[#allocation1 + $0xb8] sm:$0xff] %v655_v46  ;;  %676 = vst [vmem:[#allocation1 + $0xb0] sm:$0xff] %v671_v47  ;;  %v1107_v11 = vld [vmem:[#allocation1 + $0x107] ss:$8 sm:$0xf0]   ;;  %1121 = vrot.lane.b32.xlu1 %v1120_v10, %s1913_s9 }
  0x15   :  { %692 = vst [vmem:[#allocation1 + $0xa8] sm:$0xff] %v687_v48  ;;  %708 = vst [vmem:[#allocation1 + $0xa0] sm:$0xff] %v703_v49  ;;  %v1194_v41 = vld [vmem:[#allocation1 + $0x106] ss:$8 sm:$0xf0]  }
  0x16   :  { %724 = vst [vmem:[#allocation1 + $0x98] sm:$0xff] %v719_v51  ;;  %740 = vst [vmem:[#allocation1 + $0x90] sm:$0xff] %v735_v52  ;;  %v1105_v15 = vld [vmem:[#allocation1 + $0x107] ss:$8 sm:$0xf]  }
  0x17   :  { %756 = vst [vmem:[#allocation1 + $0x88] sm:$0xff] %v751_v53  ;;  %772 = vst [vmem:[#allocation1 + $0x80] sm:$0xff] %v767_v54  ;;  %v1109_v20 = vsel %vm1027_vm0, %v1107_v11, %v1105_v15  ;;  %v1192_v43 = vld [vmem:[#allocation1 + $0x106] ss:$8 sm:$0xf]  }
  0x18   :  { %148 = vst [vmem:[#allocation1 + $0x1b8] sm:$0xff] %v143_v57  ;;  %164 = vst [vmem:[#allocation1 + $0x1b0] sm:$0xff] %v159_v58  ;;  %v1129_v21 = vld [vmem:[#allocation1 + $0x147] ss:$8 sm:$0xf0]   ;;  %1110 = vrot.lane.b32.xlu0 %v1109_v20, %s1913_s9  ;;  %v1196_v48 = vsel %vm1027_vm0, %v1194_v41, %v1192_v43 }
  0x19   :  { %180 = vst [vmem:[#allocation1 + $0x1a8] sm:$0xff] %v175_v59  ;;  %196 = vst [vmem:[#allocation1 + $0x1a0] sm:$0xff] %v191_v60  ;;  %v1203_v46 = vld [vmem:[#allocation1 + $0x46] ss:$8 sm:$0xf]  }
  0x1a   :  { %212 = vst [vmem:[#allocation1 + $0x198] sm:$0xff] %v207_v63  ;;  %228 = vst [vmem:[#allocation1 + $0x190] sm:$0xff] %v223_v0  ;;  %v1127_v25 = vld [vmem:[#allocation1 + $0x147] ss:$8 sm:$0xf]  }
  0x1b   :  { %244 = vst [vmem:[#allocation1 + $0x188] sm:$0xff] %v239_v1  ;;  %260 = vst [vmem:[#allocation1 + $0x180] sm:$0xff] %v255_v4  ;;  %v1131_v28 = vsel %vm1027_vm0, %v1129_v21, %v1127_v25  ;;  %v1205_v47 = vld [vmem:[#allocation1 + $0x46] ss:$8 sm:$0xf0]  }
  0x1c   :  { %532 = vst [vmem:[#allocation1 + $0xf8] sm:$0xff] %v527_v5  ;;  %548 = vst [vmem:[#allocation1 + $0xf0] sm:$0xff] %v543_v6  ;;  %v1140_v29 = vld [vmem:[#allocation1 + $0x87] ss:$8 sm:$0xf0]   ;;  %1132 = vrot.lane.b32.xlu1 %v1131_v28, %s1913_s9  ;;  %v1207_v51 = vsel %vm1027_vm0, %v1205_v47, %v1203_v46 }
  0x1d   :  { %564 = vst [vmem:[#allocation1 + $0xe8] sm:$0xff] %v559_v8  ;;  %580 = vst [vmem:[#allocation1 + $0xe0] sm:$0xff] %v575_v12  ;;  %v1214_v49 = vld [vmem:[#allocation1 + $0x146] ss:$8 sm:$0xf]  }
  0x1e   :  { %596 = vst [vmem:[#allocation1 + $0xd8] sm:$0xff] %v591_v13  ;;  %612 = vst [vmem:[#allocation1 + $0xd0] sm:$0xff] %v607_v14  ;;  %v1138_v30 = vld [vmem:[#allocation1 + $0x87] ss:$8 sm:$0xf]  }
  0x1f   :  { %628 = vst [vmem:[#allocation1 + $0xc8] sm:$0xff] %v623_v16  ;;  %644 = vst [vmem:[#allocation1 + $0xc0] sm:$0xff] %v639_v17  ;;  %v1142_v31 = vsel %vm1027_vm0, %v1140_v29, %v1138_v30  ;;  %v1216_v50 = vld [vmem:[#allocation1 + $0x146] ss:$8 sm:$0xf0]  }
  0x20   :  { %20 = vst [vmem:[#allocation1 + $0x1f8] sm:$0xff] %v15_v18  ;;  %36 = vst [vmem:[#allocation1 + $0x1f0] sm:$0xff] %v31_v19  ;;  %v1151_v32 = vld [vmem:[#allocation1 + $0x187] ss:$8 sm:$0xf0]   ;;  %1143 = vrot.lane.b32.xlu0 %v1142_v31, %s1913_s9  ;;  %v1218_v54 = vsel %vm1027_vm0, %v1216_v50, %v1214_v49 }
  0x21   :  { %52 = vst [vmem:[#allocation1 + $0x1e8] sm:$0xff] %v47_v22  ;;  %68 = vst [vmem:[#allocation1 + $0x1e0] sm:$0xff] %v63_v23  ;;  %v1225_v52 = vld [vmem:[#allocation1 + $0x86] ss:$8 sm:$0xf]  }
  0x22   :  { %84 = vst [vmem:[#allocation1 + $0x1d8] sm:$0xff] %v79_v24  ;;  %100 = vst [vmem:[#allocation1 + $0x1d0] sm:$0xff] %v95_v26  ;;  %v1149_v33 = vld [vmem:[#allocation1 + $0x187] ss:$8 sm:$0xf]  }
  0x23   :  { %116 = vst [vmem:[#allocation1 + $0x1c8] sm:$0xff] %v111_v7  ;;  %132 = vst [vmem:[#allocation1 + $0x1c0] sm:$0xff] %v127_v27  ;;  %v1153_v34 = vsel %vm1027_vm0, %v1151_v32, %v1149_v33  ;;  %v1227_v53 = vld [vmem:[#allocation1 + $0x86] ss:$8 sm:$0xf0]  }
  0x24   :  { %v1162_v35 = vld [vmem:[#allocation1 + $0xc7] ss:$8 sm:$0xf0]   ;;  %1154 = vrot.lane.b32.xlu1 %v1153_v34, %s1913_s9  ;;  %v1236_v55 = vld [vmem:[#allocation1 + $0x186] ss:$8 sm:$0xf]   ;;  %v1229_v57 = vsel %vm1027_vm0, %v1227_v53, %v1225_v52 }
  0x25   :  { %v1238_v56 = vld [vmem:[#allocation1 + $0x186] ss:$8 sm:$0xf0]   ;;  %v1269_v0 = vld [vmem:[#allocation1 + $0x5] ss:$8 sm:$0xf]  }
  0x26   :  { %v1160_v37 = vld [vmem:[#allocation1 + $0xc7] ss:$8 sm:$0xf]   ;;  %v1247_v58 = vld [vmem:[#allocation1 + $0xc6] ss:$8 sm:$0xf]   ;;  %v1240_v60 = vsel %vm1027_vm0, %v1238_v56, %v1236_v55 }
  0x27   :  { %v1164_v39 = vsel %vm1027_vm0, %v1162_v35, %v1160_v37  ;;  %v1249_v59 = vld [vmem:[#allocation1 + $0xc6] ss:$8 sm:$0xf0]   ;;  %v1271_v1 = vld [vmem:[#allocation1 + $0x5] ss:$8 sm:$0xf0]  }
  0x28   :  { %v1173_v40 = vld [vmem:[#allocation1 + $0x1c7] ss:$8 sm:$0xf0]   ;;  %1165 = vrot.lane.b32.xlu0 %v1164_v39, %s1913_s9  ;;  %v1260_v62 = vld [vmem:[#allocation1 + $0x1c6] ss:$8 sm:$0xf0]   ;;  %v1251_v63 = vsel %vm1027_vm0, %v1249_v59, %v1247_v58  ;;  %v1273_v5 = vsel %vm1027_vm0, %v1271_v1, %v1269_v0 }
  0x29   :  { %v1279_v3 = vld [vmem:[#allocation1 + $0x105] ss:$8 sm:$0xf]   ;;  %v1356_v25 = vld [vmem:[#allocation1 + $0x4] ss:$8 sm:$0xf]  }
  0x2a   :  { %v1171_v42 = vld [vmem:[#allocation1 + $0x1c7] ss:$8 sm:$0xf]   ;;  %v1258_v61 = vld [vmem:[#allocation1 + $0x1c6] ss:$8 sm:$0xf]  }
  0x2b   :  { %v1175_v44 = vsel %vm1027_vm0, %v1173_v40, %v1171_v42  ;;  %v1262_v2 = vsel %vm1027_vm0, %v1260_v62, %v1258_v61  ;;  %v1281_v4 = vld [vmem:[#allocation1 + $0x105] ss:$8 sm:$0xf0]   ;;  %v1358_v26 = vld [vmem:[#allocation1 + $0x4] ss:$8 sm:$0xf0]  }
  0x2c   :  { %1176 = vrot.lane.b32.xlu1 %v1175_v44, %s1913_s9  ;;  %1187 = vrot.lane.b32.xlu0 %v1186_v45, %s1914_s0  ;;  %v1290_v6 = vld [vmem:[#allocation1 + $0x45] ss:$8 sm:$0xf]   ;;  %v1283_v9 = vsel %vm1027_vm0, %v1281_v4, %v1279_v3  ;;  %v1366_v27 = vld [vmem:[#allocation1 + $0x104] ss:$8 sm:$0xf]   ;;  %v1360_v29 = vsel %vm1027_vm0, %v1358_v26, %v1356_v25 }
  0x2d   :  { %v1292_v8 = vld [vmem:[#allocation1 + $0x45] ss:$8 sm:$0xf0]   ;;  %v1368_v28 = vld [vmem:[#allocation1 + $0x104] ss:$8 sm:$0xf0]  }
  0x2e   :  { %v1301_v10 = vld [vmem:[#allocation1 + $0x145] ss:$8 sm:$0xf]   ;;  %v1294_v12 = vsel %vm1027_vm0, %v1292_v8, %v1290_v6  ;;  %v1377_v30 = vld [vmem:[#allocation1 + $0x44] ss:$8 sm:$0xf]   ;;  %v1370_v32 = vsel %vm1027_vm0, %v1368_v28, %v1366_v27 }
  0x2f   :  { %v1303_v11 = vld [vmem:[#allocation1 + $0x145] ss:$8 sm:$0xf0]   ;;  %v1379_v31 = vld [vmem:[#allocation1 + $0x44] ss:$8 sm:$0xf0]  }
  0x30   :  { %1197 = vrot.lane.b32.xlu1 %v1196_v48, %s1914_s0  ;;  %1208 = vrot.lane.b32.xlu0 %v1207_v51, %s1914_s0  ;;  %v1312_v13 = vld [vmem:[#allocation1 + $0x85] ss:$8 sm:$0xf]   ;;  %v1305_v15 = vsel %vm1027_vm0, %v1303_v11, %v1301_v10  ;;  %v1388_v33 = vld [vmem:[#allocation1 + $0x144] ss:$8 sm:$0xf]   ;;  %v1381_v35 = vsel %vm1027_vm0, %v1379_v31, %v1377_v30 }
  0x31   :  { %v1314_v14 = vld [vmem:[#allocation1 + $0x85] ss:$8 sm:$0xf0]   ;;  %v1390_v34 = vld [vmem:[#allocation1 + $0x144] ss:$8 sm:$0xf0]  }
  0x32   :  { %v1323_v16 = vld [vmem:[#allocation1 + $0x185] ss:$8 sm:$0xf]   ;;  %v1316_v18 = vsel %vm1027_vm0, %v1314_v14, %v1312_v13  ;;  %v1399_v36 = vld [vmem:[#allocation1 + $0x84] ss:$8 sm:$0xf]   ;;  %v1392_v38 = vsel %vm1027_vm0, %v1390_v34, %v1388_v33 }
  0x33   :  { %v1325_v17 = vld [vmem:[#allocation1 + $0x185] ss:$8 sm:$0xf0]   ;;  %v1401_v37 = vld [vmem:[#allocation1 + $0x84] ss:$8 sm:$0xf0]  }
  0x34   :  { %1219 = vrot.lane.b32.xlu1 %v1218_v54, %s1914_s0  ;;  %1230 = vrot.lane.b32.xlu0 %v1229_v57, %s1914_s0  ;;  %v1334_v19 = vld [vmem:[#allocation1 + $0xc5] ss:$8 sm:$0xf]   ;;  %v1327_v21 = vsel %vm1027_vm0, %v1325_v17, %v1323_v16  ;;  %v1410_v39 = vld [vmem:[#allocation1 + $0x184] ss:$8 sm:$0xf]   ;;  %v1403_v44 = vsel %vm1027_vm0, %v1401_v37, %v1399_v36 }
  0x35   :  { %v1336_v20 = vld [vmem:[#allocation1 + $0xc5] ss:$8 sm:$0xf0]   ;;  %v1412_v40 = vld [vmem:[#allocation1 + $0x184] ss:$8 sm:$0xf0]  }
  0x36   :  { %v1345_v22 = vld [vmem:[#allocation1 + $0x1c5] ss:$8 sm:$0xf]   ;;  %v1338_v24 = vsel %vm1027_vm0, %v1336_v20, %v1334_v19  ;;  %v1421_v41 = vld [vmem:[#allocation1 + $0xc4] ss:$8 sm:$0xf]   ;;  %v1414_v52 = vsel %vm1027_vm0, %v1412_v40, %v1410_v39 }
  0x37   :  { %v1347_v23 = vld [vmem:[#allocation1 + $0x1c5] ss:$8 sm:$0xf0]   ;;  %v1423_v42 = vld [vmem:[#allocation1 + $0xc4] ss:$8 sm:$0xf0]  }
  0x38   :  { %1241 = vrot.lane.b32.xlu1 %v1240_v60, %s1914_s0  ;;  %1252 = vrot.lane.b32.xlu0 %v1251_v63, %s1914_s0  ;;  %v1349_v7 = vsel %vm1027_vm0, %v1347_v23, %v1345_v22  ;;  %v1025_v43 = vld [vmem:[#allocation1] ss:$8 sm:$0xf]   ;;  %v1432_v47 = vld [vmem:[#allocation1 + $0x1c4] ss:$8 sm:$0xf]   ;;  %v1425_v61 = vsel %vm1027_vm0, %v1423_v42, %v1421_v41 }
  0x39   :  { %v1026_v45 = vld [vmem:[#allocation1] ss:$8 sm:$0xf0]   ;;  %v1434_v48 = vld [vmem:[#allocation1 + $0x1c4] ss:$8 sm:$0xf0]  }
  0x3a   :  { %v1032_v46 = vld [vmem:[#allocation1 + $0x40] ss:$8 sm:$0xf]   ;;  %v1028_v49 = vsel %vm1027_vm0, %v1026_v45, %v1025_v43  ;;  %v1443_v56 = vld [vmem:[#allocation1 + $0x3] ss:$8 sm:$0xf]  }
  0x3b   :  { %v1034_v50 = vld [vmem:[#allocation1 + $0x40] ss:$8 sm:$0xf0]   ;;  %1030 = vst.msk [vmem:[#allocation0] sm:$0xff] %vm1029_vm1, %v1028_v49  }
  0x3c   :  { %1263 = vrot.lane.b32.xlu1 %v1262_v2, %s1914_s0  ;;  %1274 = vrot.lane.b32.xlu0 %v1273_v5, %s1915_s12  ;;  %v1059_v51 = vld [vmem:[#allocation1 + $0x100] ss:$8 sm:$0xf]   ;;  %v1036_v53 = vsel %vm1027_vm0, %v1034_v50, %v1032_v46  ;;  %v1445_v57 = vld [vmem:[#allocation1 + $0x3] ss:$8 sm:$0xf0]   ;;  %v1436_v5 = vsel %vm1027_vm0, %v1434_v48, %v1432_v47 }
  0x3d   :  { %v1061_v54 = vld [vmem:[#allocation1 + $0x100] ss:$8 sm:$0xf0]   ;;  %1039 = vst.msk [vmem:[#allocation0 + $0x8] sm:$0xff] %vm1029_vm1, %v1036_v53   ;;  %v1447_v13 = vsel %vm1027_vm0, %v1445_v57, %v1443_v56 }
  0x3e   :  { %v1068_v55 = vld [vmem:[#allocation1 + $0x140] ss:$8 sm:$0xf]   ;;  %v1063_v58 = vsel %vm1027_vm0, %v1061_v54, %v1059_v51  ;;  %v1453_v1 = vld [vmem:[#allocation1 + $0x103] ss:$8 sm:$0xf]  }
  0x3f   :  { %v1070_v59 = vld [vmem:[#allocation1 + $0x140] ss:$8 sm:$0xf0]   ;;  %1066 = vst.msk [vmem:[#allocation0 + $0x20] sm:$0xff] %vm1029_vm1, %v1063_v58  }
  0x40   :  { %1284 = vrot.lane.b32.xlu1 %v1283_v9, %s1915_s12  ;;  %1295 = vrot.lane.b32.xlu0 %v1294_v12, %s1915_s12  ;;  %v1041_v60 = vld [vmem:[#allocation1 + $0x80] ss:$8 sm:$0xf]   ;;  %v1072_v62 = vsel %vm1027_vm0, %v1070_v59, %v1068_v55  ;;  %v1455_v10 = vld [vmem:[#allocation1 + $0x103] ss:$8 sm:$0xf0]  }
  0x41   :  { %v1043_v63 = vld [vmem:[#allocation1 + $0x80] ss:$8 sm:$0xf0]   ;;  %1075 = vst.msk [vmem:[#allocation0 + $0x28] sm:$0xff] %vm1029_vm1, %v1072_v62   ;;  %v1457_v17 = vsel %vm1027_vm0, %v1455_v10, %v1453_v1 }
  0x42   :  { %v1077_v0 = vld [vmem:[#allocation1 + $0x180] ss:$8 sm:$0xf]   ;;  %v1045_v2 = vsel %vm1027_vm0, %v1043_v63, %v1041_v60  ;;  %v1466_v16 = vld [vmem:[#allocation1 + $0x43] ss:$8 sm:$0xf0]  }
  0x43   :  { %v1079_v3 = vld [vmem:[#allocation1 + $0x180] ss:$8 sm:$0xf0]   ;;  %1048 = vst.msk [vmem:[#allocation0 + $0x10] sm:$0xff] %vm1029_vm1, %v1045_v2  }
  0x44   :  { %1306 = vrot.lane.b32.xlu1 %v1305_v15, %s1915_s12  ;;  %1317 = vrot.lane.b32.xlu0 %v1316_v18, %s1915_s12  ;;  %v1050_v4 = vld [vmem:[#allocation1 + $0xc0] ss:$8 sm:$0xf]   ;;  %v1081_v6 = vsel %vm1027_vm0, %v1079_v3, %v1077_v0  ;;  %v1464_v15 = vld [vmem:[#allocation1 + $0x43] ss:$8 sm:$0xf]  }
  0x45   :  { %v1052_v8 = vld [vmem:[#allocation1 + $0xc0] ss:$8 sm:$0xf0]   ;;  %1084 = vst.msk [vmem:[#allocation0 + $0x30] sm:$0xff] %vm1029_vm1, %v1081_v6   ;;  %v1468_v20 = vsel %vm1027_vm0, %v1466_v16, %v1464_v15 }
  0x46   :  { %v1086_v9 = vld [vmem:[#allocation1 + $0x1c0] ss:$8 sm:$0xf]   ;;  %v1054_v11 = vsel %vm1027_vm0, %v1052_v8, %v1050_v4  ;;  %v1475_v18 = vld [vmem:[#allocation1 + $0x143] ss:$8 sm:$0xf]  }
  0x47   :  { %v1088_v12 = vld [vmem:[#allocation1 + $0x1c0] ss:$8 sm:$0xf0]   ;;  %1057 = vst.msk [vmem:[#allocation0 + $0x18] sm:$0xff] %vm1029_vm1, %v1054_v11  }
  0x48   :  { %1328 = vrot.lane.b32.xlu1 %v1327_v21, %s1915_s12  ;;  %1339 = vrot.lane.b32.xlu0 %v1338_v24, %s1915_s12  ;;  %v1090_v14 = vsel %vm1027_vm0, %v1088_v12, %v1086_v9  ;;  %v1477_v19 = vld [vmem:[#allocation1 + $0x143] ss:$8 sm:$0xf0]   ;;  %v1532_v33 = vld [vmem:[#allocation1 + $0x2] ss:$8 sm:$0xf0]  }
  0x49   :  { %1093 = vst.msk [vmem:[#allocation0 + $0x38] sm:$0xff] %vm1029_vm1, %v1090_v14   ;;  %v1486_v21 = vld [vmem:[#allocation1 + $0x83] ss:$8 sm:$0xf]   ;;  %v1479_v23 = vsel %vm1027_vm0, %v1477_v19, %v1475_v18 }
  0x4a   :  { %v1488_v22 = vld [vmem:[#allocation1 + $0x83] ss:$8 sm:$0xf0]   ;;  %v1542_v36 = vld [vmem:[#allocation1 + $0x102] ss:$8 sm:$0xf0]  }
  0x4b   :  { %v1497_v24 = vld [vmem:[#allocation1 + $0x183] ss:$8 sm:$0xf]   ;;  %v1490_v26 = vsel %vm1027_vm0, %v1488_v22, %v1486_v21  ;;  %v1553_v39 = vld [vmem:[#allocation1 + $0x42] ss:$8 sm:$0xf0]  }
  0x4c   :  { %1350 = vrot.lane.b32.xlu1 %v1349_v7, %s1915_s12  ;;  %1361 = vrot.lane.b32.xlu0 %v1360_v29, %s1916_s13  ;;  %v1499_v25 = vld [vmem:[#allocation1 + $0x183] ss:$8 sm:$0xf0]   ;;  %v1562_v41 = vld [vmem:[#allocation1 + $0x142] ss:$8 sm:$0xf]  }
  0x4d   :  { %v1508_v7 = vld [vmem:[#allocation1 + $0xc3] ss:$8 sm:$0xf]   ;;  %v1501_v28 = vsel %vm1027_vm0, %v1499_v25, %v1497_v24  ;;  %v1564_v42 = vld [vmem:[#allocation1 + $0x142] ss:$8 sm:$0xf0]  }
  0x4e   :  { %v1510_v27 = vld [vmem:[#allocation1 + $0xc3] ss:$8 sm:$0xf0]   ;;  %v1575_v45 = vld [vmem:[#allocation1 + $0x82] ss:$8 sm:$0xf0]   ;;  %v1566_v46 = vsel %vm1027_vm0, %v1564_v42, %v1562_v41 }
  0x4f   :  { %v1519_v29 = vld [vmem:[#allocation1 + $0x1c3] ss:$8 sm:$0xf]   ;;  %v1512_v31 = vsel %vm1027_vm0, %v1510_v27, %v1508_v7  ;;  %v1584_v47 = vld [vmem:[#allocation1 + $0x182] ss:$8 sm:$0xf]  }
  0x50   :  { %1371 = vrot.lane.b32.xlu1 %v1370_v32, %s1916_s13  ;;  %1382 = vrot.lane.b32.xlu0 %v1381_v35, %s1916_s13  ;;  %v1521_v30 = vld [vmem:[#allocation1 + $0x1c3] ss:$8 sm:$0xf0]   ;;  %v1530_v32 = vld [vmem:[#allocation1 + $0x2] ss:$8 sm:$0xf]  }
  0x51   :  { %v1523_v34 = vsel %vm1027_vm0, %v1521_v30, %v1519_v29  ;;  %v1540_v35 = vld [vmem:[#allocation1 + $0x102] ss:$8 sm:$0xf]   ;;  %v1534_v37 = vsel %vm1027_vm0, %v1532_v33, %v1530_v32  ;;  %v1617_v56 = vld [vmem:[#allocation1 + $0x1] ss:$8 sm:$0xf]  }
  0x52   :  { %v1544_v40 = vsel %vm1027_vm0, %v1542_v36, %v1540_v35  ;;  %v1586_v48 = vld [vmem:[#allocation1 + $0x182] ss:$8 sm:$0xf0]   ;;  %v1619_v57 = vld [vmem:[#allocation1 + $0x1] ss:$8 sm:$0xf0]  }
  0x53   :  { %v1595_v50 = vld [vmem:[#allocation1 + $0xc2] ss:$8 sm:$0xf]   ;;  %v1627_v59 = vld [vmem:[#allocation1 + $0x101] ss:$8 sm:$0xf]  }
  0x54   :  { %1393 = vrot.lane.b32.xlu1 %v1392_v38, %s1916_s13  ;;  %1404 = vrot.lane.b32.xlu0 %v1403_v44, %s1916_s13  ;;  %v1551_v38 = vld [vmem:[#allocation1 + $0x42] ss:$8 sm:$0xf]   ;;  %v1629_v60 = vld [vmem:[#allocation1 + $0x101] ss:$8 sm:$0xf0]  }
  0x55   :  { %v1555_v43 = vsel %vm1027_vm0, %v1553_v39, %v1551_v38  ;;  %v1573_v44 = vld [vmem:[#allocation1 + $0x82] ss:$8 sm:$0xf]   ;;  %v1638_v62 = vld [vmem:[#allocation1 + $0x41] ss:$8 sm:$0xf]   ;;  %v1631_v0 = vsel %vm1027_vm0, %v1629_v60, %v1627_v59 }
  0x56   :  { %v1577_v49 = vsel %vm1027_vm0, %v1575_v45, %v1573_v44  ;;  %v1597_v51 = vld [vmem:[#allocation1 + $0xc2] ss:$8 sm:$0xf0]   ;;  %v1640_v63 = vld [vmem:[#allocation1 + $0x41] ss:$8 sm:$0xf0]  }
  0x57   :  { %v1606_v53 = vld [vmem:[#allocation1 + $0x1c2] ss:$8 sm:$0xf]   ;;  %v1599_v55 = vsel %vm1027_vm0, %v1597_v51, %v1595_v50  ;;  %v1649_v1 = vld [vmem:[#allocation1 + $0x141] ss:$8 sm:$0xf]   ;;  %v1642_v3 = vsel %vm1027_vm0, %v1640_v63, %v1638_v62 }
  0x58   :  { %1415 = vrot.lane.b32.xlu1 %v1414_v52, %s1916_s13  ;;  %1426 = vrot.lane.b32.xlu0 %v1425_v61, %s1916_s13  ;;  %v1588_v52 = vsel %vm1027_vm0, %v1586_v48, %v1584_v47  ;;  %v1608_v54 = vld [vmem:[#allocation1 + $0x1c2] ss:$8 sm:$0xf0]   ;;  %v1621_v61 = vsel %vm1027_vm0, %v1619_v57, %v1617_v56  ;;  %v1651_v2 = vld [vmem:[#allocation1 + $0x141] ss:$8 sm:$0xf0]  }
  0x59   :  { %v1610_v58 = vsel %vm1027_vm0, %v1608_v54, %v1606_v53  ;;  %v1660_v4 = vld [vmem:[#allocation1 + $0x81] ss:$8 sm:$0xf]   ;;  %v1653_v6 = vsel %vm1027_vm0, %v1651_v2, %v1649_v1 }
  0x5a   :  { %v1671_v8 = vld [vmem:[#allocation1 + $0x181] ss:$8 sm:$0xf]  }
  0x5b   :  { %v1673_v9 = vld [vmem:[#allocation1 + $0x181] ss:$8 sm:$0xf0]  }
  0x5c   :  { %1437 = vrot.lane.b32.xlu1 %v1436_v5, %s1916_s13  ;;  %1448 = vrot.lane.b32.xlu0 %v1447_v13, %s1917_s14  ;;  %v1662_v5 = vld [vmem:[#allocation1 + $0x81] ss:$8 sm:$0xf0]   ;;  %v1675_v13 = vsel %vm1027_vm0, %v1673_v9, %v1671_v8  ;;  %v1920_v8 = vmov 0  }
  0x5d   :  { %v1664_v10 = vsel %vm1027_vm0, %v1662_v5, %v1660_v4  ;;  %v1682_v11 = vld [vmem:[#allocation1 + $0xc1] ss:$8 sm:$0xf]  }
  0x5e   :  { %v1684_v12 = vld [vmem:[#allocation1 + $0xc1] ss:$8 sm:$0xf0]  }
  0x5f   :  { %v1693_v14 = vld [vmem:[#allocation1 + $0x1c1] ss:$8 sm:$0xf]   ;;  %v1686_v16 = vsel %vm1027_vm0, %v1684_v12, %v1682_v11 }
  0x60   :  { %1458 = vrot.lane.b32.xlu1 %v1457_v17, %s1917_s14  ;;  %1469 = vrot.lane.b32.xlu0 %v1468_v20, %s1917_s14  ;;  %v1695_v15 = vld [vmem:[#allocation1 + $0x1c1] ss:$8 sm:$0xf0]  }
  0x61   :  { %v1697_v17 = vsel %vm1027_vm0, %v1695_v15, %v1693_v14 }
  0x64   :  { %1480 = vrot.lane.b32.xlu1 %v1479_v23, %s1917_s14  ;;  %1491 = vrot.lane.b32.xlu0 %v1490_v26, %s1917_s14 }
  0x68   :  { %1502 = vrot.lane.b32.xlu1 %v1501_v28, %s1917_s14  ;;  %1513 = vrot.lane.b32.xlu0 %v1512_v31, %s1917_s14 }
  0x6c   :  { %1524 = vrot.lane.b32.xlu1 %v1523_v34, %s1917_s14  ;;  %1535 = vrot.lane.b32.xlu0 %v1534_v37, %s1918_s15 }
  0x70   :  { %1545 = vrot.lane.b32.xlu1 %v1544_v40, %s1918_s15  ;;  %1556 = vrot.lane.b32.xlu0 %v1555_v43, %s1918_s15 }
  0x74   :  { %1567 = vrot.lane.b32.xlu1 %v1566_v46, %s1918_s15  ;;  %1578 = vrot.lane.b32.xlu0 %v1577_v49, %s1918_s15 }
  0x78   :  { %1589 = vrot.lane.b32.xlu1 %v1588_v52, %s1918_s15  ;;  %1600 = vrot.lane.b32.xlu0 %v1599_v55, %s1918_s15 }
  0x7c   :  { %1611 = vrot.lane.b32.xlu1 %v1610_v58, %s1918_s15  ;;  %1622 = vrot.lane.b32.xlu0 %v1621_v61, %s1919_s16 }
  0x80   :  { %1632 = vrot.lane.b32.xlu1 %v1631_v0, %s1919_s16  ;;  %1643 = vrot.lane.b32.xlu0 %v1642_v3, %s1919_s16 }
  0x82   :  { %v1101_v18 = vpop.permute.xlu0 %1100  }
  0x83   :  { %1103 = vst.msk [vmem:[#allocation0] sm:$0xff] %vm1102_vm2, %v1101_v18  }
  0x84   :  { %1654 = vrot.lane.b32.xlu1 %v1653_v6, %s1919_s16  ;;  %1665 = vrot.lane.b32.xlu0 %v1664_v10, %s1919_s16 }
  0x86   :  { %v1122_v19 = vpop.permute.xlu1 %1121  }
  0x87   :  { %1125 = vst.msk [vmem:[#allocation0 + $0x8] sm:$0xff] %vm1102_vm2, %v1122_v19  }
  0x88   :  { %1676 = vrot.lane.b32.xlu1 %v1675_v13, %s1919_s16  ;;  %1687 = vrot.lane.b32.xlu0 %v1686_v16, %s1919_s16 }
  0x8a   :  { %v1111_v20 = vpop.permute.xlu0 %1110  }
  0x8b   :  { %1114 = vst.msk [vmem:[#allocation0 + $0x20] sm:$0xff] %vm1102_vm2, %v1111_v20  }
  0x8c   :  { %1698 = vrot.lane.b32.xlu1 %v1697_v17, %s1919_s16 }
  0x8e   :  { %v1133_v21 = vpop.permute.xlu1 %1132  }
  0x8f   :  { %1136 = vst.msk [vmem:[#allocation0 + $0x28] sm:$0xff] %vm1102_vm2, %v1133_v21  }
  0x92   :  { %v1144_v22 = vpop.permute.xlu0 %1143  }
  0x93   :  { %1147 = vst.msk [vmem:[#allocation0 + $0x10] sm:$0xff] %vm1102_vm2, %v1144_v22  }
  0x96   :  { %v1155_v23 = vpop.permute.xlu1 %1154  }
  0x97   :  { %1158 = vst.msk [vmem:[#allocation0 + $0x30] sm:$0xff] %vm1102_vm2, %v1155_v23  }
  0x9a   :  { %v1166_v24 = vpop.permute.xlu0 %1165  }
  0x9b   :  { %1169 = vst.msk [vmem:[#allocation0 + $0x18] sm:$0xff] %vm1102_vm2, %v1166_v24  }
  0x9e   :  { %v1177_v25 = vpop.permute.xlu1 %1176   ;;  %v1188_v26 = vpop.permute.xlu0 %1187  }
  0x9f   :  { %1180 = vst.msk [vmem:[#allocation0 + $0x38] sm:$0xff] %vm1102_vm2, %v1177_v25  }
  0xa0   :  { %1190 = vst.msk [vmem:[#allocation0] sm:$0xff] %vm1189_vm3, %v1188_v26  }
  0xa2   :  { %v1198_v7 = vpop.permute.xlu1 %1197   ;;  %v1209_v27 = vpop.permute.xlu0 %1208  }
  0xa3   :  { %1201 = vst.msk [vmem:[#allocation0 + $0x20] sm:$0xff] %vm1189_vm3, %v1198_v7   ;;  %1212 = vst.msk [vmem:[#allocation0 + $0x8] sm:$0xff] %vm1189_vm3, %v1209_v27  }
  0xa6   :  { %v1220_v28 = vpop.permute.xlu1 %1219   ;;  %v1231_v29 = vpop.permute.xlu0 %1230  }
  0xa7   :  { %1223 = vst.msk [vmem:[#allocation0 + $0x28] sm:$0xff] %vm1189_vm3, %v1220_v28   ;;  %1234 = vst.msk [vmem:[#allocation0 + $0x10] sm:$0xff] %vm1189_vm3, %v1231_v29  }
  0xaa   :  { %v1242_v30 = vpop.permute.xlu1 %1241   ;;  %v1253_v31 = vpop.permute.xlu0 %1252  }
  0xab   :  { %1245 = vst.msk [vmem:[#allocation0 + $0x30] sm:$0xff] %vm1189_vm3, %v1242_v30   ;;  %1256 = vst.msk [vmem:[#allocation0 + $0x18] sm:$0xff] %vm1189_vm3, %v1253_v31  }
  0xae   :  { %v1264_v32 = vpop.permute.xlu1 %1263   ;;  %v1275_v33 = vpop.permute.xlu0 %1274  }
  0xaf   :  { %1267 = vst.msk [vmem:[#allocation0 + $0x38] sm:$0xff] %vm1189_vm3, %v1264_v32  }
  0xb0   :  { %1277 = vst.msk [vmem:[#allocation0] sm:$0xff] %vm1276_vm4, %v1275_v33  }
  0xb2   :  { %v1285_v34 = vpop.permute.xlu1 %1284   ;;  %v1296_v35 = vpop.permute.xlu0 %1295  }
  0xb3   :  { %1288 = vst.msk [vmem:[#allocation0 + $0x20] sm:$0xff] %vm1276_vm4, %v1285_v34   ;;  %1299 = vst.msk [vmem:[#allocation0 + $0x8] sm:$0xff] %vm1276_vm4, %v1296_v35  }
  0xb6   :  { %v1307_v36 = vpop.permute.xlu1 %1306   ;;  %v1318_v37 = vpop.permute.xlu0 %1317  }
  0xb7   :  { %1310 = vst.msk [vmem:[#allocation0 + $0x28] sm:$0xff] %vm1276_vm4, %v1307_v36   ;;  %1321 = vst.msk [vmem:[#allocation0 + $0x10] sm:$0xff] %vm1276_vm4, %v1318_v37  }
  0xba   :  { %v1329_v38 = vpop.permute.xlu1 %1328   ;;  %v1340_v39 = vpop.permute.xlu0 %1339  }
  0xbb   :  { %1332 = vst.msk [vmem:[#allocation0 + $0x30] sm:$0xff] %vm1276_vm4, %v1329_v38   ;;  %1343 = vst.msk [vmem:[#allocation0 + $0x18] sm:$0xff] %vm1276_vm4, %v1340_v39  }
  0xbe   :  { %v1351_v40 = vpop.permute.xlu1 %1350   ;;  %v1362_v41 = vpop.permute.xlu0 %1361  }
  0xbf   :  { %1354 = vst.msk [vmem:[#allocation0 + $0x38] sm:$0xff] %vm1276_vm4, %v1351_v40  }
  0xc0   :  { %1364 = vst.msk [vmem:[#allocation0] sm:$0xff] %vm1363_vm5, %v1362_v41  }
  0xc2   :  { %v1372_v42 = vpop.permute.xlu1 %1371   ;;  %v1383_v43 = vpop.permute.xlu0 %1382  }
  0xc3   :  { %1375 = vst.msk [vmem:[#allocation0 + $0x20] sm:$0xff] %vm1363_vm5, %v1372_v42   ;;  %1386 = vst.msk [vmem:[#allocation0 + $0x8] sm:$0xff] %vm1363_vm5, %v1383_v43  }
  0xc6   :  { %v1394_v44 = vpop.permute.xlu1 %1393   ;;  %v1405_v45 = vpop.permute.xlu0 %1404  }
  0xc7   :  { %1397 = vst.msk [vmem:[#allocation0 + $0x28] sm:$0xff] %vm1363_vm5, %v1394_v44   ;;  %1408 = vst.msk [vmem:[#allocation0 + $0x10] sm:$0xff] %vm1363_vm5, %v1405_v45  }
  0xca   :  { %v1416_v46 = vpop.permute.xlu1 %1415   ;;  %v1427_v47 = vpop.permute.xlu0 %1426  }
  0xcb   :  { %1419 = vst.msk [vmem:[#allocation0 + $0x30] sm:$0xff] %vm1363_vm5, %v1416_v46   ;;  %1430 = vst.msk [vmem:[#allocation0 + $0x18] sm:$0xff] %vm1363_vm5, %v1427_v47  }
  0xce   :  { %v1438_v48 = vpop.permute.xlu1 %1437   ;;  %v1449_v49 = vpop.permute.xlu0 %1448  }
  0xcf   :  { %1441 = vst.msk [vmem:[#allocation0 + $0x38] sm:$0xff] %vm1363_vm5, %v1438_v48  }
  0xd0   :  { %1451 = vst.msk [vmem:[#allocation0] sm:$0xff] %vm1450_vm6, %v1449_v49  }
  0xd2   :  { %v1459_v50 = vpop.permute.xlu1 %1458   ;;  %v1470_v51 = vpop.permute.xlu0 %1469  }
  0xd3   :  { %1462 = vst.msk [vmem:[#allocation0 + $0x20] sm:$0xff] %vm1450_vm6, %v1459_v50   ;;  %1473 = vst.msk [vmem:[#allocation0 + $0x8] sm:$0xff] %vm1450_vm6, %v1470_v51  }
  0xd6   :  { %v1481_v52 = vpop.permute.xlu1 %1480   ;;  %v1492_v53 = vpop.permute.xlu0 %1491  }
  0xd7   :  { %1484 = vst.msk [vmem:[#allocation0 + $0x28] sm:$0xff] %vm1450_vm6, %v1481_v52   ;;  %1495 = vst.msk [vmem:[#allocation0 + $0x10] sm:$0xff] %vm1450_vm6, %v1492_v53  }
  0xda   :  { %v1503_v54 = vpop.permute.xlu1 %1502   ;;  %v1514_v55 = vpop.permute.xlu0 %1513  }
  0xdb   :  { %1506 = vst.msk [vmem:[#allocation0 + $0x30] sm:$0xff] %vm1450_vm6, %v1503_v54   ;;  %1517 = vst.msk [vmem:[#allocation0 + $0x18] sm:$0xff] %vm1450_vm6, %v1514_v55  }
  0xde   :  { %v1525_v56 = vpop.permute.xlu1 %1524   ;;  %v1536_v57 = vpop.permute.xlu0 %1535  }
  0xdf   :  { %1528 = vst.msk [vmem:[#allocation0 + $0x38] sm:$0xff] %vm1450_vm6, %v1525_v56  }
  0xe0   :  { %1538 = vst.msk [vmem:[#allocation0] sm:$0xff] %vm1537_vm7, %v1536_v57  }
  0xe2   :  { %v1546_v58 = vpop.permute.xlu1 %1545   ;;  %v1557_v59 = vpop.permute.xlu0 %1556  }
  0xe3   :  { %1549 = vst.msk [vmem:[#allocation0 + $0x20] sm:$0xff] %vm1537_vm7, %v1546_v58   ;;  %1560 = vst.msk [vmem:[#allocation0 + $0x8] sm:$0xff] %vm1537_vm7, %v1557_v59  }
  0xe6   :  { %v1568_v60 = vpop.permute.xlu1 %1567   ;;  %v1579_v61 = vpop.permute.xlu0 %1578  }
  0xe7   :  { %1571 = vst.msk [vmem:[#allocation0 + $0x28] sm:$0xff] %vm1537_vm7, %v1568_v60   ;;  %1582 = vst.msk [vmem:[#allocation0 + $0x10] sm:$0xff] %vm1537_vm7, %v1579_v61  }
  0xea   :  { %v1590_v62 = vpop.permute.xlu1 %1589   ;;  %v1601_v63 = vpop.permute.xlu0 %1600  }
  0xeb   :  { %1593 = vst.msk [vmem:[#allocation0 + $0x30] sm:$0xff] %vm1537_vm7, %v1590_v62   ;;  %1604 = vst.msk [vmem:[#allocation0 + $0x18] sm:$0xff] %vm1537_vm7, %v1601_v63  }
  0xee   :  { %v1612_v0 = vpop.permute.xlu1 %1611   ;;  %v1623_v1 = vpop.permute.xlu0 %1622  }
  0xef   :  { %1615 = vst.msk [vmem:[#allocation0 + $0x38] sm:$0xff] %vm1537_vm7, %v1612_v0  }
  0xf0   :  { %1625 = vst.msk [vmem:[#allocation0] sm:$0xff] %vm1624_vm8, %v1623_v1  }
  0xf2   :  { %v1633_v2 = vpop.permute.xlu1 %1632   ;;  %v1644_v3 = vpop.permute.xlu0 %1643  }
  0xf3   :  { %1636 = vst.msk [vmem:[#allocation0 + $0x20] sm:$0xff] %vm1624_vm8, %v1633_v2   ;;  %1647 = vst.msk [vmem:[#allocation0 + $0x8] sm:$0xff] %vm1624_vm8, %v1644_v3  }
  0xf6   :  { %v1655_v4 = vpop.permute.xlu1 %1654   ;;  %v1666_v6 = vpop.permute.xlu0 %1665  }
  0xf7   :  { %1658 = vst.msk [vmem:[#allocation0 + $0x28] sm:$0xff] %vm1624_vm8, %v1655_v4   ;;  %v1707_v5 = vld [vmem:[#allocation0] sm:$0xff]  ;;  %1669 = vst.msk [vmem:[#allocation0 + $0x10] sm:$0xff] %vm1624_vm8, %v1666_v6  }
  0xf8   :  { %v1709_v9 = vpack.c.b16 %v1920_v8, %v1707_v5 }
  0xfa   :  { %v1736_v10 = vld [vmem:[#allocation0 + $0x20] sm:$0xff]  ;;  %v1677_v11 = vpop.permute.xlu1 %1676   ;;  %v1710_v12 = vpack.c.b8 %v1920_v8, %v1709_v9  ;;  %v1713_v14 = vld [vmem:[#allocation0 + $0x8] sm:$0xff]  ;;  %v1688_v15 = vpop.permute.xlu0 %1687  }
  0xfb   :  { %v1740_v13 = vpack.c.b16 %v1920_v8, %v1736_v10  ;;  %1680 = vst.msk [vmem:[#allocation0 + $0x30] sm:$0xff] %vm1624_vm8, %v1677_v11   ;;  %v1716_v17 = vpack.c.b16 %v1920_v8, %v1713_v14  ;;  %1691 = vst.msk [vmem:[#allocation0 + $0x18] sm:$0xff] %vm1624_vm8, %v1688_v15  }
  0xfc   :  { %1711 = vst [vmem:[%s2197_s1] sm:$0x3] %v1710_v12 }
  0xfd   :  { %v1741_v16 = vpack.c.b8 %v1920_v8, %v1740_v13  ;;  %v1717_v20 = vpack.c.b8 %v1920_v8, %v1716_v17 }
  0xfe   :  { %v1744_v18 = vld [vmem:[#allocation0 + $0x28] sm:$0xff]  ;;  %v1699_v19 = vpop.permute.xlu1 %1698   ;;  %v1720_v22 = vld [vmem:[#allocation0 + $0x10] sm:$0xff] }
  0xff   :  { %1901 = vst [vmem:[%s2197_s1 + $0x8] sm:$0x3] %v1741_v16  ;;  %v1748_v21 = vpack.c.b16 %v1920_v8, %v1744_v18  ;;  %1702 = vst.msk [vmem:[#allocation0 + $0x38] sm:$0xff] %vm1624_vm8, %v1699_v19   ;;  %v1724_v24 = vpack.c.b16 %v1920_v8, %v1720_v22 }
 0x100   :  { %1898 = vst [vmem:[%s2197_s1 + $0x2] sm:$0x3] %v1717_v20 }
 0x101   :  { %v1749_v23 = vpack.c.b8 %v1920_v8, %v1748_v21  ;;  %v1725_v26 = vpack.c.b8 %v1920_v8, %v1724_v24 }
 0x102   :  { %v1752_v25 = vld [vmem:[#allocation0 + $0x30] sm:$0xff]  ;;  %v1728_v27 = vld [vmem:[#allocation0 + $0x18] sm:$0xff] }
 0x103   :  { %1902 = vst [vmem:[%s2197_s1 + $0xa] sm:$0x3] %v1749_v23  ;;  %v1756_v7 = vpack.c.b16 %v1920_v8, %v1752_v25  ;;  %1899 = vst [vmem:[%s2197_s1 + $0x4] sm:$0x3] %v1725_v26  ;;  %v1732_v29 = vpack.c.b16 %v1920_v8, %v1728_v27 }
 0x105   :  { %v1757_v28 = vpack.c.b8 %v1920_v8, %v1756_v7  ;;  %v1733_v31 = vpack.c.b8 %v1920_v8, %v1732_v29 }
 0x106   :  { %v1760_v30 = vld [vmem:[#allocation0 + $0x38] sm:$0xff] }
 0x107   :  { %1903 = vst [vmem:[%s2197_s1 + $0xc] sm:$0x3] %v1757_v28  ;;  %v1764_v32 = vpack.c.b16 %v1920_v8, %v1760_v30  ;;  %1900 = vst [vmem:[%s2197_s1 + $0x6] sm:$0x3] %v1733_v31 }
 0x109   :  { %v1765_v33 = vpack.c.b8 %v1920_v8, %v1764_v32 }
 0x10b   :  { %1904 = vst [vmem:[%s2197_s1 + $0xe] sm:$0x3] %v1765_v33 }

// kernel: nl2sql_forward.1
= control target key start
LH: loop header
LB: loop body
LE: loop exit
PB: predicated region body
PF: predicated region fallthrough
CT: control target
= control target key end

     0   :  { %vm67_vm0 = vcmask 261120   ;;  %v6697_v11 = vmov 0.0|0.0   ;;  %vm6698_vm1 = vmmov 0   ;;  %v6699_v21 = vmov 0.0   ;;  %s6700_s26 = smov 64   ;;  %s6701_s27 = smov 32   ;;  %s7986_s3 = inlined_call_operand.vmem [shape: f32[32,1024], index: 3, kind: input, shape index: {}]   ;;  %s7987_s0 = inlined_call_operand.vmem [shape: f32[8,8,32], index: 0, kind: input, shape index: {}]   ;;  %s7988_s4 = inlined_call_operand.vmem [shape: f32[8,128], index: 4, kind: input, shape index: {}]   ;;  %s7989_s1 = inlined_call_operand.vmem [shape: f32[8,8,32], index: 1, kind: input, shape index: {}]   ;;  %s7990_s2 = inlined_call_operand.vmem [shape: f32[64,64], index: 2, kind: input, shape index: {}]   ;;  %s7991_s5 = inlined_call_operand.vmem [shape: f32[64,128], index: 5, kind: output, shape index: {}]  }
   0x1   :  { %v20_v0 = vld [vmem:[%s7986_s3] sm:$0xff]  ;;  %v24_v7 = vld [vmem:[%s7986_s3 + $0x8] sm:$0xff]  ;;  %v57_v12 = vld [vmem:[%s7987_s0 + $0x10] sm:$0xff]  ;;  %vm2313_vm2 = vcmask 64512   ;;  %vm2467_vm4 = vcmask 523264   ;;  %s6702_s14 = smov 96  }
   0x2   :  { %v21_v1 = vld [vmem:[%s7986_s3 + $0x40] sm:$0xff]  ;;  %v25_v8 = vld [vmem:[%s7986_s3 + $0x48] sm:$0xff]  ;;  %v58_v15 = vld [vmem:[%s7987_s0 + $0x18] sm:$0xff]  ;;  %s6703_s19 = smov 120   ;;  %s6704_s20 = smov 112  }
   0x3   :  { %v22_v2 = vld [vmem:[%s7986_s3 + $0x80] sm:$0xff]  ;;  %v5927_v3 = vpack.c.bf16 %v21_v1, %v20_v0  ;;  %v56_v9 = vld [vmem:[%s7987_s0 + $0x8] sm:$0xff]  ;;  %v6764_v10 = vpack.c.bf16 %v25_v8, %v24_v7  ;;  %v61_v19 = vld [vmem:[%s7987_s0 + $0x30] sm:$0xff]  ;;  %s6705_s21 = smov 88   ;;  %s6706_s22 = smov 104  }
   0x4   :  { %v23_v4 = vld [vmem:[%s7986_s3 + $0xc0] sm:$0xff]  ;;  %v26_v13 = vld [vmem:[%s7986_s3 + $0x88] sm:$0xff]  ;;  %v62_v20 = vld [vmem:[%s7987_s0 + $0x38] sm:$0xff]  ;;  %s6707_s23 = smov 80  }
   0x5   :  { %v55_v5 = vld [vmem:[%s7987_s0] sm:$0xff]  ;;  %v5931_v6 = vpack.c.bf16 %v23_v4, %v22_v2  ;;  %5928 = vmatprep.subr.bf16.mxu0 %v5927_v3  ;;  %v27_v14 = vld [vmem:[%s7986_s3 + $0xc8] sm:$0xff]  ;;  %v28_v52 = vld [vmem:[%s7986_s3 + $0x10] sm:$0xff] }
   0x6   :  { %5359 = vmatprep.mubr.msk.f32.mxu0 %vm67_vm0, %v55_v5  ;;  %5930 = vmatpush3.bf16.msra.mxu0 %v5927_v3  ;;  %v6782_v16 = vpack.c.bf16 %v27_v14, %v26_v13  ;;  %v59_v17 = vld [vmem:[%s7987_s0 + $0x20] sm:$0xff]  ;;  %v60_v18 = vld [vmem:[%s7987_s0 + $0x28] sm:$0xff]  ;;  %v29_v53 = vld [vmem:[%s7986_s3 + $0x50] sm:$0xff] }
   0x7   :  { %5932 = vmatprep.subr.bf16.mxu0 %v5931_v6  ;;  %v4825_v22 = vld [vmem:[%s7988_s4] ss:$0 sm:$0xff]  ;;  %v30_v54 = vld [vmem:[%s7986_s3 + $0x90] sm:$0xff]  ;;  %v5935_v55 = vpack.c.bf16 %v29_v53, %v28_v52  ;;  %v206_v59 = vld [vmem:[%s7989_s1 + $0x8] sm:$0xff] }
   0x8   :  { %v31_v56 = vld [vmem:[%s7986_s3 + $0xd0] sm:$0xff]  ;;  %v205_v57 = vld [vmem:[%s7989_s1] sm:$0xff]  ;;  %v208_v62 = vld [vmem:[%s7989_s1 + $0x18] sm:$0xff] }
   0x9   :  { %v5939_v58 = vpack.c.bf16 %v31_v56, %v30_v54  ;;  %5379 = vmatprep.mubr.msk.f32.mxu1 %vm67_vm0, %v205_v57  ;;  %5936 = vmatprep.subr.bf16.mxu1 %v5935_v55  ;;  %v207_v60 = vld [vmem:[%s7989_s1 + $0x10] sm:$0xff]  ;;  %v209_v63 = vld [vmem:[%s7989_s1 + $0x20] sm:$0xff]  ;;  %v210_v0 = vld [vmem:[%s7989_s1 + $0x28] sm:$0xff] }
   0xa   :  { %5934 = vmatpush3.bf16.msra.mxu0 %v5931_v6  ;;  %5938 = vmatpush3.bf16.msra.mxu1 %v5935_v55  ;;  %v211_v1 = vld [vmem:[%s7989_s1 + $0x30] sm:$0xff]  ;;  %v212_v2 = vld [vmem:[%s7989_s1 + $0x38] sm:$0xff]  ;;  %v6891_v5 = vld [vmem:[%s7988_s4 + $0x1] ss:$0 sm:$0xff] }
   0xb   :  { %5943 = vmatprep.subr.bf16.mxu0 %v6697_v11  ;;  %5940 = vmatprep.subr.bf16.mxu1 %v5939_v58  ;;  %vm7129_vm3 = vmpackc.low %vm2313_vm2, %vm2313_vm2 }
   0xd   :  { %5360 = vmatmul.mubr.msk.f32.vlgmr.msra.gmra.mrb[0].mxu0 %vm67_vm0, %v56_v9 }
   0xe   :  { %5945 = vmatpush3.bf16.msra.mxu0 %v6764_v10  ;;  %5362 = vmatprep.mubr.msk.f32.mxu0 %vm67_vm0, %v57_v12 }
   0xf   :  { %5946 = vmatprep.subr.bf16.mxu0 %v6697_v11  ;;  %5942 = vmatpush3.bf16.msra.mxu1 %v5939_v58 }
  0x10   :  { %5949 = vmatprep.subr.bf16.mxu1 %v6697_v11 }
  0x11   :  { %5363 = vmatmul.mubr.msk.f32.gmra.mrb[2].mxu0 %vm67_vm0, %v58_v15 }
  0x12   :  { %5365 = vmatprep.mubr.msk.f32.mxu0 %vm67_vm0, %v59_v17  ;;  %5948 = vmatpush3.bf16.msra.mxu0 %v6782_v16 }
  0x13   :  { %5955 = vmatprep.subr.bf16.mxu0 %v6697_v11  ;;  %5380 = vmatmul.mubr.msk.f32.vlgmr.msra.gmra.mrb[0].mxu1 %vm67_vm0, %v206_v59 }
  0x14   :  { %5951 = vmatpush3.bf16.msra.mxu1 %v6764_v10  ;;  %5382 = vmatprep.mubr.msk.f32.mxu1 %vm67_vm0, %v207_v60 }
  0x15   :  { %5366 = vmatmul.mubr.msk.f32.gmra.mrb[4].mxu0 %vm67_vm0, %v60_v18  ;;  %5952 = vmatprep.subr.bf16.mxu1 %v6697_v11 }
  0x16   :  { %5368 = vmatprep.mubr.msk.f32.mxu0 %vm67_vm0, %v61_v19 }
  0x17   :  { %5383 = vmatmul.mubr.msk.f32.gmra.mrb[2].mxu1 %vm67_vm0, %v208_v62 }
  0x18   :  { %5385 = vmatprep.mubr.msk.f32.mxu1 %vm67_vm0, %v209_v63  ;;  %5954 = vmatpush3.bf16.msra.mxu1 %v6782_v16 }
  0x19   :  { %5369 = vmatmul.mubr.msk.f32.gmra.mrb[6].mxu0 %vm67_vm0, %v62_v20  ;;  %5961 = vmatprep.subr.bf16.mxu1 %v6697_v11 }
  0x1a   :  { %5399 = vmatprep.mubr.msk.f32.mxu0 %vm6698_vm1, %v6699_v21 }
  0x1b   :  { %5386 = vmatmul.mubr.msk.f32.gmra.mrb[4].mxu1 %vm67_vm0, %v210_v0 }
  0x1c   :  { %5388 = vmatprep.mubr.msk.f32.mxu1 %vm67_vm0, %v211_v1 }
  0x1d   :  { %5400 = vmatmul.mubr.f32.vlgmr.msra.gmra.mrb[8].mxu0 %v6699_v21 }
  0x1e   :  { %5957 = vmatpush3.bf16.msra.mxu0 %v6764_v10  ;;  %5421 = vmatprep.mubr.msk.f32.mxu0 %vm6698_vm1, %v6699_v21 }
  0x1f   :  { %5958 = vmatprep.subr.bf16.mxu0 %v6697_v11  ;;  %5389 = vmatmul.mubr.msk.f32.gmra.mrb[6].mxu1 %vm67_vm0, %v212_v2 }
  0x20   :  { %5410 = vmatprep.mubr.msk.f32.mxu1 %vm6698_vm1, %v6699_v21 }
  0x22   :  { %5960 = vmatpush3.bf16.msra.mxu0 %v6782_v16 }
  0x23   :  { %5967 = vmatprep.subr.bf16.mxu0 %v6697_v11 }
  0xe0   :  { %v5361_v23 = vpop.f32.mrb[0].mxu0 }
  0xe1   :  { %v6816_v24 = vadd.f32 %v5361_v23, %v4825_v22  ;;  %v158_v25 = vpop.f32.mrb[1].mxu0 }
  0xe2   :  { %v159_v38 = vadd.f32 %v4825_v22, %v158_v25 }
  0xe4   :  { %v5364_v26 = vpop.f32.mrb[2].mxu0 }
  0xe5   :  { %v6818_v27 = vadd.f32 %v5364_v26, %v4825_v22  ;;  %v168_v28 = vpop.f32.mrb[3].mxu0 }
  0xe6   :  { %v6820_v29 = vadd.f32 %v4825_v22, %v168_v28  ;;  %v5381_v6 = vpop.f32.mrb[0].mxu1 }
  0xe7   :  { %v6894_v7 = vadd.f32 %v5381_v6, %v6891_v5  ;;  %v6896_v8 = vpop.f32.mrb[1].mxu1 }
  0xe8   :  { %v5367_v30 = vpop.f32.mrb[4].mxu0 }
  0xe9   :  { %v6822_v31 = vadd.f32 %v5367_v30, %v4825_v22  ;;  %v178_v32 = vpop.f32.mrb[5].mxu0 }
  0xea   :  { %v6824_v33 = vadd.f32 %v4825_v22, %v178_v32  ;;  %v5384_v9 = vpop.f32.mrb[2].mxu1 }
  0xeb   :  { %v6899_v12 = vadd.f32 %v5384_v9, %v6891_v5  ;;  %v317_v13 = vpop.f32.mrb[3].mxu1 }
  0xec   :  { %v5370_v34 = vpop.f32.mrb[6].mxu0  ;;  %v6902_v14 = vadd.f32 %v6891_v5, %v317_v13 }
  0xed   :  { %v6826_v35 = vadd.f32 %v5370_v34, %v4825_v22  ;;  %v188_v36 = vpop.f32.mrb[7].mxu0 }
  0xee   :  { %v6828_v37 = vadd.f32 %v4825_v22, %v188_v36  ;;  %v5387_v15 = vpop.f32.mrb[4].mxu1 }
  0xef   :  { %v6905_v17 = vadd.f32 %v5387_v15, %v6891_v5  ;;  %v327_v18 = vpop.f32.mrb[5].mxu1 }
  0xf0   :  { %v424_v39 = vpop.f32.mrb[8].mxu0  ;;  %v6908_v19 = vadd.f32 %v6891_v5, %v327_v18 }
  0xf1   :  { %v428_v40 = vadd.f32 %v424_v39, %v159_v38  ;;  %v5401_v41 = vpop.f32.mrb[9].mxu0 }
  0xf2   :  { %v5390_v20 = vpop.f32.mrb[6].mxu1 }
  0xf3   :  { %6417 = vtanh.f32 %v428_v40  ;;  %v4843_v43 = vmul.f32 -1.442695, %v428_v40  ;;  %v6911_v22 = vadd.f32 %v5390_v20, %v6891_v5  ;;  %v337_v23 = vpop.f32.mrb[7].mxu1 }
  0xf4   :  { %v6914_v25 = vadd.f32 %v6891_v5, %v337_v23 }
  0xf5   :  { %6419 = vpow2.f32 %v4843_v43 }
  0xfd   :  { %v6418_v42 = vpop.eup %6417 }
  0xfe   :  { %438 = vrot.lane.b32.xlu0 %v6418_v42, %s6700_s26 }
  0xff   :  { %v6420_v44 = vpop.eup %6419 }
 0x100   :  { %v432_v45 = vadd.f32 1.0, %v6420_v44 }
 0x102   :  { %6421 = vrcp.f32 %v432_v45 }
 0x10c   :  { %v6422_v46 = vpop.eup %6421 }
 0x10d   :  { %v436_v49 = vmul.f32 0.0, %v6422_v46 }
 0x170   :  { %v439_v47 = vpop.permute.xlu0 %438 }
 0x171   :  { %v441_v48 = vmul.f32 %v6422_v46, %v439_v47 }
 0x173   :  { %443 = vrot.lane.b32.xlu0 %v441_v48, %s6701_s27 }
 0x1e5   :  { %v444_v50 = vpop.permute.xlu0 %443 }
 0x1e6   :  { %v6832_v51 = vadd.f32 %v444_v50, %v436_v49 }
 0x1e8   :  { %6423 = vtanh.f32 %v6832_v51 }
 0x1f2   :  { %v6424_v61 = vpop.eup %6423 }
 0x1f3   :  { %449 = vrot.lane.b32.xlu1 %v6424_v61, %s6700_s26 }
 0x265   :  { %v450_v3 = vpop.permute.xlu1 %449 }
 0x266   :  { %v452_v4 = vmul.f32 %v6422_v46, %v450_v3 }
 0x268   :  { %454 = vrot.lane.b32.xlu1 %v452_v4, %s6701_s27 }
 0x2da   :  { %v455_v26 = vpop.permute.xlu1 %454 }
 0x2db   :  { %457 = vst.msk [vmem:[#allocation4] sm:$0xff] %vm67_vm0, %v455_v26  ;;  %5411 = vmatmul.mubr.msk.f32.vlgmr.msra.gmra.mrb[8].mxu1 %vm67_vm0, %v455_v26 }
 0x2dc   :  { %5963 = vmatpush3.bf16.msra.mxu1 %v6764_v10  ;;  %5432 = vmatprep.mubr.msk.f32.mxu1 %vm6698_vm1, %v6699_v21 }
 0x2dd   :  { %5964 = vmatprep.subr.bf16.mxu1 %v6697_v11 }
 0x2e0   :  { %5966 = vmatpush3.bf16.msra.mxu1 %v6782_v16 }
 0x2e1   :  { %5973 = vmatprep.subr.bf16.mxu1 %v6697_v11 }
 0x3ae   :  { %v528_v28 = vpop.f32.mrb[8].mxu1 }
 0x3af   :  { %v532_v30 = vadd.f32 %v528_v28, %v6816_v24  ;;  %v5412_v32 = vpop.f32.mrb[9].mxu1 }
 0x3b1   :  { %6425 = vtanh.f32 %v532_v30  ;;  %v4845_v36 = vmul.f32 -1.442695, %v532_v30 }
 0x3b3   :  { %6427 = vpow2.f32 %v4845_v36 }
 0x3bb   :  { %v6426_v34 = vpop.eup %6425 }
 0x3bc   :  { %542 = vrot.lane.b32.xlu0 %v6426_v34, %s6700_s26 }
 0x3bd   :  { %v6428_v38 = vpop.eup %6427 }
 0x3be   :  { %v536_v39 = vadd.f32 1.0, %v6428_v38 }
 0x3c0   :  { %6429 = vrcp.f32 %v536_v39 }
 0x3ca   :  { %v6430_v40 = vpop.eup %6429 }
 0x3cb   :  { %v540_v43 = vmul.f32 %v6430_v40, %v6832_v51 }
 0x42e   :  { %v543_v41 = vpop.permute.xlu0 %542 }
 0x42f   :  { %v545_v42 = vmul.f32 %v6430_v40, %v543_v41 }
 0x431   :  { %547 = vrot.lane.b32.xlu1 %v545_v42, %s6701_s27 }
 0x4a3   :  { %v548_v44 = vpop.permute.xlu1 %547 }
 0x4a4   :  { %v550_v45 = vadd.f32 %v548_v44, %v540_v43 }
 0x4a6   :  { %6431 = vtanh.f32 %v550_v45 }
 0x4b0   :  { %v6432_v24 = vpop.eup %6431 }
 0x4b1   :  { %553 = vrot.lane.b32.xlu0 %v6432_v24, %s6700_s26 }
 0x523   :  { %v554_v46 = vpop.permute.xlu0 %553 }
 0x524   :  { %v556_v47 = vmul.f32 %v6430_v40, %v554_v46 }
 0x526   :  { %558 = vrot.lane.b32.xlu1 %v556_v47, %s6701_s27 }
 0x598   :  { %v559_v48 = vpop.permute.xlu1 %558 }
 0x599   :  { %562 = vst.msk [vmem:[#allocation4 + $0x8] sm:$0xff] %vm67_vm0, %v559_v48  ;;  %5422 = vmatmul.mubr.msk.f32.vlgmr.msra.gmra.mrb[10].mxu0 %vm67_vm0, %v559_v48 }
 0x59a   :  { %5969 = vmatpush3.bf16.msra.mxu0 %v6764_v10  ;;  %5443 = vmatprep.mubr.msk.f32.mxu0 %vm6698_vm1, %v6699_v21 }
 0x59b   :  { %5970 = vmatprep.subr.bf16.mxu0 %v6697_v11 }
 0x59e   :  { %5972 = vmatpush3.bf16.msra.mxu0 %v6782_v16 }
 0x59f   :  { %5979 = vmatprep.subr.bf16.mxu0 %v6697_v11 }
 0x66c   :  { %v633_v49 = vpop.f32.mrb[10].mxu0 }
 0x66d   :  { %v637_v50 = vadd.f32 %v633_v49, %v6820_v29  ;;  %v5423_v51 = vpop.f32.mrb[11].mxu0 }
 0x66f   :  { %6433 = vtanh.f32 %v637_v50  ;;  %v4847_v53 = vmul.f32 -1.442695, %v637_v50 }
 0x671   :  { %6435 = vpow2.f32 %v4847_v53 }
 0x679   :  { %v6434_v52 = vpop.eup %6433 }
 0x67a   :  { %647 = vrot.lane.b32.xlu0 %v6434_v52, %s6700_s26 }
 0x67b   :  { %v6436_v54 = vpop.eup %6435 }
 0x67c   :  { %v641_v55 = vadd.f32 1.0, %v6436_v54 }
 0x67e   :  { %6437 = vrcp.f32 %v641_v55 }
 0x688   :  { %v6438_v56 = vpop.eup %6437 }
 0x689   :  { %v645_v59 = vmul.f32 %v6438_v56, %v550_v45 }
 0x6ec   :  { %v648_v57 = vpop.permute.xlu0 %647 }
 0x6ed   :  { %v650_v58 = vmul.f32 %v6438_v56, %v648_v57 }
 0x6ef   :  { %652 = vrot.lane.b32.xlu1 %v650_v58, %s6701_s27 }
 0x761   :  { %v653_v60 = vpop.permute.xlu1 %652 }
 0x762   :  { %v655_v61 = vadd.f32 %v653_v60, %v645_v59 }
 0x764   :  { %6439 = vtanh.f32 %v655_v61 }
 0x76e   :  { %v6440_v29 = vpop.eup %6439 }
 0x76f   :  { %658 = vrot.lane.b32.xlu0 %v6440_v29, %s6700_s26 }
 0x7e1   :  { %v659_v62 = vpop.permute.xlu0 %658 }
 0x7e2   :  { %v661_v63 = vmul.f32 %v6438_v56, %v659_v62 }
 0x7e4   :  { %663 = vrot.lane.b32.xlu1 %v661_v63, %s6701_s27 }
 0x856   :  { %v664_v0 = vpop.permute.xlu1 %663 }
 0x857   :  { %667 = vst.msk [vmem:[#allocation4 + $0x10] sm:$0xff] %vm67_vm0, %v664_v0  ;;  %5433 = vmatmul.mubr.msk.f32.vlgmr.msra.gmra.mrb[10].mxu1 %vm67_vm0, %v664_v0 }
 0x858   :  { %5975 = vmatpush3.bf16.msra.mxu1 %v6764_v10  ;;  %5454 = vmatprep.mubr.msk.f32.mxu1 %vm6698_vm1, %v6699_v21 }
 0x859   :  { %5976 = vmatprep.subr.bf16.mxu1 %v6697_v11 }
 0x85c   :  { %5978 = vmatpush3.bf16.msra.mxu1 %v6782_v16 }
 0x85d   :  { %5985 = vmatprep.subr.bf16.mxu1 %v6697_v11 }
 0x92a   :  { %v738_v1 = vpop.f32.mrb[10].mxu1 }
 0x92b   :  { %v742_v2 = vadd.f32 %v738_v1, %v6818_v27  ;;  %v5434_v3 = vpop.f32.mrb[11].mxu1 }
 0x92d   :  { %6441 = vtanh.f32 %v742_v2  ;;  %v4849_v6 = vmul.f32 -1.442695, %v742_v2 }
 0x92f   :  { %6443 = vpow2.f32 %v4849_v6 }
 0x937   :  { %v6442_v4 = vpop.eup %6441 }
 0x938   :  { %752 = vrot.lane.b32.xlu0 %v6442_v4, %s6700_s26 }
 0x939   :  { %v6444_v9 = vpop.eup %6443 }
 0x93a   :  { %v746_v13 = vadd.f32 1.0, %v6444_v9 }
 0x93c   :  { %6445 = vrcp.f32 %v746_v13 }
 0x946   :  { %v6446_v15 = vpop.eup %6445 }
 0x947   :  { %v750_v23 = vmul.f32 %v6446_v15, %v655_v61 }
 0x9aa   :  { %v753_v18 = vpop.permute.xlu0 %752 }
 0x9ab   :  { %v755_v20 = vmul.f32 %v6446_v15, %v753_v18 }
 0x9ad   :  { %757 = vrot.lane.b32.xlu1 %v755_v20, %s6701_s27 }
 0xa1f   :  { %v758_v26 = vpop.permute.xlu1 %757 }
 0xa20   :  { %v760_v28 = vadd.f32 %v758_v26, %v750_v23 }
 0xa22   :  { %6447 = vtanh.f32 %v760_v28 }
 0xa2c   :  { %v6448_v27 = vpop.eup %6447 }
 0xa2d   :  { %763 = vrot.lane.b32.xlu0 %v6448_v27, %s6700_s26 }
 0xa9f   :  { %v764_v30 = vpop.permute.xlu0 %763 }
 0xaa0   :  { %v766_v32 = vmul.f32 %v6446_v15, %v764_v30 }
 0xaa2   :  { %768 = vrot.lane.b32.xlu1 %v766_v32, %s6701_s27 }
 0xb14   :  { %v769_v34 = vpop.permute.xlu1 %768 }
 0xb15   :  { %772 = vst.msk [vmem:[#allocation4 + $0x18] sm:$0xff] %vm67_vm0, %v769_v34  ;;  %5444 = vmatmul.mubr.msk.f32.vlgmr.msra.gmra.mrb[12].mxu0 %vm67_vm0, %v769_v34 }
 0xb16   :  { %5981 = vmatpush3.bf16.msra.mxu0 %v6764_v10  ;;  %5465 = vmatprep.mubr.msk.f32.mxu0 %vm6698_vm1, %v6699_v21 }
 0xb17   :  { %5982 = vmatprep.subr.bf16.mxu0 %v6697_v11 }
 0xb1a   :  { %5984 = vmatpush3.bf16.msra.mxu0 %v6782_v16 }
 0xb1b   :  { %5991 = vmatprep.subr.bf16.mxu0 %v6697_v11 }
 0xbe8   :  { %v843_v36 = vpop.f32.mrb[12].mxu0 }
 0xbe9   :  { %v847_v38 = vadd.f32 %v843_v36, %v6824_v33  ;;  %v5445_v39 = vpop.f32.mrb[13].mxu0 }
 0xbeb   :  { %6449 = vtanh.f32 %v847_v38  ;;  %v4851_v41 = vmul.f32 -1.442695, %v847_v38 }
 0xbed   :  { %6451 = vpow2.f32 %v4851_v41 }
 0xbf5   :  { %v6450_v40 = vpop.eup %6449 }
 0xbf6   :  { %857 = vrot.lane.b32.xlu0 %v6450_v40, %s6700_s26 }
 0xbf7   :  { %v6452_v42 = vpop.eup %6451 }
 0xbf8   :  { %v851_v43 = vadd.f32 1.0, %v6452_v42 }
 0xbfa   :  { %6453 = vrcp.f32 %v851_v43 }
 0xc04   :  { %v6454_v44 = vpop.eup %6453 }
 0xc05   :  { %v855_v46 = vmul.f32 %v6454_v44, %v760_v28 }
 0xc68   :  { %v858_v45 = vpop.permute.xlu0 %857 }
 0xc69   :  { %v860_v24 = vmul.f32 %v6454_v44, %v858_v45 }
 0xc6b   :  { %862 = vrot.lane.b32.xlu1 %v860_v24, %s6701_s27 }
 0xcdd   :  { %v863_v47 = vpop.permute.xlu1 %862 }
 0xcde   :  { %v865_v48 = vadd.f32 %v863_v47, %v855_v46 }
 0xce0   :  { %6455 = vtanh.f32 %v865_v48 }
 0xcea   :  { %v6456_v33 = vpop.eup %6455 }
 0xceb   :  { %868 = vrot.lane.b32.xlu0 %v6456_v33, %s6700_s26  ;;  %v34_v33 = vld [vmem:[%s7986_s3 + $0x98] sm:$0xff] }
 0xd5d   :  { %v869_v49 = vpop.permute.xlu0 %868 }
 0xd5e   :  { %v871_v50 = vmul.f32 %v6454_v44, %v869_v49 }
 0xd60   :  { %873 = vrot.lane.b32.xlu1 %v871_v50, %s6701_s27  ;;  %v35_v50 = vld [vmem:[%s7986_s3 + $0xd8] sm:$0xff] }
 0xdd2   :  { %v874_v51 = vpop.permute.xlu1 %873 }
 0xdd3   :  { %877 = vst.msk [vmem:[#allocation4 + $0x20] sm:$0xff] %vm67_vm0, %v874_v51  ;;  %5455 = vmatmul.mubr.msk.f32.vlgmr.msra.gmra.mrb[12].mxu1 %vm67_vm0, %v874_v51  ;;  %v7013_v51 = vpack.c.bf16 %v35_v50, %v34_v33 }
 0xdd4   :  { %5987 = vmatpush3.bf16.msra.mxu1 %v6764_v10  ;;  %5476 = vmatprep.mubr.msk.f32.mxu1 %vm6698_vm1, %v6699_v21 }
 0xdd5   :  { %5988 = vmatprep.subr.bf16.mxu1 %v6697_v11 }
 0xdd8   :  { %5990 = vmatpush3.bf16.msra.mxu1 %v6782_v16 }
 0xdd9   :  { %5997 = vmatprep.subr.bf16.mxu1 %v6697_v11 }
 0xea6   :  { %v948_v52 = vpop.f32.mrb[12].mxu1 }
 0xea7   :  { %v952_v53 = vadd.f32 %v948_v52, %v6822_v31  ;;  %v5456_v54 = vpop.f32.mrb[13].mxu1 }
 0xea9   :  { %6457 = vtanh.f32 %v952_v53  ;;  %v4853_v56 = vmul.f32 -1.442695, %v952_v53 }
 0xeab   :  { %6459 = vpow2.f32 %v4853_v56  ;;  %v308_v56 = vadd.f32 %v6891_v5, %v6896_v8 }
 0xeb3   :  { %v6458_v55 = vpop.eup %6457 }
 0xeb4   :  { %962 = vrot.lane.b32.xlu0 %v6458_v55, %s6700_s26 }
 0xeb5   :  { %v6460_v10 = vpop.eup %6459 }
 0xeb6   :  { %v956_v57 = vadd.f32 1.0, %v6460_v10 }
 0xeb8   :  { %6461 = vrcp.f32 %v956_v57 }
 0xec2   :  { %v6462_v58 = vpop.eup %6461 }
 0xec3   :  { %v960_v16 = vmul.f32 %v6462_v58, %v865_v48  ;;  %v33_v48 = vld [vmem:[%s7986_s3 + $0x58] sm:$0xff] }
 0xf26   :  { %v963_v59 = vpop.permute.xlu0 %962 }
 0xf27   :  { %v965_v60 = vmul.f32 %v6462_v58, %v963_v59 }
 0xf29   :  { %967 = vrot.lane.b32.xlu1 %v965_v60, %s6701_s27 }
 0xf9b   :  { %v968_v61 = vpop.permute.xlu1 %967 }
 0xf9c   :  { %v970_v29 = vadd.f32 %v968_v61, %v960_v16 }
 0xf9e   :  { %6463 = vtanh.f32 %v970_v29 }
 0xfa8   :  { %v6464_v31 = vpop.eup %6463 }
 0xfa9   :  { %973 = vrot.lane.b32.xlu0 %v6464_v31, %s6700_s26 }
0x101b   :  { %v974_v62 = vpop.permute.xlu0 %973 }
0x101c   :  { %v976_v63 = vmul.f32 %v6462_v58, %v974_v62 }
0x101e   :  { %978 = vrot.lane.b32.xlu1 %v976_v63, %s6701_s27 }
0x1090   :  { %v979_v0 = vpop.permute.xlu1 %978 }
0x1091   :  { %982 = vst.msk [vmem:[#allocation4 + $0x28] sm:$0xff] %vm67_vm0, %v979_v0  ;;  %5466 = vmatmul.mubr.msk.f32.vlgmr.msra.gmra.mrb[14].mxu0 %vm67_vm0, %v979_v0 }
0x1092   :  { %5487 = vmatprep.mubr.msk.f32.mxu0 %vm6698_vm1, %v6699_v21 }
0x1164   :  { %v1053_v1 = vpop.f32.mrb[14].mxu0 }
0x1165   :  { %v1057_v2 = vadd.f32 %v1053_v1, %v6828_v37  ;;  %v5467_v3 = vpop.f32.mrb[15].mxu0 }
0x1167   :  { %6465 = vtanh.f32 %v1057_v2  ;;  %v4855_v6 = vmul.f32 -1.442695, %v1057_v2 }
0x1169   :  { %6467 = vpow2.f32 %v4855_v6 }
0x1171   :  { %v6466_v4 = vpop.eup %6465 }
0x1172   :  { %1067 = vrot.lane.b32.xlu0 %v6466_v4, %s6700_s26 }
0x1173   :  { %v6468_v9 = vpop.eup %6467 }
0x1174   :  { %v1061_v13 = vadd.f32 1.0, %v6468_v9 }
0x1176   :  { %6469 = vrcp.f32 %v1061_v13 }
0x1180   :  { %v6470_v15 = vpop.eup %6469 }
0x1181   :  { %v1065_v23 = vmul.f32 %v6470_v15, %v970_v29 }
0x11e4   :  { %v1068_v18 = vpop.permute.xlu0 %1067 }
0x11e5   :  { %v1070_v20 = vmul.f32 %v6470_v15, %v1068_v18 }
0x11e7   :  { %1072 = vrot.lane.b32.xlu1 %v1070_v20, %s6701_s27 }
0x1259   :  { %v1073_v26 = vpop.permute.xlu1 %1072 }
0x125a   :  { %v1075_v28 = vadd.f32 %v1073_v26, %v1065_v23 }
0x125c   :  { %6471 = vtanh.f32 %v1075_v28 }
0x1266   :  { %v6472_v37 = vpop.eup %6471 }
0x1267   :  { %1078 = vrot.lane.b32.xlu0 %v6472_v37, %s6700_s26 }
0x12d9   :  { %v1079_v27 = vpop.permute.xlu0 %1078 }
0x12da   :  { %v1081_v30 = vmul.f32 %v6470_v15, %v1079_v27 }
0x12dc   :  { %1083 = vrot.lane.b32.xlu1 %v1081_v30, %s6701_s27 }
0x134e   :  { %v1084_v32 = vpop.permute.xlu1 %1083 }
0x134f   :  { %1087 = vst.msk [vmem:[#allocation4 + $0x30] sm:$0xff] %vm67_vm0, %v1084_v32  ;;  %5477 = vmatmul.mubr.msk.f32.vlgmr.msra.gmra.mrb[14].mxu1 %vm67_vm0, %v1084_v32 }
0x1350   :  { %5498 = vmatprep.mubr.msk.f32.mxu1 %vm6698_vm1, %v6699_v21 }
0x1422   :  { %v1158_v34 = vpop.f32.mrb[14].mxu1 }
0x1423   :  { %v1162_v36 = vadd.f32 %v1158_v34, %v6826_v35  ;;  %v5478_v38 = vpop.f32.mrb[15].mxu1  ;;  %v32_v35 = vld [vmem:[%s7986_s3 + $0x18] sm:$0xff] }
0x1424   :  { %v7007_v49 = vpack.c.bf16 %v33_v48, %v32_v35 }
0x1425   :  { %6473 = vtanh.f32 %v1162_v36  ;;  %v4857_v40 = vmul.f32 -1.442695, %v1162_v36 }
0x1426   :  { %5993 = vmatpush3.bf16.msra.mxu0 %v7007_v49  ;;  %5999 = vmatpush3.bf16.msra.mxu1 %v7007_v49 }
0x1427   :  { %6475 = vpow2.f32 %v4857_v40  ;;  %5994 = vmatprep.subr.bf16.mxu0 %v6697_v11  ;;  %6000 = vmatprep.subr.bf16.mxu1 %v6697_v11 }
0x142a   :  { %5996 = vmatpush3.bf16.msra.mxu0 %v7013_v51  ;;  %6002 = vmatpush3.bf16.msra.mxu1 %v7013_v51 }
0x142b   :  { %6003 = vmatprep.subr.bf16.mxu0 %v6697_v11  ;;  %6009 = vmatprep.subr.bf16.mxu1 %v6697_v11 }
0x142f   :  { %v6474_v39 = vpop.eup %6473 }
0x1430   :  { %1172 = vrot.lane.b32.xlu0 %v6474_v39, %s6700_s26 }
0x1431   :  { %v6476_v41 = vpop.eup %6475 }
0x1432   :  { %v1166_v42 = vadd.f32 1.0, %v6476_v41 }
0x1434   :  { %6477 = vrcp.f32 %v1166_v42 }
0x143e   :  { %v6478_v43 = vpop.eup %6477 }
0x143f   :  { %v1170_v24 = vmul.f32 %v6478_v43, %v1075_v28 }
0x14a2   :  { %v1173_v44 = vpop.permute.xlu0 %1172 }
0x14a3   :  { %v1175_v45 = vmul.f32 %v6478_v43, %v1173_v44 }
0x14a5   :  { %1177 = vrot.lane.b32.xlu1 %v1175_v45, %s6701_s27 }
0x1517   :  { %v1178_v46 = vpop.permute.xlu1 %1177 }
0x1518   :  { %v1180_v47 = vadd.f32 %v1178_v46, %v1170_v24 }
0x151a   :  { %6479 = vtanh.f32 %v1180_v47 }
0x1524   :  { %v6480_v52 = vpop.eup %6479 }
0x1525   :  { %1183 = vrot.lane.b32.xlu0 %v6480_v52, %s6700_s26 }
0x1597   :  { %v1184_v53 = vpop.permute.xlu0 %1183 }
0x1598   :  { %v1186_v54 = vmul.f32 %v6478_v43, %v1184_v53 }
0x159a   :  { %1188 = vrot.lane.b32.xlu1 %v1186_v54, %s6701_s27 }
0x160c   :  { %v1189_v55 = vpop.permute.xlu1 %1188 }
0x160d   :  { %1192 = vst.msk [vmem:[#allocation4 + $0x38] sm:$0xff] %vm67_vm0, %v1189_v55  ;;  %5488 = vmatmul.mubr.msk.f32.vlgmr.msra.gmra.mrb[16].mxu0 %vm67_vm0, %v1189_v55 }
0x160e   :  { %6005 = vmatpush3.bf16.msra.mxu0 %v7007_v49  ;;  %5509 = vmatprep.mubr.msk.f32.mxu0 %vm6698_vm1, %v6699_v21 }
0x160f   :  { %6006 = vmatprep.subr.bf16.mxu0 %v6697_v11 }
0x1612   :  { %6008 = vmatpush3.bf16.msra.mxu0 %v7013_v51 }
0x1613   :  { %6015 = vmatprep.subr.bf16.mxu0 %v6697_v11 }
0x16e0   :  { %v1262_v10 = vpop.f32.mrb[16].mxu0 }
0x16e1   :  { %v1266_v57 = vadd.f32 %v1262_v10, %v308_v56  ;;  %v5489_v58 = vpop.f32.mrb[17].mxu0 }
0x16e3   :  { %6481 = vtanh.f32 %v1266_v57  ;;  %v4859_v60 = vmul.f32 -1.442695, %v1266_v57 }
0x16e5   :  { %6483 = vpow2.f32 %v4859_v60 }
0x16ed   :  { %v6482_v59 = vpop.eup %6481 }
0x16ee   :  { %1276 = vrot.lane.b32.xlu0 %v6482_v59, %s6700_s26 }
0x16ef   :  { %v6484_v16 = vpop.eup %6483 }
0x16f0   :  { %v1270_v61 = vadd.f32 1.0, %v6484_v16 }
0x16f2   :  { %6485 = vrcp.f32 %v1270_v61 }
0x16fc   :  { %v6486_v29 = vpop.eup %6485 }
0x16fd   :  { %v1274_v63 = vmul.f32 %v6486_v29, %v1180_v47 }
0x1760   :  { %v1277_v31 = vpop.permute.xlu0 %1276 }
0x1761   :  { %v1279_v62 = vmul.f32 %v6486_v29, %v1277_v31 }
0x1763   :  { %1281 = vrot.lane.b32.xlu1 %v1279_v62, %s6701_s27 }
0x17d5   :  { %v1282_v0 = vpop.permute.xlu1 %1281 }
0x17d6   :  { %v1284_v5 = vadd.f32 %v1282_v0, %v1274_v63 }
0x17d8   :  { %6487 = vtanh.f32 %v1284_v5 }
0x17e2   :  { %v6488_v8 = vpop.eup %6487 }
0x17e3   :  { %1287 = vrot.lane.b32.xlu0 %v6488_v8, %s6700_s26 }
0x1855   :  { %v1288_v1 = vpop.permute.xlu0 %1287 }
0x1856   :  { %v1290_v2 = vmul.f32 %v6486_v29, %v1288_v1 }
0x1858   :  { %1292 = vrot.lane.b32.xlu1 %v1290_v2, %s6701_s27 }
0x18ca   :  { %v1293_v3 = vpop.permute.xlu1 %1292 }
0x18cb   :  { %1295 = vst.msk [vmem:[#allocation5] sm:$0xff] %vm67_vm0, %v1293_v3  ;;  %5499 = vmatmul.mubr.msk.f32.vlgmr.msra.gmra.mrb[16].mxu1 %vm67_vm0, %v1293_v3 }
0x18cc   :  { %6011 = vmatpush3.bf16.msra.mxu1 %v7007_v49  ;;  %5520 = vmatprep.mubr.msk.f32.mxu1 %vm6698_vm1, %v6699_v21 }
0x18cd   :  { %6012 = vmatprep.subr.bf16.mxu1 %v6697_v11 }
0x18d0   :  { %6014 = vmatpush3.bf16.msra.mxu1 %v7013_v51 }
0x18d1   :  { %6021 = vmatprep.subr.bf16.mxu1 %v6697_v11 }
0x199e   :  { %v1366_v4 = vpop.f32.mrb[16].mxu1 }
0x199f   :  { %v1370_v6 = vadd.f32 %v1366_v4, %v6894_v7  ;;  %v5500_v9 = vpop.f32.mrb[17].mxu1 }
0x19a1   :  { %6489 = vtanh.f32 %v1370_v6  ;;  %v4861_v15 = vmul.f32 -1.442695, %v1370_v6 }
0x19a3   :  { %6491 = vpow2.f32 %v4861_v15 }
0x19ab   :  { %v6490_v13 = vpop.eup %6489 }
0x19ac   :  { %1380 = vrot.lane.b32.xlu0 %v6490_v13, %s6700_s26 }
0x19ad   :  { %v6492_v18 = vpop.eup %6491 }
0x19ae   :  { %v1374_v20 = vadd.f32 1.0, %v6492_v18 }
0x19b0   :  { %6493 = vrcp.f32 %v1374_v20 }
0x19ba   :  { %v6494_v23 = vpop.eup %6493 }
0x19bb   :  { %v1378_v37 = vmul.f32 %v6494_v23, %v1284_v5 }
0x1a1e   :  { %v1381_v26 = vpop.permute.xlu0 %1380 }
0x1a1f   :  { %v1383_v28 = vmul.f32 %v6494_v23, %v1381_v26 }
0x1a21   :  { %1385 = vrot.lane.b32.xlu1 %v1383_v28, %s6701_s27 }
0x1a93   :  { %v1386_v27 = vpop.permute.xlu1 %1385 }
0x1a94   :  { %v1388_v30 = vadd.f32 %v1386_v27, %v1378_v37 }
0x1a96   :  { %6495 = vtanh.f32 %v1388_v30 }
0x1aa0   :  { %v6496_v7 = vpop.eup %6495 }
0x1aa1   :  { %1391 = vrot.lane.b32.xlu0 %v6496_v7, %s6700_s26 }
0x1b13   :  { %v1392_v32 = vpop.permute.xlu0 %1391 }
0x1b14   :  { %v1394_v34 = vmul.f32 %v6494_v23, %v1392_v32 }
0x1b16   :  { %1396 = vrot.lane.b32.xlu1 %v1394_v34, %s6701_s27 }
0x1b88   :  { %v1397_v36 = vpop.permute.xlu1 %1396 }
0x1b89   :  { %1400 = vst.msk [vmem:[#allocation5 + $0x8] sm:$0xff] %vm67_vm0, %v1397_v36  ;;  %5510 = vmatmul.mubr.msk.f32.vlgmr.msra.gmra.mrb[18].mxu0 %vm67_vm0, %v1397_v36 }
0x1b8a   :  { %6017 = vmatpush3.bf16.msra.mxu0 %v7007_v49  ;;  %5531 = vmatprep.mubr.msk.f32.mxu0 %vm6698_vm1, %v6699_v21 }
0x1b8b   :  { %6018 = vmatprep.subr.bf16.mxu0 %v6697_v11 }
0x1b8e   :  { %6020 = vmatpush3.bf16.msra.mxu0 %v7013_v51 }
0x1b8f   :  { %6027 = vmatprep.subr.bf16.mxu0 %v6697_v11 }
0x1c5c   :  { %v1471_v38 = vpop.f32.mrb[18].mxu0 }
0x1c5d   :  { %v1475_v39 = vadd.f32 %v1471_v38, %v6902_v14  ;;  %v5511_v40 = vpop.f32.mrb[19].mxu0 }
0x1c5f   :  { %6497 = vtanh.f32 %v1475_v39  ;;  %v4863_v42 = vmul.f32 -1.442695, %v1475_v39 }
0x1c61   :  { %6499 = vpow2.f32 %v4863_v42 }
0x1c69   :  { %v6498_v41 = vpop.eup %6497 }
0x1c6a   :  { %1485 = vrot.lane.b32.xlu0 %v6498_v41, %s6700_s26  ;;  %v37_v41 = vld [vmem:[%s7986_s3 + $0x60] sm:$0xff] }
0x1c6b   :  { %v6500_v43 = vpop.eup %6499 }
0x1c6c   :  { %v1479_v44 = vadd.f32 1.0, %v6500_v43 }
0x1c6e   :  { %6501 = vrcp.f32 %v1479_v44 }
0x1c78   :  { %v6502_v45 = vpop.eup %6501 }
0x1c79   :  { %v1483_v47 = vmul.f32 %v6502_v45, %v1388_v30 }
0x1cdc   :  { %v1486_v24 = vpop.permute.xlu0 %1485 }
0x1cdd   :  { %v1488_v46 = vmul.f32 %v6502_v45, %v1486_v24  ;;  %v38_v24 = vld [vmem:[%s7986_s3 + $0xa0] sm:$0xff] }
0x1cdf   :  { %1490 = vrot.lane.b32.xlu1 %v1488_v46, %s6701_s27  ;;  %v39_v46 = vld [vmem:[%s7986_s3 + $0xe0] sm:$0xff] }
0x1d51   :  { %v1491_v35 = vpop.permute.xlu1 %1490 }
0x1d52   :  { %v1493_v48 = vadd.f32 %v1491_v35, %v1483_v47  ;;  %v6043_v47 = vpack.c.bf16 %v39_v46, %v38_v24 }
0x1d54   :  { %6503 = vtanh.f32 %v1493_v48 }
0x1d5e   :  { %v6504_v14 = vpop.eup %6503 }
0x1d5f   :  { %1496 = vrot.lane.b32.xlu0 %v6504_v14, %s6700_s26  ;;  %v2032_v14 = vld [vmem:[#allocation4 + $0x8] sm:$0xff] }
0x1dd1   :  { %v1497_v33 = vpop.permute.xlu0 %1496 }
0x1dd2   :  { %v1499_v50 = vmul.f32 %v6502_v45, %v1497_v33  ;;  %v2033_v33 = vld [vmem:[#allocation4 + $0x10] sm:$0xff] }
0x1dd4   :  { %1501 = vrot.lane.b32.xlu1 %v1499_v50, %s6701_s27  ;;  %v2034_v50 = vld [vmem:[#allocation4 + $0x18] sm:$0xff] }
0x1e46   :  { %v1502_v52 = vpop.permute.xlu1 %1501 }
0x1e47   :  { %1505 = vst.msk [vmem:[#allocation5 + $0x10] sm:$0xff] %vm67_vm0, %v1502_v52  ;;  %5521 = vmatmul.mubr.msk.f32.vlgmr.msra.gmra.mrb[18].mxu1 %vm67_vm0, %v1502_v52  ;;  %v2035_v52 = vld [vmem:[#allocation4 + $0x20] sm:$0xff] }
0x1e48   :  { %6023 = vmatpush3.bf16.msra.mxu1 %v7007_v49  ;;  %5542 = vmatprep.mubr.msk.f32.mxu1 %vm6698_vm1, %v6699_v21 }
0x1e49   :  { %6024 = vmatprep.subr.bf16.mxu1 %v6697_v11 }
0x1e4c   :  { %6026 = vmatpush3.bf16.msra.mxu1 %v7013_v51 }
0x1e4d   :  { %6033 = vmatprep.subr.bf16.mxu1 %v6697_v11 }
0x1f1a   :  { %v1576_v53 = vpop.f32.mrb[18].mxu1 }
0x1f1b   :  { %v1580_v54 = vadd.f32 %v1576_v53, %v6899_v12  ;;  %v5522_v55 = vpop.f32.mrb[19].mxu1  ;;  %v2036_v53 = vld [vmem:[#allocation4 + $0x28] sm:$0xff] }
0x1f1c   :  { %v2038_v55 = vld [vmem:[#allocation4 + $0x38] sm:$0xff] }
0x1f1d   :  { %6505 = vtanh.f32 %v1580_v54  ;;  %v4865_v10 = vmul.f32 -1.442695, %v1580_v54  ;;  %v2037_v54 = vld [vmem:[#allocation4 + $0x30] sm:$0xff] }
0x1f1f   :  { %6507 = vpow2.f32 %v4865_v10 }
0x1f27   :  { %v6506_v56 = vpop.eup %6505 }
0x1f28   :  { %1590 = vrot.lane.b32.xlu0 %v6506_v56, %s6700_s26 }
0x1f29   :  { %v6508_v57 = vpop.eup %6507 }
0x1f2a   :  { %v1584_v58 = vadd.f32 1.0, %v6508_v57 }
0x1f2c   :  { %6509 = vrcp.f32 %v1584_v58 }
0x1f36   :  { %v6510_v59 = vpop.eup %6509 }
0x1f37   :  { %v1588_v61 = vmul.f32 %v6510_v59, %v1493_v48  ;;  %v2031_v48 = vld [vmem:[#allocation4] sm:$0xff] }
0x1f9a   :  { %v1591_v60 = vpop.permute.xlu0 %1590 }
0x1f9b   :  { %v1593_v16 = vmul.f32 %v6510_v59, %v1591_v60 }
0x1f9d   :  { %1595 = vrot.lane.b32.xlu1 %v1593_v16, %s6701_s27 }
0x200f   :  { %v1596_v29 = vpop.permute.xlu1 %1595 }
0x2010   :  { %v1598_v31 = vadd.f32 %v1596_v29, %v1588_v61 }
0x2012   :  { %6511 = vtanh.f32 %v1598_v31 }
0x201c   :  { %v6512_v12 = vpop.eup %6511 }
0x201d   :  { %1601 = vrot.lane.b32.xlu0 %v6512_v12, %s6700_s26 }
0x208f   :  { %v1602_v62 = vpop.permute.xlu0 %1601 }
0x2090   :  { %v1604_v63 = vmul.f32 %v6510_v59, %v1602_v62 }
0x2092   :  { %1606 = vrot.lane.b32.xlu1 %v1604_v63, %s6701_s27 }
0x2104   :  { %v1607_v0 = vpop.permute.xlu1 %1606 }
0x2105   :  { %1610 = vst.msk [vmem:[#allocation5 + $0x18] sm:$0xff] %vm67_vm0, %v1607_v0  ;;  %5532 = vmatmul.mubr.msk.f32.vlgmr.msra.gmra.mrb[20].mxu0 %vm67_vm0, %v1607_v0 }
0x2106   :  { %6029 = vmatpush3.bf16.msra.mxu0 %v7007_v49  ;;  %5553 = vmatprep.mubr.msk.f32.mxu0 %vm6698_vm1, %v6699_v21 }
0x2107   :  { %6030 = vmatprep.subr.bf16.mxu0 %v6697_v11 }
0x210a   :  { %6032 = vmatpush3.bf16.msra.mxu0 %v7013_v51 }
0x21d8   :  { %v1681_v5 = vpop.f32.mrb[20].mxu0 }
0x21d9   :  { %v1685_v8 = vadd.f32 %v1681_v5, %v6908_v19  ;;  %v5533_v1 = vpop.f32.mrb[21].mxu0 }
0x21db   :  { %6513 = vtanh.f32 %v1685_v8  ;;  %v4867_v3 = vmul.f32 -1.442695, %v1685_v8 }
0x21dd   :  { %6515 = vpow2.f32 %v4867_v3 }
0x21e5   :  { %v6514_v2 = vpop.eup %6513 }
0x21e6   :  { %1695 = vrot.lane.b32.xlu0 %v6514_v2, %s6700_s26 }
0x21e7   :  { %v6516_v4 = vpop.eup %6515 }
0x21e8   :  { %v1689_v6 = vadd.f32 1.0, %v6516_v4 }
0x21ea   :  { %6517 = vrcp.f32 %v1689_v6 }
0x21f4   :  { %v6518_v9 = vpop.eup %6517 }
0x21f5   :  { %v1693_v18 = vmul.f32 %v6518_v9, %v1598_v31 }
0x2258   :  { %v1696_v13 = vpop.permute.xlu0 %1695 }
0x2259   :  { %v1698_v15 = vmul.f32 %v6518_v9, %v1696_v13 }
0x225b   :  { %1700 = vrot.lane.b32.xlu1 %v1698_v15, %s6701_s27 }
0x22cd   :  { %v1701_v20 = vpop.permute.xlu1 %1700 }
0x22ce   :  { %v1703_v23 = vadd.f32 %v1701_v20, %v1693_v18 }
0x22d0   :  { %6519 = vtanh.f32 %v1703_v23 }
0x22da   :  { %v6520_v19 = vpop.eup %6519 }
0x22db   :  { %1706 = vrot.lane.b32.xlu0 %v6520_v19, %s6700_s26 }
0x234d   :  { %v1707_v26 = vpop.permute.xlu0 %1706 }
0x234e   :  { %v1709_v28 = vmul.f32 %v6518_v9, %v1707_v26 }
0x2350   :  { %1711 = vrot.lane.b32.xlu1 %v1709_v28, %s6701_s27  ;;  %v40_v28 = vld [vmem:[%s7986_s3 + $0x28] sm:$0xff] }
0x23c2   :  { %v1712_v37 = vpop.permute.xlu1 %1711 }
0x23c3   :  { %1715 = vst.msk [vmem:[#allocation5 + $0x20] sm:$0xff] %vm67_vm0, %v1712_v37  ;;  %5543 = vmatmul.mubr.msk.f32.vlgmr.msra.gmra.mrb[20].mxu1 %vm67_vm0, %v1712_v37  ;;  %v41_v37 = vld [vmem:[%s7986_s3 + $0x68] sm:$0xff] }
0x23c4   :  { %6035 = vmatpush3.bf16.msra.mxu1 %v7007_v49  ;;  %5564 = vmatprep.mubr.msk.f32.mxu1 %vm6698_vm1, %v6699_v21 }
0x23c5   :  { %6036 = vmatprep.subr.bf16.mxu1 %v6697_v11 }
0x23c8   :  { %6038 = vmatpush3.bf16.msra.mxu1 %v7013_v51 }
0x2496   :  { %v1786_v27 = vpop.f32.mrb[20].mxu1 }
0x2497   :  { %v1790_v30 = vadd.f32 %v1786_v27, %v6905_v17  ;;  %v5544_v7 = vpop.f32.mrb[21].mxu1  ;;  %v36_v17 = vld [vmem:[%s7986_s3 + $0x20] sm:$0xff]  ;;  %v6047_v27 = vpack.c.bf16 %v41_v37, %v40_v28 }
0x2498   :  { %v6039_v42 = vpack.c.bf16 %v37_v41, %v36_v17  ;;  %v7262_v28 = vld [vmem:[%s7990_s2 + $0x20] sm:$0xff] }
0x2499   :  { %6521 = vtanh.f32 %v1790_v30  ;;  %v4869_v34 = vmul.f32 -1.442695, %v1790_v30  ;;  %6048 = vmatprep.subr.bf16.mxu1 %v6047_v27 }
0x249a   :  { %6040 = vmatprep.subr.bf16.mxu0 %v6039_v42 }
0x249b   :  { %6523 = vpow2.f32 %v4869_v34  ;;  %v42_v34 = vld [vmem:[%s7986_s3 + $0xa8] sm:$0xff] }
0x24a3   :  { %v6522_v32 = vpop.eup %6521 }
0x24a4   :  { %1800 = vrot.lane.b32.xlu0 %v6522_v32, %s6700_s26 }
0x24a5   :  { %v6524_v36 = vpop.eup %6523 }
0x24a6   :  { %v1794_v38 = vadd.f32 1.0, %v6524_v36  ;;  %v43_v36 = vld [vmem:[%s7986_s3 + $0xe8] sm:$0xff] }
0x24a8   :  { %6525 = vrcp.f32 %v1794_v38  ;;  %v6051_v38 = vpack.c.bf16 %v43_v36, %v42_v34 }
0x24b2   :  { %v6526_v49 = vpop.eup %6525 }
0x24b3   :  { %v1798_v11 = vmul.f32 %v6526_v49, %v1703_v23 }
0x2516   :  { %v1801_v39 = vpop.permute.xlu0 %1800 }
0x2517   :  { %v1803_v21 = vmul.f32 %v6526_v49, %v1801_v39  ;;  %v2039_v39 = vld [vmem:[#allocation5] sm:$0xff] }
0x2519   :  { %1805 = vrot.lane.b32.xlu1 %v1803_v21, %s6701_s27  ;;  %v2040_v21 = vld [vmem:[#allocation5 + $0x8] sm:$0xff] }
0x258b   :  { %v1806_v51 = vpop.permute.xlu1 %1805 }
0x258c   :  { %v7099_v40 = vadd.f32 %v1806_v51, %v1798_v11  ;;  %v2041_v11 = vld [vmem:[#allocation5 + $0x10] sm:$0xff]  ;;  %v2042_v51 = vld [vmem:[#allocation5 + $0x18] sm:$0xff] }
0x258e   :  { %6527 = vtanh.f32 %v7099_v40 }
0x2598   :  { %v6528_v43 = vpop.eup %6527 }
0x2599   :  { %1811 = vrot.lane.b32.xlu0 %v6528_v43, %s6700_s26 }
0x260b   :  { %v1812_v44 = vpop.permute.xlu0 %1811 }
0x260c   :  { %v1814_v45 = vmul.f32 %v6526_v49, %v1812_v44 }
0x260e   :  { %1816 = vrot.lane.b32.xlu1 %v1814_v45, %s6701_s27 }
0x2680   :  { %v1817_v35 = vpop.permute.xlu1 %1816 }
0x2681   :  { %1820 = vst.msk [vmem:[#allocation5 + $0x28] sm:$0xff] %vm67_vm0, %v1817_v35  ;;  %5554 = vmatmul.mubr.msk.f32.vlgmr.msra.gmra.mrb[22].mxu0 %vm67_vm0, %v1817_v35 }
0x2682   :  { %6042 = vmatpush3.bf16.msra.mxu0 %v6039_v42  ;;  %5575 = vmatprep.mubr.msk.f32.mxu0 %vm67_vm0, %v2031_v48 }
0x2683   :  { %6044 = vmatprep.subr.bf16.mxu0 %v6043_v47 }
0x2686   :  { %6046 = vmatpush3.bf16.msra.mxu0 %v6043_v47 }
0x2688   :  { %v2044_v17 = vld [vmem:[#allocation5 + $0x28] sm:$0xff] }
0x2689   :  { %5576 = vmatmul.mubr.msk.f32.vlgmr.msra.gmra.mrb[24].mxu0 %vm67_vm0, %v2032_v14 }
0x268a   :  { %5578 = vmatprep.mubr.msk.f32.mxu0 %vm67_vm0, %v2033_v33 }
0x268d   :  { %5579 = vmatmul.mubr.msk.f32.gmra.mrb[26].mxu0 %vm67_vm0, %v2034_v50 }
0x268e   :  { %5581 = vmatprep.mubr.msk.f32.mxu0 %vm67_vm0, %v2035_v52 }
0x2691   :  { %5582 = vmatmul.mubr.msk.f32.gmra.mrb[28].mxu0 %vm67_vm0, %v2036_v53 }
0x2692   :  { %5584 = vmatprep.mubr.msk.f32.mxu0 %vm67_vm0, %v2037_v54 }
0x2695   :  { %5585 = vmatmul.mubr.msk.f32.gmra.mrb[30].mxu0 %vm67_vm0, %v2038_v55 }
0x2754   :  { %v1891_v56 = vpop.f32.mrb[22].mxu0 }
0x2755   :  { %v1895_v10 = vadd.f32 %v1891_v56, %v6914_v25  ;;  %v5555_v57 = vpop.f32.mrb[23].mxu0 }
0x2757   :  { %6529 = vtanh.f32 %v1895_v10  ;;  %v4871_v6 = vmul.f32 -1.442695, %v1895_v10 }
0x2759   :  { %6531 = vpow2.f32 %v4871_v6 }
0x275c   :  { %v5577_v58 = vpop.f32.mrb[24].mxu0 }
0x275d   :  { %v2137_v59 = vpop.f32.mrb[25].mxu0 }
0x275e   :  { %v6055_v16 = vpack.c.bf16 %v5577_v58, %v2137_v59  ;;  %v7133_v61 = vpack.i.bf16 %v5577_v58, %v2137_v59 }
0x2760   :  { %v5580_v29 = vpop.f32.mrb[26].mxu0  ;;  %6057 = vmatprep.subr.msk.bf16.mxu0 %vm7129_vm3, %v6055_v16 }
0x2761   :  { %v6530_v31 = vpop.eup %6529  ;;  %v2147_v25 = vpop.f32.mrb[27].mxu0  ;;  %6060 = vmatpush3.bf16.xpose.msk.msra.mxu0 %vm7129_vm3, %v6055_v16 }
0x2762   :  { %1905 = vrot.lane.b32.xlu0 %v6530_v31, %s6700_s26  ;;  %v6061_v12 = vpack.c.bf16 %v5580_v29, %v2147_v25  ;;  %v7140_v62 = vpack.i.bf16 %v5580_v29, %v2147_v25 }
0x2763   :  { %v6532_v9 = vpop.eup %6531 }
0x2764   :  { %v5583_v63 = vpop.f32.mrb[28].mxu0  ;;  %6063 = vmatprep.subr.msk.bf16.mxu0 %vm7129_vm3, %v6061_v12  ;;  %v1899_v13 = vadd.f32 1.0, %v6532_v9  ;;  %v7243_v9 = vld [vmem:[%s7990_s2 + $0x28] sm:$0xff] }
0x2765   :  { %v2157_v0 = vpop.f32.mrb[29].mxu0 }
0x2766   :  { %v6067_v5 = vpack.c.bf16 %v5583_v63, %v2157_v0  ;;  %v7144_v8 = vpack.i.bf16 %v5583_v63, %v2157_v0  ;;  %6533 = vrcp.f32 %v1899_v13  ;;  %v7224_v0 = vld [vmem:[%s7990_s2 + $0x10] sm:$0xff] }
0x2768   :  { %v5586_v1 = vpop.f32.mrb[30].mxu0 }
0x2769   :  { %v2167_v2 = vpop.f32.mrb[31].mxu0  ;;  %6066 = vmatpush3.bf16.xpose.msk.msra.mxu0 %vm7129_vm3, %v6061_v12  ;;  %v7218_v12 = vld [vmem:[%s7990_s2] sm:$0xff] }
0x276a   :  { %6069 = vmatprep.subr.msk.bf16.mxu0 %vm7129_vm3, %v6067_v5  ;;  %v6073_v3 = vpack.c.bf16 %v5586_v1, %v2167_v2  ;;  %v7150_v4 = vpack.i.bf16 %v5586_v1, %v2167_v2  ;;  %v7233_v2 = vld [vmem:[%s7990_s2 + $0x18] sm:$0xff] }
0x2770   :  { %v6534_v15 = vpop.eup %6533 }
0x2771   :  { %6072 = vmatpush3.bf16.xpose.msk.msra.mxu0 %vm7129_vm3, %v6067_v5  ;;  %v1903_v23 = vmul.f32 %v6534_v15, %v7099_v40  ;;  %v2043_v40 = vld [vmem:[#allocation5 + $0x20] sm:$0xff] }
0x2772   :  { %6075 = vmatprep.subr.msk.bf16.mxu0 %vm7129_vm3, %v6073_v3 }
0x2779   :  { %6078 = vmatpush3.bf16.xpose.msk.msra.mxu0 %vm7129_vm3, %v6073_v3 }
0x27d4   :  { %v1906_v18 = vpop.permute.xlu0 %1905 }
0x27d5   :  { %v1908_v20 = vmul.f32 %v6534_v15, %v1906_v18 }
0x27d7   :  { %1910 = vrot.lane.b32.xlu1 %v1908_v20, %s6701_s27 }
0x2849   :  { %v1911_v19 = vpop.permute.xlu1 %1910 }
0x284a   :  { %v7160_v26 = vadd.f32 %v1911_v19, %v1903_v23  ;;  %v7256_v19 = vld [vmem:[%s7990_s2 + $0x8] sm:$0xff] }
0x284c   :  { %6535 = vtanh.f32 %v7160_v26 }
0x2856   :  { %v6536_v30 = vpop.eup %6535 }
0x2857   :  { %1916 = vrot.lane.b32.xlu0 %v6536_v30, %s6700_s26 }
0x28c9   :  { %v1917_v7 = vpop.permute.xlu0 %1916 }
0x28ca   :  { %v1919_v32 = vmul.f32 %v6534_v15, %v1917_v7 }
0x28cc   :  { %1921 = vrot.lane.b32.xlu1 %v1919_v32, %s6701_s27 }
0x293e   :  { %v1922_v49 = vpop.permute.xlu1 %1921 }
0x293f   :  { %1925 = vst.msk [vmem:[#allocation5 + $0x30] sm:$0xff] %vm67_vm0, %v1922_v49  ;;  %5565 = vmatmul.mubr.msk.f32.vlgmr.msra.gmra.mrb[22].mxu1 %vm67_vm0, %v1922_v49 }
0x2940   :  { %6050 = vmatpush3.bf16.msra.mxu1 %v6047_v27  ;;  %5595 = vmatprep.mubr.msk.f32.mxu1 %vm67_vm0, %v2039_v39 }
0x2941   :  { %6052 = vmatprep.subr.bf16.mxu1 %v6051_v38 }
0x2944   :  { %6054 = vmatpush3.bf16.msra.mxu1 %v6051_v38 }
0x2946   :  { %v2045_v41 = vld [vmem:[#allocation5 + $0x30] sm:$0xff] }
0x2947   :  { %5596 = vmatmul.mubr.msk.f32.vlgmr.msra.gmra.mrb[24].mxu1 %vm67_vm0, %v2040_v21 }
0x2948   :  { %5598 = vmatprep.mubr.msk.f32.mxu1 %vm67_vm0, %v2041_v11 }
0x294b   :  { %5599 = vmatmul.mubr.msk.f32.gmra.mrb[26].mxu1 %vm67_vm0, %v2042_v51 }
0x294c   :  { %5601 = vmatprep.mubr.msk.f32.mxu1 %vm67_vm0, %v2043_v40 }
0x294f   :  { %5602 = vmatmul.mubr.msk.f32.gmra.mrb[28].mxu1 %vm67_vm0, %v2044_v17 }
0x2950   :  { %5604 = vmatprep.mubr.msk.f32.mxu1 %vm67_vm0, %v2045_v41 }
0x2a12   :  { %v1996_v42 = vpop.f32.mrb[22].mxu1 }
0x2a13   :  { %v2000_v43 = vadd.f32 %v1996_v42, %v6911_v22  ;;  %v5566_v44 = vpop.f32.mrb[23].mxu1 }
0x2a15   :  { %6537 = vtanh.f32 %v2000_v43  ;;  %v4873_v14 = vmul.f32 -1.442695, %v2000_v43 }
0x2a17   :  { %6539 = vpow2.f32 %v4873_v14 }
0x2a1a   :  { %v7187_v45 = vpop.f32.mrb[24].mxu1 }
0x2a1b   :  { %v7189_v24 = vpop.f32.mrb[25].mxu1 }
0x2a1c   :  { %5623 = vmatprep.mubr.msk.f32.mxu0 %vm2313_vm2, %v7189_v24 }
0x2a1d   :  { %5624 = vmatmul.mubr.msk.f32.vlgmr.msra.gmra.mrb[32].mxu0 %vm2313_vm2, %v7187_v45 }
0x2a1e   :  { %v7195_v46 = vpop.f32.mrb[26].mxu1 }
0x2a1f   :  { %v6538_v47 = vpop.eup %6537  ;;  %v7197_v35 = vpop.f32.mrb[27].mxu1 }
0x2a20   :  { %5626 = vmatprep.mubr.msk.f32.mxu0 %vm2313_vm2, %v7197_v35  ;;  %2010 = vrot.lane.b32.xlu0 %v6538_v47, %s6700_s26 }
0x2a21   :  { %5627 = vmatmul.mubr.msk.f32.gmra.mrb[34].mxu0 %vm2313_vm2, %v7195_v46  ;;  %v6540_v33 = vpop.eup %6539 }
0x2a22   :  { %v7204_v22 = vpop.f32.mrb[28].mxu1  ;;  %v2004_v50 = vadd.f32 1.0, %v6540_v33 }
0x2a23   :  { %v7206_v48 = vpop.f32.mrb[29].mxu1 }
0x2a24   :  { %5629 = vmatprep.mubr.msk.f32.mxu0 %vm2313_vm2, %v7206_v48  ;;  %6541 = vrcp.f32 %v2004_v50 }
0x2a25   :  { %5630 = vmatmul.mubr.msk.f32.gmra.mrb[36].mxu0 %vm2313_vm2, %v7204_v22 }
0x2a2e   :  { %v6542_v52 = vpop.eup %6541 }
0x2a2f   :  { %v2008_v16 = vmul.f32 %v6542_v52, %v7160_v26 }
0x2a92   :  { %v2011_v53 = vpop.permute.xlu0 %2010 }
0x2a93   :  { %v2013_v54 = vmul.f32 %v6542_v52, %v2011_v53 }
0x2a95   :  { %2015 = vrot.lane.b32.xlu1 %v2013_v54, %s6701_s27  ;;  %v7293_v54 = vld [vmem:[%s7990_s2 + $0x38] sm:$0xff] }
0x2af0   :  { %v5625_v55 = vpop.f32.mrb[32].mxu0 }
0x2af1   :  { %v2428_v56 = vpop.f32.mrb[33].mxu0  ;;  %v2434_v26 = vadd.f32 %v5625_v55, %v7256_v19  ;;  %v7298_v55 = vld [vmem:[%s7990_s2 + $0x30] sm:$0xff] }
0x2af2   :  { %v2429_v63 = vadd.f32 %v2428_v56, %v7218_v12 }
0x2af3   :  { %v2471_v27 = vsel %vm2467_vm4, %v2434_v26, -inf }
0x2af4   :  { %v5628_v10 = vpop.f32.mrb[34].mxu0  ;;  %v2468_v1 = vsel %vm2467_vm4, %v2429_v63, -inf }
0x2af5   :  { %v2438_v57 = vpop.f32.mrb[35].mxu0  ;;  %v7236_v3 = vadd.f32 %v5628_v10, %v7233_v2 }
0x2af6   :  { %v7227_v5 = vadd.f32 %v2438_v57, %v7224_v0 }
0x2af7   :  { %v2477_v15 = vsel %vm2467_vm4, %v7236_v3, -inf }
0x2af8   :  { %v5631_v58 = vpop.f32.mrb[36].mxu0  ;;  %v2474_v6 = vsel %vm2467_vm4, %v7227_v5, -inf }
0x2af9   :  { %v2448_v59 = vpop.f32.mrb[37].mxu0  ;;  %v7246_v13 = vadd.f32 %v5631_v58, %v7243_v9 }
0x2afa   :  { %v7265_v37 = vadd.f32 %v2448_v59, %v7262_v28 }
0x2afb   :  { %v2483_v18 = vsel %vm2467_vm4, %v7246_v13, -inf }
0x2afc   :  { %v2480_v30 = vsel %vm2467_vm4, %v7265_v37, -inf }
0x2b07   :  { %v2016_v29 = vpop.permute.xlu1 %2015 }
0x2b08   :  { %v2018_v31 = vadd.f32 %v2016_v29, %v2008_v16 }
0x2b0a   :  { %6543 = vtanh.f32 %v2018_v31 }
0x2b14   :  { %v6544_v25 = vpop.eup %6543 }
0x2b15   :  { %2021 = vrot.lane.b32.xlu0 %v6544_v25, %s6700_s26 }
0x2b34   :  { %2469 = vmax.xlane.f32.xlu0 %v2468_v1 }
0x2b38   :  { %2475 = vmax.xlane.f32.xlu0 %v2474_v6 }
0x2b3c   :  { %2478 = vmax.xlane.f32.xlu0 %v2477_v15 }
0x2b40   :  { %2484 = vmax.xlane.f32.xlu0 %v2483_v18 }
0x2b87   :  { %v2022_v20 = vpop.permute.xlu0 %2021 }
0x2b88   :  { %v2024_v23 = vmul.f32 %v6542_v52, %v2022_v20 }
0x2b8a   :  { %2026 = vrot.lane.b32.xlu1 %v2024_v23, %s6701_s27 }
0x2bae   :  { %2472 = vmax.xlane.f32.xlu1 %v2471_v27 }
0x2bb2   :  { %2481 = vmax.xlane.f32.xlu1 %v2480_v30 }
0x2bc1   :  { %v2470_v7 = vpop.xlane.xlu0 %2469 }
0x2bc2   :  { %v2492_v32 = vsub.f32 %v2429_v63, %v2470_v7 }
0x2bc3   :  { %6268 = vrot.lane.b32.xlu1 %v7133_v61, %s6702_s14 }
0x2bc4   :  { %v2500_v34 = vmul.f32 1.442695, %v2492_v32 }
0x2bc5   :  { %v2476_v29 = vpop.xlane.xlu0 %2475 }
0x2bc6   :  { %6545 = vpow2.f32 %v2500_v34  ;;  %v2494_v25 = vsub.f32 %v7227_v5, %v2476_v29 }
0x2bc8   :  { %v2504_v1 = vmul.f32 1.442695, %v2494_v25 }
0x2bc9   :  { %v2479_v31 = vpop.xlane.xlu0 %2478 }
0x2bca   :  { %v2495_v63 = vsub.f32 %v7236_v3, %v2479_v31 }
0x2bcc   :  { %v2506_v15 = vmul.f32 1.442695, %v2495_v63 }
0x2bcd   :  { %v2485_v18 = vpop.xlane.xlu0 %2484 }
0x2bce   :  { %v2497_v20 = vsub.f32 %v7246_v13, %v2485_v18 }
0x2bd0   :  { %v6546_v36 = vpop.eup %6545 }
0x2bd1   :  { %v2516_v38 = vsel %vm2467_vm4, %v6546_v36, 0.0 }
0x2be7   :  { %2517 = vadd.xlane.f32.xlu1 %v2516_v38 }
0x2bf8   :  { %6278 = vrot.lane.b32.xlu1 %v7144_v8, %s6702_s14 }
0x2bfc   :  { %v2027_v49 = vpop.permute.xlu1 %2026 }
0x2bfd   :  { %2030 = vst.msk [vmem:[#allocation5 + $0x38] sm:$0xff] %vm67_vm0, %v2027_v49 }
0x2c04   :  { %v2046_v39 = vld [vmem:[#allocation5 + $0x38] sm:$0xff] }
0x2c05   :  { %5605 = vmatmul.mubr.msk.f32.gmra.mrb[30].mxu1 %vm67_vm0, %v2046_v39 }
0x2c3b   :  { %v2473_v21 = vpop.xlane.xlu1 %2472 }
0x2c3c   :  { %v2493_v11 = vsub.f32 %v2434_v26, %v2473_v21  ;;  %v2510_v26 = vmul.f32 1.442695, %v2497_v20 }
0x2c3e   :  { %v2502_v51 = vmul.f32 1.442695, %v2493_v11 }
0x2c3f   :  { %v2482_v40 = vpop.xlane.xlu1 %2481 }
0x2c40   :  { %6547 = vpow2.f32 %v2502_v51  ;;  %v2496_v6 = vsub.f32 %v7265_v37, %v2482_v40 }
0x2c42   :  { %v2508_v23 = vmul.f32 1.442695, %v2496_v6 }
0x2c43   :  { %v6269_v17 = vpop.permute.xlu1 %6268 }
0x2c44   :  { %v6271_v41 = vunpack.i.h.bf16 %v6269_v17  ;;  %v6270_v42 = vunpack.i.l.bf16 %v6269_v17 }
0x2c46   :  { %v6079_v43 = vpack.c.bf16 %v6271_v41, %v6270_v42 }
0x2c48   :  { %6080 = vmatprep.subr.bf16.mxu1 %v6079_v43 }
0x2c49   :  { %6082 = vmatpush3.bf16.msra.mxu1 %v6079_v43 }
0x2c4a   :  { %v7277_v44 = vpop.eup %6547 }
0x2c4b   :  { %v2519_v47 = vsel %vm2467_vm4, %v7277_v44, 0.0 }
0x2c4c   :  { %2520 = vadd.xlane.f32.xlu0 %v2519_v47 }
0x2c74   :  { %v2518_v14 = vpop.xlane.xlu1 %2517 }
0x2c75   :  { %6549 = vrcp.f32 %v2518_v14 }
0x2c76   :  { %6551 = vpow2.f32 %v2504_v1 }
0x2c77   :  { %6553 = vpow2.f32 %v2506_v15 }
0x2c78   :  { %6555 = vpow2.f32 %v2508_v23 }
0x2c79   :  { %6557 = vpow2.f32 %v2510_v26 }
0x2c7f   :  { %v6550_v33 = vpop.eup %6549 }
0x2c80   :  { %v2548_v50 = vmul.f32 %v6550_v33, %v6546_v36  ;;  %v7312_v27 = vpop.eup %6551  ;;  %v6279_v36 = vpop.permute.xlu1 %6278 }
0x2c81   :  { %v7314_v30 = vpop.eup %6553  ;;  %v2522_v5 = vsel %vm2467_vm4, %v7312_v27, 0.0  ;;  %v6281_v51 = vunpack.i.h.bf16 %v6279_v36  ;;  %v6280_v41 = vunpack.i.l.bf16 %v6279_v36 }
0x2c82   :  { %5651 = vmatprep.mubr.msk.f32.mxu1 %vm2467_vm4, %v2548_v50  ;;  %v7318_v3 = vpop.eup %6555  ;;  %v2525_v37 = vsel %vm2467_vm4, %v7314_v30, 0.0 }
0x2c83   :  { %v2528_v13 = vsel %vm2467_vm4, %v7318_v3, 0.0  ;;  %v7324_v7 = vpop.eup %6557 }
0x2c84   :  { %v2531_v32 = vsel %vm2467_vm4, %v7324_v7, 0.0 }
0x2cd8   :  { %v7282_v52 = vpop.f32.mrb[30].mxu1 }
0x2cd9   :  { %v7284_v53 = vpop.f32.mrb[31].mxu1  ;;  %v2521_v34 = vpop.xlane.xlu0 %2520 }
0x2cda   :  { %5632 = vmatprep.mubr.msk.f32.mxu0 %vm2313_vm2, %v7284_v53 }
0x2cdb   :  { %5633 = vmatmul.mubr.msk.f32.gmra.mrb[38].mxu0 %vm2313_vm2, %v7282_v52 }
0x2dae   :  { %v5634_v56 = vpop.f32.mrb[38].mxu0 }
0x2daf   :  { %v2464_v10 = vadd.f32 %v5634_v56, %v7293_v54  ;;  %v2458_v57 = vpop.f32.mrb[39].mxu0  ;;  %v6087_v56 = vpack.c.bf16 %v6281_v51, %v6280_v41 }
0x2db0   :  { %v2459_v58 = vadd.f32 %v2458_v57, %v7298_v55 }
0x2db1   :  { %v2489_v59 = vsel %vm2467_vm4, %v2464_v10, -inf }
0x2db2   :  { %2490 = vmax.xlane.f32.xlu0 %v2489_v59  ;;  %v2486_v16 = vsel %vm2467_vm4, %v2459_v58, -inf }
0x2db3   :  { %2487 = vmax.xlane.f32.xlu1 %v2486_v16 }
0x2dc4   :  { %6283 = vrot.lane.b32.xlu1 %v7150_v4, %s6702_s14 }
0x2dc8   :  { %6273 = vrot.lane.b32.xlu0 %v7140_v62, %s6702_s14 }
0x2de7   :  { %2523 = vadd.xlane.f32.xlu0 %v2522_v5 }
0x2de8   :  { %2526 = vadd.xlane.f32.xlu1 %v2525_v37 }
0x2deb   :  { %2529 = vadd.xlane.f32.xlu0 %v2528_v13 }
0x2def   :  { %2532 = vadd.xlane.f32.xlu0 %v2531_v32 }
0x2df9   :  { %6288 = vrot.lane.b32.xlu1 %v7133_v61, %s6703_s19 }
0x2dfd   :  { %6298 = vrot.lane.b32.xlu1 %v7144_v8, %s6703_s19 }
0x2e01   :  { %6303 = vrot.lane.b32.xlu1 %v7150_v4, %s6703_s19 }
0x2e05   :  { %2709 = vrot.lane.b32.xlu1 %v7189_v24, %s6703_s19 }
0x2e09   :  { %2711 = vrot.lane.b32.xlu1 %v7187_v45, %s6703_s19 }
0x2e0d   :  { %2715 = vrot.lane.b32.xlu1 %v7195_v46, %s6703_s19 }
0x2e11   :  { %2719 = vrot.lane.b32.xlu1 %v7204_v22, %s6703_s19 }
0x2e15   :  { %2723 = vrot.lane.b32.xlu1 %v7282_v52, %s6703_s19 }
0x2e19   :  { %6313 = vrot.lane.b32.xlu1 %v7140_v62, %s6704_s20 }
0x2e1d   :  { %6323 = vrot.lane.b32.xlu1 %v7150_v4, %s6704_s20 }
0x2e21   :  { %3379 = vrot.lane.b32.xlu1 %v7187_v45, %s6704_s20 }
0x2e25   :  { %3383 = vrot.lane.b32.xlu1 %v7195_v46, %s6704_s20 }
0x2e29   :  { %3387 = vrot.lane.b32.xlu1 %v7204_v22, %s6704_s20 }
0x2e2d   :  { %3391 = vrot.lane.b32.xlu1 %v7282_v52, %s6704_s20 }
0x2e3f   :  { %v2491_v38 = vpop.xlane.xlu0 %2490 }
0x2e40   :  { %v2499_v49 = vsub.f32 %v2464_v10, %v2491_v38  ;;  %v2488_v39 = vpop.xlane.xlu1 %2487 }
0x2e41   :  { %v2498_v21 = vsub.f32 %v2459_v58, %v2488_v39 }
0x2e42   :  { %v2514_v11 = vmul.f32 1.442695, %v2499_v49 }
0x2e43   :  { %v2512_v40 = vmul.f32 1.442695, %v2498_v21  ;;  %v6274_v17 = vpop.permute.xlu0 %6273 }
0x2e44   :  { %6559 = vpow2.f32 %v2514_v11  ;;  %v6276_v42 = vunpack.i.h.bf16 %v6274_v17  ;;  %v6275_v43 = vunpack.i.l.bf16 %v6274_v17  ;;  %v6284_v47 = vpop.permute.xlu1 %6283 }
0x2e45   :  { %6561 = vrcp.f32 %v2521_v34  ;;  %v6286_v33 = vunpack.i.h.bf16 %v6284_v47  ;;  %v6285_v50 = vunpack.i.l.bf16 %v6284_v47 }
0x2e46   :  { %6563 = vpow2.f32 %v2512_v40  ;;  %v6083_v14 = vpack.c.bf16 %v6276_v42, %v6275_v43 }
0x2e47   :  { %v6091_v10 = vpack.c.bf16 %v6286_v33, %v6285_v50 }
0x2e48   :  { %6084 = vmatprep.subr.bf16.mxu1 %v6083_v14 }
0x2e49   :  { %6086 = vmatpush3.bf16.msra.mxu1 %v6083_v14 }
0x2e4a   :  { %6088 = vmatprep.subr.bf16.mxu1 %v6087_v56 }
0x2e4d   :  { %6090 = vmatpush3.bf16.msra.mxu1 %v6087_v56 }
0x2e4e   :  { %v7356_v57 = vpop.eup %6559  ;;  %6092 = vmatprep.subr.bf16.mxu1 %v6091_v10 }
0x2e4f   :  { %v6562_v58 = vpop.eup %6561  ;;  %v2537_v59 = vsel %vm2467_vm4, %v7356_v57, 0.0 }
0x2e50   :  { %v7360_v16 = vpop.eup %6563  ;;  %2538 = vadd.xlane.f32.xlu0 %v2537_v59  ;;  %v2549_v29 = vmul.f32 %v6562_v58, %v7277_v44 }
0x2e51   :  { %6094 = vmatpush3.bf16.msra.mxu1 %v6091_v10  ;;  %v2534_v31 = vsel %vm2467_vm4, %v7360_v16, 0.0 }
0x2e54   :  { %2535 = vadd.xlane.f32.xlu0 %v2534_v31  ;;  %5652 = vmatmul.mubr.msk.f32.vlgmr.msra.gmra.mrb[32].mxu1 %vm2467_vm4, %v2549_v29 }
0x2e6a   :  { %6293 = vrot.lane.b32.xlu0 %v7140_v62, %s6703_s19 }
0x2e6e   :  { %2713 = vrot.lane.b32.xlu0 %v7197_v35, %s6703_s19 }
0x2e72   :  { %2717 = vrot.lane.b32.xlu0 %v7206_v48, %s6703_s19 }
0x2e74   :  { %v2524_v25 = vpop.xlane.xlu0 %2523 }
0x2e75   :  { %6565 = vrcp.f32 %v2524_v25  ;;  %v2527_v63 = vpop.xlane.xlu1 %2526 }
0x2e76   :  { %6567 = vrcp.f32 %v2527_v63  ;;  %2721 = vrot.lane.b32.xlu0 %v7284_v53, %s6703_s19 }
0x2e78   :  { %v2530_v44 = vpop.xlane.xlu0 %2529 }
0x2e79   :  { %6569 = vrcp.f32 %v2530_v44  ;;  %v6289_v1 = vpop.permute.xlu1 %6288 }
0x2e7a   :  { %v6291_v6 = vunpack.i.h.bf16 %v6289_v1  ;;  %v6290_v15 = vunpack.i.l.bf16 %v6289_v1  ;;  %6308 = vrot.lane.b32.xlu0 %v7133_v61, %s6704_s20 }
0x2e7c   :  { %v6095_v18 = vpack.c.bf16 %v6291_v6, %v6290_v15  ;;  %v2533_v20 = vpop.xlane.xlu0 %2532 }
0x2e7d   :  { %6571 = vrcp.f32 %v2533_v20 }
0x2e7e   :  { %6318 = vrot.lane.b32.xlu0 %v7144_v8, %s6704_s20  ;;  %6097 = vmatprep.subr.msk.bf16.mxu1 %vm7129_vm3, %v6095_v18 }
0x2e7f   :  { %v6566_v23 = vpop.eup %6565  ;;  %6100 = vmatpush3.bf16.xpose.msk.msra.mxu1 %vm7129_vm3, %v6095_v18 }
0x2e80   :  { %v6568_v26 = vpop.eup %6567  ;;  %v2550_v5 = vmul.f32 %v6566_v23, %v7312_v27 }
0x2e81   :  { %v2551_v37 = vmul.f32 %v6568_v26, %v7314_v30  ;;  %v6299_v30 = vpop.permute.xlu1 %6298 }
0x2e82   :  { %3377 = vrot.lane.b32.xlu0 %v7189_v24, %s6704_s20  ;;  %5654 = vmatprep.mubr.msk.f32.mxu1 %vm2467_vm4, %v2550_v5  ;;  %v6301_v11 = vunpack.i.h.bf16 %v6299_v30  ;;  %v6300_v51 = vunpack.i.l.bf16 %v6299_v30 }
0x2e83   :  { %v6570_v13 = vpop.eup %6569  ;;  %5655 = vmatmul.mubr.msk.f32.gmra.mrb[34].mxu1 %vm2467_vm4, %v2551_v37 }
0x2e84   :  { %v2552_v32 = vmul.f32 %v6570_v13, %v7318_v3  ;;  %v6107_v43 = vpack.c.bf16 %v6301_v11, %v6300_v51 }
0x2e85   :  { %v6304_v36 = vpop.permute.xlu1 %6303 }
0x2e86   :  { %3381 = vrot.lane.b32.xlu0 %v7197_v35, %s6704_s20  ;;  %5657 = vmatprep.mubr.msk.f32.mxu1 %vm2467_vm4, %v2552_v32  ;;  %v6306_v56 = vunpack.i.h.bf16 %v6304_v36  ;;  %v6305_v10 = vunpack.i.l.bf16 %v6304_v36 }
0x2e87   :  { %v6572_v34 = vpop.eup %6571 }
0x2e88   :  { %v2553_v27 = vmul.f32 %v6572_v34, %v7324_v7  ;;  %v6113_v31 = vpack.c.bf16 %v6306_v56, %v6305_v10 }
0x2e89   :  { %v2710_v38 = vpop.permute.xlu1 %2709 }
0x2e8a   :  { %3385 = vrot.lane.b32.xlu0 %v7206_v48, %s6704_s20  ;;  %5658 = vmatmul.mubr.msk.f32.gmra.mrb[36].mxu1 %vm2467_vm4, %v2553_v27 }
0x2e8d   :  { %v2712_v39 = vpop.permute.xlu1 %2711 }
0x2e8e   :  { %3389 = vrot.lane.b32.xlu0 %v7284_v53, %s6704_s20 }
0x2e91   :  { %v2716_v41 = vpop.permute.xlu1 %2715 }
0x2e95   :  { %v2720_v59 = vpop.permute.xlu1 %2719 }
0x2edd   :  { %v2539_v3 = vpop.xlane.xlu0 %2538 }
0x2ede   :  { %6573 = vrcp.f32 %v2539_v3 }
0x2ee1   :  { %v2536_v49 = vpop.xlane.xlu0 %2535 }
0x2ee2   :  { %6575 = vrcp.f32 %v2536_v49 }
0x2ee5   :  { %v6294_v21 = vpop.permute.xlu0 %6293 }
0x2ee6   :  { %v6296_v7 = vunpack.i.h.bf16 %v6294_v21  ;;  %v6295_v40 = vunpack.i.l.bf16 %v6294_v21 }
0x2ee8   :  { %v6101_v17 = vpack.c.bf16 %v6296_v7, %v6295_v40  ;;  %v6574_v47 = vpop.eup %6573 }
0x2ee9   :  { %v2714_v42 = vpop.permute.xlu0 %2713  ;;  %v2555_v58 = vmul.f32 %v6574_v47, %v7356_v57 }
0x2eea   :  { %6103 = vmatprep.subr.msk.bf16.mxu1 %vm7129_vm3, %v6101_v17 }
0x2eeb   :  { %6106 = vmatpush3.bf16.xpose.msk.msra.mxu1 %vm7129_vm3, %v6101_v17 }
0x2eec   :  { %v6576_v14 = vpop.eup %6575  ;;  %6109 = vmatprep.subr.msk.bf16.mxu1 %vm7129_vm3, %v6107_v43 }
0x2eed   :  { %v2718_v33 = vpop.permute.xlu0 %2717  ;;  %v2554_v50 = vmul.f32 %v6576_v14, %v7360_v16  ;;  %v2724_v16 = vpop.permute.xlu1 %2723 }
0x2eef   :  { %5660 = vmatprep.mubr.msk.f32.mxu1 %vm2467_vm4, %v2554_v50 }
0x2ef0   :  { %5661 = vmatmul.mubr.msk.f32.gmra.mrb[38].mxu1 %vm2467_vm4, %v2555_v58 }
0x2ef1   :  { %v2722_v29 = vpop.permute.xlu0 %2721  ;;  %5679 = vmatprep.mubr.msk.f32.mxu1 %vm2313_vm2, %v2710_v38  ;;  %v6314_v1 = vpop.permute.xlu1 %6313 }
0x2ef2   :  { %v6316_v6 = vunpack.i.h.bf16 %v6314_v1  ;;  %v6315_v15 = vunpack.i.l.bf16 %v6314_v1 }
0x2ef3   :  { %6112 = vmatpush3.bf16.xpose.msk.msra.mxu1 %vm7129_vm3, %v6107_v43 }
0x2ef4   :  { %6115 = vmatprep.subr.msk.bf16.mxu1 %vm7129_vm3, %v6113_v31  ;;  %v6141_v18 = vpack.c.bf16 %v6316_v6, %v6315_v15 }
0x2ef5   :  { %v6309_v25 = vpop.permute.xlu0 %6308  ;;  %v6324_v37 = vpop.permute.xlu1 %6323 }
0x2ef6   :  { %v6311_v63 = vunpack.i.h.bf16 %v6309_v25  ;;  %v6310_v44 = vunpack.i.l.bf16 %v6309_v25  ;;  %v6326_v13 = vunpack.i.h.bf16 %v6324_v37  ;;  %v6325_v32 = vunpack.i.l.bf16 %v6324_v37 }
0x2ef8   :  { %v6135_v57 = vpack.c.bf16 %v6311_v63, %v6310_v44  ;;  %v6153_v27 = vpack.c.bf16 %v6326_v13, %v6325_v32 }
0x2ef9   :  { %v6319_v20 = vpop.permute.xlu0 %6318  ;;  %v3380_v30 = vpop.permute.xlu1 %3379 }
0x2efa   :  { %v6321_v23 = vunpack.i.h.bf16 %v6319_v20  ;;  %v6320_v26 = vunpack.i.l.bf16 %v6319_v20 }
0x2efb   :  { %6118 = vmatpush3.bf16.xpose.msk.msra.mxu1 %vm7129_vm3, %v6113_v31 }
0x2efc   :  { %6137 = vmatprep.subr.msk.bf16.mxu1 %vm7129_vm3, %v6135_v57  ;;  %v6147_v5 = vpack.c.bf16 %v6321_v23, %v6320_v26 }
0x2efd   :  { %v3378_v34 = vpop.permute.xlu0 %3377  ;;  %v3384_v38 = vpop.permute.xlu1 %3383 }
0x2f01   :  { %v3382_v36 = vpop.permute.xlu0 %3381  ;;  %v3388_v49 = vpop.permute.xlu1 %3387 }
0x2f02   :  { %5680 = vmatmul.mubr.msk.f32.vlgmr.msra.gmra.mrb[40].mxu1 %vm2313_vm2, %v2712_v39 }
0x2f03   :  { %5682 = vmatprep.mubr.msk.f32.mxu1 %vm2313_vm2, %v2714_v42  ;;  %6140 = vmatpush3.bf16.xpose.msk.msra.mxu1 %vm7129_vm3, %v6135_v57 }
0x2f04   :  { %6143 = vmatprep.subr.msk.bf16.mxu1 %vm7129_vm3, %v6141_v18 }
0x2f05   :  { %v3386_v3 = vpop.permute.xlu0 %3385  ;;  %v3392_v51 = vpop.permute.xlu1 %3391 }
0x2f06   :  { %5683 = vmatmul.mubr.msk.f32.gmra.mrb[42].mxu1 %vm2313_vm2, %v2716_v41 }
0x2f07   :  { %5685 = vmatprep.mubr.msk.f32.mxu1 %vm2313_vm2, %v2718_v33 }
0x2f09   :  { %v3390_v11 = vpop.permute.xlu0 %3389 }
0x2f0a   :  { %5686 = vmatmul.mubr.msk.f32.gmra.mrb[44].mxu1 %vm2313_vm2, %v2720_v59 }
0x2f0b   :  { %5688 = vmatprep.mubr.msk.f32.mxu1 %vm2313_vm2, %v2722_v29  ;;  %6146 = vmatpush3.bf16.xpose.msk.msra.mxu1 %vm7129_vm3, %v6141_v18 }
0x2f0c   :  { %6149 = vmatprep.subr.msk.bf16.mxu1 %vm7129_vm3, %v6147_v5 }
0x2f0e   :  { %5689 = vmatmul.mubr.msk.f32.gmra.mrb[46].mxu1 %vm2313_vm2, %v2724_v16 }
0x2f0f   :  { %5763 = vmatprep.mubr.msk.f32.mxu1 %vm2313_vm2, %v3378_v34 }
0x2f13   :  { %6152 = vmatpush3.bf16.xpose.msk.msra.mxu1 %vm7129_vm3, %v6147_v5 }
0x2f14   :  { %6155 = vmatprep.subr.msk.bf16.mxu1 %vm7129_vm3, %v6153_v27 }
0x2f1b   :  { %6158 = vmatpush3.bf16.xpose.msk.msra.mxu1 %vm7129_vm3, %v6153_v27 }
0x2f22   :  { %5764 = vmatmul.mubr.msk.f32.vlgmr.msra.gmra.mrb[48].mxu1 %vm2313_vm2, %v3380_v30 }
0x2f23   :  { %5766 = vmatprep.mubr.msk.f32.mxu1 %vm2313_vm2, %v3382_v36 }
0x2f26   :  { %5767 = vmatmul.mubr.msk.f32.gmra.mrb[50].mxu1 %vm2313_vm2, %v3384_v38 }
0x2f27   :  { %v7442_v39 = vpop.f32.mrb[32].mxu1  ;;  %5769 = vmatprep.mubr.msk.f32.mxu1 %vm2313_vm2, %v3386_v3 }
0x2f28   :  { %v7445_v21 = vpop.f32.mrb[33].mxu1 }
0x2f2a   :  { %5770 = vmatmul.mubr.msk.f32.gmra.mrb[52].mxu1 %vm2313_vm2, %v3388_v49 }
0x2f2b   :  { %5772 = vmatprep.mubr.msk.f32.mxu1 %vm2313_vm2, %v3390_v11 }
0x2f2e   :  { %5773 = vmatmul.mubr.msk.f32.gmra.mrb[54].mxu1 %vm2313_vm2, %v3392_v51 }
0x2f56   :  { %v7450_v7 = vpop.f32.mrb[34].mxu1 }
0x2f57   :  { %v7452_v40 = vpop.f32.mrb[35].mxu1 }
0x2f5d   :  { %v7454_v17 = vpop.f32.mrb[36].mxu1 }
0x2f5e   :  { %v7456_v41 = vpop.f32.mrb[37].mxu1 }
0x2fc3   :  { %v7458_v42 = vpop.f32.mrb[38].mxu1 }
0x2fc4   :  { %v7460_v43 = vpop.f32.mrb[39].mxu1 }
0x2fd5   :  { %v5681_v47 = vpop.f32.mrb[40].mxu1 }
0x2fd6   :  { %v2845_v14 = vadd.f32 %v5681_v47, %v7256_v19  ;;  %v2839_v33 = vpop.f32.mrb[41].mxu1 }
0x2fd7   :  { %v2840_v50 = vadd.f32 %v2839_v33, %v7218_v12 }
0x2fd8   :  { %v2881_v56 = vsel %vm2467_vm4, %v2845_v14, -inf }
0x2fd9   :  { %2882 = vmax.xlane.f32.xlu1 %v2881_v56  ;;  %v5684_v10 = vpop.f32.mrb[42].mxu1  ;;  %v2878_v58 = vsel %vm2467_vm4, %v2840_v50, -inf }
0x2fda   :  { %v2849_v59 = vpop.f32.mrb[43].mxu1  ;;  %2879 = vmax.xlane.f32.xlu0 %v2878_v58  ;;  %v2855_v31 = vadd.f32 %v5684_v10, %v7233_v2 }
0x2fdb   :  { %v2850_v29 = vadd.f32 %v2849_v59, %v7224_v0 }
0x2fdc   :  { %v2887_v15 = vsel %vm2467_vm4, %v2855_v31, -inf }
0x2fdd   :  { %v5687_v16 = vpop.f32.mrb[44].mxu1  ;;  %v2884_v25 = vsel %vm2467_vm4, %v2850_v29, -inf }
0x2fde   :  { %v2859_v63 = vpop.f32.mrb[45].mxu1  ;;  %2885 = vmax.xlane.f32.xlu0 %v2884_v25  ;;  %v2865_v57 = vadd.f32 %v5687_v16, %v7243_v9 }
0x2fdf   :  { %v2860_v44 = vadd.f32 %v2859_v63, %v7262_v28 }
0x2fe0   :  { %v2893_v5 = vsel %vm2467_vm4, %v2865_v57, -inf }
0x2fe1   :  { %v5690_v1 = vpop.f32.mrb[46].mxu1  ;;  %v2890_v6 = vsel %vm2467_vm4, %v2860_v44, -inf }
0x2fe2   :  { %v2869_v18 = vpop.f32.mrb[47].mxu1  ;;  %2891 = vmax.xlane.f32.xlu1 %v2890_v6  ;;  %2888 = vmax.xlane.f32.xlu0 %v2887_v15  ;;  %v2875_v23 = vadd.f32 %v5690_v1, %v7293_v54 }
0x2fe3   :  { %v2870_v20 = vadd.f32 %v2869_v18, %v7298_v55 }
0x2fe4   :  { %v2899_v37 = vsel %vm2467_vm4, %v2875_v23, -inf }
0x2fe5   :  { %v2896_v26 = vsel %vm2467_vm4, %v2870_v20, -inf }
0x2fe6   :  { %2897 = vmax.xlane.f32.xlu1 %v2896_v26  ;;  %2894 = vmax.xlane.f32.xlu0 %v2893_v5 }
0x2fea   :  { %2900 = vmax.xlane.f32.xlu0 %v2899_v37 }
0x2ff5   :  { %v7478_v13 = vpop.f32.mrb[48].mxu1 }
0x2ff6   :  { %v7480_v32 = vpop.f32.mrb[49].mxu1 }
0x2ff7   :  { %6328 = vrot.lane.b32.xlu1 %v7133_v61, %s6705_s21 }
0x2ff9   :  { %v7484_v34 = vpop.f32.mrb[50].mxu1 }
0x2ffa   :  { %v7486_v27 = vpop.f32.mrb[51].mxu1 }
0x2ffd   :  { %v7488_v30 = vpop.f32.mrb[52].mxu1 }
0x2ffe   :  { %v7490_v36 = vpop.f32.mrb[53].mxu1 }
0x3001   :  { %v7492_v38 = vpop.f32.mrb[54].mxu1 }
0x3002   :  { %v7494_v3 = vpop.f32.mrb[55].mxu1 }
0x3066   :  { %v2883_v49 = vpop.xlane.xlu1 %2882 }
0x3067   :  { %v2903_v11 = vsub.f32 %v2845_v14, %v2883_v49  ;;  %v2880_v51 = vpop.xlane.xlu0 %2879 }
0x3068   :  { %v2902_v47 = vsub.f32 %v2840_v50, %v2880_v51 }
0x3069   :  { %v2912_v33 = vmul.f32 1.442695, %v2903_v11 }
0x306a   :  { %v2910_v56 = vmul.f32 1.442695, %v2902_v47 }
0x306b   :  { %6577 = vpow2.f32 %v2912_v33  ;;  %v2886_v10 = vpop.xlane.xlu0 %2885 }
0x306c   :  { %6579 = vpow2.f32 %v2910_v56  ;;  %v2904_v58 = vsub.f32 %v2850_v29, %v2886_v10 }
0x306e   :  { %v2914_v59 = vmul.f32 1.442695, %v2904_v58 }
0x306f   :  { %v2892_v16 = vpop.xlane.xlu1 %2891  ;;  %v2889_v25 = vpop.xlane.xlu0 %2888 }
0x3070   :  { %6581 = vpow2.f32 %v2914_v59  ;;  %v2906_v63 = vsub.f32 %v2860_v44, %v2892_v16  ;;  %v2905_v1 = vsub.f32 %v2855_v31, %v2889_v25 }
0x3072   :  { %v2918_v6 = vmul.f32 1.442695, %v2906_v63  ;;  %v2916_v15 = vmul.f32 1.442695, %v2905_v1 }
0x3073   :  { %v2898_v18 = vpop.xlane.xlu1 %2897  ;;  %v2895_v26 = vpop.xlane.xlu0 %2894 }
0x3074   :  { %6583 = vpow2.f32 %v2918_v6  ;;  %v2907_v14 = vsub.f32 %v2865_v57, %v2895_v26  ;;  %v2908_v49 = vsub.f32 %v2870_v20, %v2898_v18 }
0x3075   :  { %v7496_v5 = vpop.eup %6577  ;;  %6585 = vpow2.f32 %v2916_v15 }
0x3076   :  { %v7498_v50 = vpop.eup %6579  ;;  %v2920_v37 = vmul.f32 1.442695, %v2907_v14  ;;  %v2929_v29 = vsel %vm2467_vm4, %v7496_v5, 0.0  ;;  %v2922_v58 = vmul.f32 1.442695, %v2908_v49  ;;  %v7548_v14 = vadd.f32 %v7478_v13, %v7256_v19 }
0x3077   :  { %v6329_v11 = vpop.permute.xlu1 %6328  ;;  %2930 = vadd.xlane.f32.xlu0 %v2929_v29  ;;  %v2901_v44 = vpop.xlane.xlu0 %2900  ;;  %v2926_v31 = vsel %vm2467_vm4, %v7498_v50, 0.0  ;;  %v7556_v29 = vadd.f32 %v7490_v36, %v7262_v28  ;;  %v7574_v13 = vadd.f32 %v7484_v34, %v7233_v2  ;;  %v7588_v2 = vadd.f32 %v7492_v38, %v7293_v54 }
0x3078   :  { %v6331_v51 = vunpack.i.h.bf16 %v6329_v11  ;;  %v6330_v47 = vunpack.i.l.bf16 %v6329_v11  ;;  %v2909_v33 = vsub.f32 %v2875_v23, %v2901_v44  ;;  %2927 = vadd.xlane.f32.xlu1 %v2926_v31  ;;  %6587 = vpow2.f32 %v2920_v37 }
0x3079   :  { %v7552_v37 = vadd.f32 %v7480_v32, %v7218_v12  ;;  %v3549_v49 = vsel %vm2467_vm4, %v7548_v14, -inf  ;;  %v7562_v11 = vadd.f32 %v7486_v27, %v7224_v0  ;;  %v7568_v12 = vadd.f32 %v7494_v3, %v7298_v55 }
0x307a   :  { %v7504_v57 = vpop.eup %6581  ;;  %v6119_v56 = vpack.c.bf16 %v6331_v51, %v6330_v47  ;;  %v2924_v10 = vmul.f32 1.442695, %v2909_v33  ;;  %v3558_v28 = vsel %vm2467_vm4, %v7556_v29, -inf  ;;  %v7582_v27 = vadd.f32 %v7488_v30, %v7243_v9 }
0x307b   :  { %v2932_v59 = vsel %vm2467_vm4, %v7504_v57, 0.0  ;;  %v3546_v19 = vsel %vm2467_vm4, %v7552_v37, -inf  ;;  %v3552_v0 = vsel %vm2467_vm4, %v7562_v11, -inf  ;;  %v3564_v32 = vsel %vm2467_vm4, %v7568_v12, -inf }
0x307c   :  { %6589 = vpow2.f32 %v2924_v10  ;;  %6120 = vmatprep.subr.bf16.mxu0 %v6119_v56  ;;  %2933 = vadd.xlane.f32.xlu1 %v2932_v59  ;;  %v3555_v55 = vsel %vm2467_vm4, %v7574_v13, -inf  ;;  %v3561_v34 = vsel %vm2467_vm4, %v7582_v27, -inf  ;;  %v3567_v36 = vsel %vm2467_vm4, %v7588_v2, -inf }
0x307d   :  { %6122 = vmatpush3.bf16.msra.mxu0 %v6119_v56  ;;  %6591 = vpow2.f32 %v2922_v58 }
0x307e   :  { %v7508_v20 = vpop.eup %6583 }
0x307f   :  { %v7510_v16 = vpop.eup %6585  ;;  %v2938_v23 = vsel %vm2467_vm4, %v7508_v20, 0.0 }
0x3080   :  { %2939 = vadd.xlane.f32.xlu1 %v2938_v23  ;;  %v2935_v25 = vsel %vm2467_vm4, %v7510_v16, 0.0 }
0x3081   :  { %2936 = vadd.xlane.f32.xlu0 %v2935_v25 }
0x3082   :  { %v7516_v63 = vpop.eup %6587 }
0x3083   :  { %v2941_v1 = vsel %vm2467_vm4, %v7516_v63, 0.0 }
0x3085   :  { %2942 = vadd.xlane.f32.xlu0 %v2941_v1 }
0x3086   :  { %v7520_v6 = vpop.eup %6589 }
0x3087   :  { %v2947_v15 = vsel %vm2467_vm4, %v7520_v6, 0.0  ;;  %v7524_v18 = vpop.eup %6591 }
0x3088   :  { %v2944_v26 = vsel %vm2467_vm4, %v7524_v18, 0.0 }
0x3089   :  { %2948 = vadd.xlane.f32.xlu0 %v2947_v15 }
0x308d   :  { %2945 = vadd.xlane.f32.xlu0 %v2944_v26 }
0x3091   :  { %6338 = vrot.lane.b32.xlu1 %v7144_v8, %s6705_s21 }
0x3095   :  { %6343 = vrot.lane.b32.xlu1 %v7150_v4, %s6705_s21 }
0x3099   :  { %6348 = vrot.lane.b32.xlu1 %v7133_v61, %s6706_s22 }
0x309d   :  { %6353 = vrot.lane.b32.xlu1 %v7140_v62, %s6706_s22 }
0x30a1   :  { %6363 = vrot.lane.b32.xlu1 %v7150_v4, %s6706_s22 }
0x30a3   :  { %6333 = vrot.lane.b32.xlu0 %v7140_v62, %s6705_s21 }
0x30a5   :  { %3926 = vrot.lane.b32.xlu1 %v7187_v45, %s6706_s22 }
0x30a7   :  { %6358 = vrot.lane.b32.xlu0 %v7144_v8, %s6706_s22 }
0x30a9   :  { %3930 = vrot.lane.b32.xlu1 %v7195_v46, %s6706_s22 }
0x30ab   :  { %3924 = vrot.lane.b32.xlu0 %v7189_v24, %s6706_s22 }
0x30ad   :  { %3934 = vrot.lane.b32.xlu1 %v7204_v22, %s6706_s22 }
0x30af   :  { %3928 = vrot.lane.b32.xlu0 %v7197_v35, %s6706_s22 }
0x30b1   :  { %3938 = vrot.lane.b32.xlu1 %v7282_v52, %s6706_s22 }
0x30b3   :  { %3932 = vrot.lane.b32.xlu0 %v7206_v48, %s6706_s22 }
0x30b7   :  { %3936 = vrot.lane.b32.xlu0 %v7284_v53, %s6706_s22 }
0x30d5   :  { %3550 = vmax.xlane.f32.xlu1 %v3549_v49 }
0x30d6   :  { %3547 = vmax.xlane.f32.xlu0 %v3546_v19 }
0x30d9   :  { %3559 = vmax.xlane.f32.xlu1 %v3558_v28 }
0x30da   :  { %3553 = vmax.xlane.f32.xlu0 %v3552_v0 }
0x30dd   :  { %3565 = vmax.xlane.f32.xlu1 %v3564_v32 }
0x30de   :  { %3556 = vmax.xlane.f32.xlu0 %v3555_v55 }
0x30e2   :  { %3562 = vmax.xlane.f32.xlu0 %v3561_v34 }
0x30e6   :  { %3568 = vmax.xlane.f32.xlu0 %v3567_v36 }
0x30ee   :  { %6368 = vrot.lane.b32.xlu1 %v7133_v61, %s6707_s23 }
0x3104   :  { %v2931_v3 = vpop.xlane.xlu0 %2930 }
0x3105   :  { %v2928_v9 = vpop.xlane.xlu1 %2927 }
0x3106   :  { %6593 = vrcp.f32 %v2928_v9 }
0x3107   :  { %6595 = vrcp.f32 %v2931_v3 }
0x3109   :  { %v2934_v30 = vpop.xlane.xlu1 %2933 }
0x310a   :  { %6597 = vrcp.f32 %v2934_v30 }
0x310d   :  { %v2940_v44 = vpop.xlane.xlu1 %2939 }
0x310e   :  { %v2937_v31 = vpop.xlane.xlu0 %2936 }
0x310f   :  { %6599 = vrcp.f32 %v2937_v31 }
0x3110   :  { %v6594_v54 = vpop.eup %6593  ;;  %6601 = vrcp.f32 %v2940_v44 }
0x3111   :  { %v6339_v38 = vpop.permute.xlu1 %6338  ;;  %v2958_v51 = vmul.f32 %v6594_v54, %v7498_v50  ;;  %v6596_v30 = vpop.eup %6595 }
0x3112   :  { %v2943_v47 = vpop.xlane.xlu0 %2942  ;;  %v6341_v15 = vunpack.i.h.bf16 %v6339_v38  ;;  %v6340_v26 = vunpack.i.l.bf16 %v6339_v38 }
0x3113   :  { %5707 = vmatprep.mubr.msk.f32.mxu0 %vm2467_vm4, %v2958_v51  ;;  %6603 = vrcp.f32 %v2943_v47 }
0x3114   :  { %v6127_v34 = vpack.c.bf16 %v6341_v15, %v6340_v26 }
0x3115   :  { %v6344_v33 = vpop.permute.xlu1 %6343 }
0x3116   :  { %v2949_v56 = vpop.xlane.xlu0 %2948  ;;  %v6346_v9 = vunpack.i.h.bf16 %v6344_v33  ;;  %v6345_v54 = vunpack.i.l.bf16 %v6344_v33  ;;  %v6598_v33 = vpop.eup %6597 }
0x3117   :  { %v2960_v26 = vmul.f32 %v6598_v33, %v7504_v57 }
0x3118   :  { %v6131_v3 = vpack.c.bf16 %v6346_v9, %v6345_v54 }
0x3119   :  { %v6349_v10 = vpop.permute.xlu1 %6348 }
0x311a   :  { %v6351_v58 = vunpack.i.h.bf16 %v6349_v10  ;;  %v6350_v59 = vunpack.i.l.bf16 %v6349_v10  ;;  %v2946_v23 = vpop.xlane.xlu0 %2945 }
0x311b   :  { %6605 = vrcp.f32 %v2946_v23 }
0x311c   :  { %v6175_v25 = vpack.c.bf16 %v6351_v58, %v6350_v59  ;;  %6607 = vrcp.f32 %v2949_v56 }
0x311d   :  { %v6354_v1 = vpop.permute.xlu1 %6353 }
0x311e   :  { %v6356_v49 = vunpack.i.h.bf16 %v6354_v1  ;;  %v6355_v19 = vunpack.i.l.bf16 %v6354_v1  ;;  %v6334_v28 = vpop.permute.xlu0 %6333  ;;  %6177 = vmatprep.subr.msk.bf16.mxu1 %vm7129_vm3, %v6175_v25  ;;  %v6600_v1 = vpop.eup %6599 }
0x311f   :  { %v6336_v50 = vunpack.i.h.bf16 %v6334_v28  ;;  %v6335_v0 = vunpack.i.l.bf16 %v6334_v28  ;;  %6180 = vmatpush3.bf16.xpose.msk.msra.mxu1 %vm7129_vm3, %v6175_v25  ;;  %v2959_v25 = vmul.f32 %v6596_v30, %v7496_v5  ;;  %v2961_v47 = vmul.f32 %v6600_v1, %v7510_v16 }
0x3120   :  { %v6181_v32 = vpack.c.bf16 %v6356_v49, %v6355_v19  ;;  %v6602_v49 = vpop.eup %6601 }
0x3121   :  { %v6123_v55 = vpack.c.bf16 %v6336_v50, %v6335_v0  ;;  %v6364_v59 = vpop.permute.xlu1 %6363  ;;  %v6604_v56 = vpop.eup %6603  ;;  %v2962_v5 = vmul.f32 %v6602_v49, %v7508_v20 }
0x3122   :  { %v6359_v36 = vpop.permute.xlu0 %6358  ;;  %6183 = vmatprep.subr.msk.bf16.mxu1 %vm7129_vm3, %v6181_v32  ;;  %v6366_v31 = vunpack.i.h.bf16 %v6364_v59  ;;  %v6365_v44 = vunpack.i.l.bf16 %v6364_v59  ;;  %v2963_v57 = vmul.f32 %v6604_v56, %v7516_v63 }
0x3123   :  { %v6361_v38 = vunpack.i.h.bf16 %v6359_v36  ;;  %v6360_v51 = vunpack.i.l.bf16 %v6359_v36  ;;  %6124 = vmatprep.subr.bf16.mxu0 %v6123_v55 }
0x3124   :  { %6126 = vmatpush3.bf16.msra.mxu0 %v6123_v55  ;;  %v6193_v15 = vpack.c.bf16 %v6366_v31, %v6365_v44 }
0x3125   :  { %6128 = vmatprep.subr.bf16.mxu0 %v6127_v34  ;;  %v6187_v10 = vpack.c.bf16 %v6361_v38, %v6360_v51  ;;  %v6606_v23 = vpop.eup %6605  ;;  %v3927_v50 = vpop.permute.xlu1 %3926 }
0x3126   :  { %v3925_v58 = vpop.permute.xlu0 %3924  ;;  %v6608_v19 = vpop.eup %6607  ;;  %v2964_v28 = vmul.f32 %v6606_v23, %v7524_v18 }
0x3127   :  { %5833 = vmatprep.mubr.msk.f32.mxu1 %vm2313_vm2, %v3925_v58  ;;  %6186 = vmatpush3.bf16.xpose.msk.msra.mxu1 %vm7129_vm3, %v6181_v32  ;;  %v2965_v20 = vmul.f32 %v6608_v19, %v7520_v6 }
0x3128   :  { %6130 = vmatpush3.bf16.msra.mxu0 %v6127_v34  ;;  %6189 = vmatprep.subr.msk.bf16.mxu1 %vm7129_vm3, %v6187_v10 }
0x3129   :  { %6132 = vmatprep.subr.bf16.mxu0 %v6131_v3  ;;  %v3931_v0 = vpop.permute.xlu1 %3930 }
0x312a   :  { %v3929_v16 = vpop.permute.xlu0 %3928 }
0x312c   :  { %6134 = vmatpush3.bf16.msra.mxu0 %v6131_v3 }
0x312d   :  { %v3935_v18 = vpop.permute.xlu1 %3934 }
0x312e   :  { %v3933_v63 = vpop.permute.xlu0 %3932 }
0x312f   :  { %5708 = vmatmul.mubr.msk.f32.vlgmr.msra.gmra.mrb[40].mxu0 %vm2467_vm4, %v2959_v25  ;;  %6192 = vmatpush3.bf16.xpose.msk.msra.mxu1 %vm7129_vm3, %v6187_v10 }
0x3130   :  { %5710 = vmatprep.mubr.msk.f32.mxu0 %vm2467_vm4, %v2960_v26  ;;  %6195 = vmatprep.subr.msk.bf16.mxu1 %vm7129_vm3, %v6193_v15 }
0x3131   :  { %v3939_v6 = vpop.permute.xlu1 %3938 }
0x3132   :  { %v3937_v60 = vpop.permute.xlu0 %3936 }
0x3133   :  { %5711 = vmatmul.mubr.msk.f32.gmra.mrb[42].mxu0 %vm2467_vm4, %v2961_v47 }
0x3134   :  { %5713 = vmatprep.mubr.msk.f32.mxu0 %vm2467_vm4, %v2962_v5 }
0x3137   :  { %5714 = vmatmul.mubr.msk.f32.gmra.mrb[44].mxu0 %vm2467_vm4, %v2963_v57  ;;  %6198 = vmatpush3.bf16.xpose.msk.msra.mxu1 %vm7129_vm3, %v6193_v15 }
0x3138   :  { %5716 = vmatprep.mubr.msk.f32.mxu0 %vm2467_vm4, %v2964_v28 }
0x313b   :  { %5717 = vmatmul.mubr.msk.f32.gmra.mrb[46].mxu0 %vm2467_vm4, %v2965_v20  ;;  %v7673_v20 = vld [vmem:[%s7986_s3 + $0x70] sm:$0xff] }
0x313c   :  { %5719 = vmatprep.subr.mxu0 %v7673_v20 }
0x313d   :  { %5720 = vmatpush3.msra.mxu0 %v7673_v20 }
0x313e   :  { %5834 = vmatmul.mubr.msk.f32.vlgmr.msra.gmra.mrb[56].mxu1 %vm2313_vm2, %v3927_v50 }
0x313f   :  { %5836 = vmatprep.mubr.msk.f32.mxu1 %vm2313_vm2, %v3929_v16 }
0x3142   :  { %5837 = vmatmul.mubr.msk.f32.gmra.mrb[58].mxu1 %vm2313_vm2, %v3931_v0 }
0x3143   :  { %5839 = vmatprep.mubr.msk.f32.mxu1 %vm2313_vm2, %v3933_v63  ;;  %v7684_v63 = vld [vmem:[%s7986_s3 + $0x30] sm:$0xff] }
0x3144   :  { %5733 = vmatprep.subr.mxu0 %v7684_v63 }
0x3146   :  { %5840 = vmatmul.mubr.msk.f32.gmra.mrb[60].mxu1 %vm2313_vm2, %v3935_v18 }
0x3147   :  { %5842 = vmatprep.mubr.msk.f32.mxu1 %vm2313_vm2, %v3937_v60 }
0x314a   :  { %5843 = vmatmul.mubr.msk.f32.gmra.mrb[62].mxu1 %vm2313_vm2, %v3939_v6 }
0x3162   :  { %v3551_v32 = vpop.xlane.xlu1 %3550 }
0x3163   :  { %v3571_v55 = vsub.f32 %v7548_v14, %v3551_v32  ;;  %v3548_v34 = vpop.xlane.xlu0 %3547 }
0x3164   :  { %v3570_v36 = vsub.f32 %v7552_v37, %v3548_v34 }
0x3165   :  { %v3580_v9 = vmul.f32 1.442695, %v3571_v55 }
0x3166   :  { %v3578_v54 = vmul.f32 1.442695, %v3570_v36  ;;  %v3560_v38 = vpop.xlane.xlu1 %3559 }
0x3167   :  { %6609 = vpow2.f32 %v3580_v9  ;;  %v3574_v51 = vsub.f32 %v7556_v29, %v3560_v38  ;;  %v3554_v10 = vpop.xlane.xlu0 %3553 }
0x3168   :  { %6611 = vpow2.f32 %v3578_v54  ;;  %v3572_v58 = vsub.f32 %v7562_v11, %v3554_v10 }
0x3169   :  { %v3586_v3 = vmul.f32 1.442695, %v3574_v51 }
0x316a   :  { %v3582_v59 = vmul.f32 1.442695, %v3572_v58  ;;  %v3566_v44 = vpop.xlane.xlu1 %3565 }
0x316b   :  { %v3557_v30 = vpop.xlane.xlu0 %3556  ;;  %v3576_v1 = vsub.f32 %v7568_v12, %v3566_v44 }
0x316c   :  { %6613 = vpow2.f32 %v3582_v59  ;;  %v3573_v31 = vsub.f32 %v7574_v13, %v3557_v30 }
0x316d   :  { %6615 = vpow2.f32 %v3586_v3  ;;  %v3590_v47 = vmul.f32 1.442695, %v3576_v1  ;;  %v6689_v1 = vld [vmem:[%s7990_s2 + $0x8] sm:$0xff] }
0x316e   :  { %v3584_v14 = vmul.f32 1.442695, %v3573_v31  ;;  %v6369_v60 = vpop.permute.xlu1 %6368 }
0x316f   :  { %v3563_v37 = vpop.xlane.xlu0 %3562  ;;  %v6371_v6 = vunpack.i.h.bf16 %v6369_v60  ;;  %v6370_v32 = vunpack.i.l.bf16 %v6369_v60 }
0x3170   :  { %6617 = vpow2.f32 %v3584_v14  ;;  %v3575_v33 = vsub.f32 %v7582_v27, %v3563_v37 }
0x3171   :  { %v7642_v25 = vpop.eup %6609  ;;  %v6159_v9 = vpack.c.bf16 %v6371_v6, %v6370_v32 }
0x3172   :  { %v7644_v29 = vpop.eup %6611  ;;  %v3588_v11 = vmul.f32 1.442695, %v3575_v33  ;;  %v3597_v15 = vsel %vm2467_vm4, %v7642_v25, 0.0 }
0x3173   :  { %v3569_v26 = vpop.xlane.xlu0 %3568  ;;  %3598 = vadd.xlane.f32.xlu0 %v3597_v15  ;;  %v3594_v13 = vsel %vm2467_vm4, %v7644_v29, 0.0 }
0x3174   :  { %6619 = vpow2.f32 %v3588_v11  ;;  %v3577_v49 = vsub.f32 %v7588_v2, %v3569_v26  ;;  %3595 = vadd.xlane.f32.xlu1 %v3594_v13  ;;  %v6690_v26 = vld [vmem:[%s7990_s2] sm:$0xff] }
0x3176   :  { %v7652_v27 = vpop.eup %6613  ;;  %v3592_v56 = vmul.f32 1.442695, %v3577_v49 }
0x3177   :  { %v3600_v12 = vsel %vm2467_vm4, %v7652_v27, 0.0  ;;  %v7656_v5 = vpop.eup %6615 }
0x3178   :  { %6621 = vpow2.f32 %v3592_v56  ;;  %3601 = vadd.xlane.f32.xlu1 %v3600_v12  ;;  %v3606_v57 = vsel %vm2467_vm4, %v7656_v5, 0.0  ;;  %v6691_v12 = vld [vmem:[%s7990_s2 + $0x18] sm:$0xff] }
0x3179   :  { %6623 = vpow2.f32 %v3590_v47 }
0x317a   :  { %v7658_v23 = vpop.eup %6617 }
0x317b   :  { %v3603_v2 = vsel %vm2467_vm4, %v7658_v23, 0.0 }
0x317c   :  { %3607 = vadd.xlane.f32.xlu1 %v3606_v57  ;;  %3604 = vadd.xlane.f32.xlu0 %v3603_v2 }
0x317e   :  { %v7664_v19 = vpop.eup %6619 }
0x317f   :  { %v3609_v28 = vsel %vm2467_vm4, %v7664_v19, 0.0 }
0x3180   :  { %3610 = vadd.xlane.f32.xlu0 %v3609_v28 }
0x3182   :  { %v7668_v50 = vpop.eup %6621 }
0x3183   :  { %v3615_v16 = vsel %vm2467_vm4, %v7668_v50, 0.0  ;;  %v7678_v0 = vpop.eup %6623 }
0x3184   :  { %3616 = vadd.xlane.f32.xlu0 %v3615_v16  ;;  %v3612_v18 = vsel %vm2467_vm4, %v7678_v0, 0.0 }
0x3188   :  { %3613 = vadd.xlane.f32.xlu0 %v3612_v18 }
0x318d   :  { %6378 = vrot.lane.b32.xlu1 %v7144_v8, %s6707_s23 }
0x3191   :  { %6383 = vrot.lane.b32.xlu1 %v7150_v4, %s6707_s23 }
0x319e   :  { %6373 = vrot.lane.b32.xlu0 %v7140_v62, %s6707_s23 }
0x3200   :  { %v3599_v54 = vpop.xlane.xlu0 %3598 }
0x3201   :  { %v3596_v36 = vpop.xlane.xlu1 %3595 }
0x3202   :  { %v5709_v55 = vpop.f32.mrb[40].mxu0  ;;  %6625 = vrcp.f32 %v3596_v36 }
0x3203   :  { %v3080_v34 = vpop.f32.mrb[41].mxu0  ;;  %6627 = vrcp.f32 %v3599_v54  ;;  %v6695_v54 = vld [vmem:[%s7990_s2 + $0x38] sm:$0xff] }
0x3204   :  { %5721 = vmatprep.mubr.msk.f32.mxu0 %vm2313_vm2, %v3080_v34  ;;  %v6693_v34 = vld [vmem:[%s7990_s2 + $0x28] sm:$0xff] }
0x3205   :  { %5722 = vmatmul.mubr.msk.f32.vlgmr.msra.gmra.mrb[48].mxu0 %vm2313_vm2, %v5709_v55  ;;  %v3602_v58 = vpop.xlane.xlu1 %3601 }
0x3206   :  { %5734 = vmatpush3.msra.mxu0 %v7684_v63  ;;  %v5712_v38 = vpop.f32.mrb[42].mxu0  ;;  %6629 = vrcp.f32 %v3602_v58 }
0x3207   :  { %6160 = vmatprep.subr.bf16.mxu0 %v6159_v9  ;;  %v3090_v51 = vpop.f32.mrb[43].mxu0 }
0x3208   :  { %5724 = vmatprep.mubr.msk.f32.mxu0 %vm2313_vm2, %v3090_v51 }
0x3209   :  { %v7699_v10 = vpop.xlane.xlu0 %3604  ;;  %5725 = vmatmul.mubr.msk.f32.gmra.mrb[50].mxu0 %vm2313_vm2, %v5712_v38  ;;  %v7706_v44 = vpop.xlane.xlu1 %3607 }
0x320a   :  { %v5715_v3 = vpop.f32.mrb[44].mxu0  ;;  %6631 = vrcp.f32 %v7699_v10 }
0x320b   :  { %v3100_v59 = vpop.f32.mrb[45].mxu0  ;;  %6633 = vrcp.f32 %v7706_v44 }
0x320c   :  { %5727 = vmatprep.mubr.msk.f32.mxu0 %vm2313_vm2, %v3100_v59 }
0x320d   :  { %v7703_v30 = vpop.xlane.xlu0 %3610  ;;  %5728 = vmatmul.mubr.msk.f32.gmra.mrb[52].mxu0 %vm2313_vm2, %v5715_v3  ;;  %v6379_v56 = vpop.permute.xlu1 %6378 }
0x320e   :  { %v5718_v31 = vpop.f32.mrb[46].mxu0  ;;  %v6381_v38 = vunpack.i.h.bf16 %v6379_v56  ;;  %v6380_v51 = vunpack.i.l.bf16 %v6379_v56  ;;  %6635 = vrcp.f32 %v7703_v30 }
0x320f   :  { %v3110_v14 = vpop.f32.mrb[47].mxu0 }
0x3210   :  { %5730 = vmatprep.mubr.msk.f32.mxu0 %vm2313_vm2, %v3110_v14  ;;  %v6626_v14 = vpop.eup %6625 }
0x3211   :  { %v7709_v37 = vpop.xlane.xlu0 %3616  ;;  %5731 = vmatmul.mubr.msk.f32.gmra.mrb[54].mxu0 %vm2313_vm2, %v5718_v31  ;;  %v5835_v33 = vpop.f32.mrb[56].mxu1 }
0x3212   :  { %5735 = vmatprep.mubr.msk.f32.mxu0 %vm2313_vm2, %v7445_v21  ;;  %v7717_v11 = vadd.f32 %v6689_v1, %v5835_v33  ;;  %v4054_v15 = vpop.f32.mrb[57].mxu1  ;;  %v6384_v59 = vpop.permute.xlu1 %6383 }
0x3213   :  { %v7722_v13 = vadd.f32 %v6690_v26, %v4054_v15  ;;  %v6386_v58 = vunpack.i.h.bf16 %v6384_v59 }
0x3214   :  { %v4096_v21 = vsel %vm2467_vm4, %v7717_v11, -inf }
0x3215   :  { %v7724_v49 = vpop.xlane.xlu0 %3613  ;;  %5736 = vmatmul.mubr.msk.f32.vlgmr.msra.gmra.mrb[48].mxu0 %vm2313_vm2, %v7442_v39  ;;  %v5838_v47 = vpop.f32.mrb[58].mxu1  ;;  %4097 = vmax.xlane.f32.xlu0 %v4096_v21  ;;  %v4093_v28 = vsel %vm2467_vm4, %v7722_v13, -inf  ;;  %v6692_v39 = vld [vmem:[%s7990_s2 + $0x10] sm:$0xff]  ;;  %v6167_v21 = vpack.c.bf16 %v6381_v38, %v6380_v51 }
0x3216   :  { %6162 = vmatpush3.bf16.msra.mxu0 %v6159_v9  ;;  %v7733_v57 = vadd.f32 %v6691_v12, %v5838_v47  ;;  %v4064_v2 = vpop.f32.mrb[59].mxu1  ;;  %5738 = vmatprep.mubr.msk.f32.mxu0 %vm2313_vm2, %v7452_v40  ;;  %v6385_v47 = vunpack.i.l.bf16 %v6384_v59  ;;  %v3626_v12 = vmul.f32 %v6626_v14, %v7644_v29  ;;  %6637 = vrcp.f32 %v7724_v49  ;;  %v6628_v29 = vpop.eup %6627 }
0x3217   :  { %v7742_v16 = vadd.f32 %v6692_v39, %v4064_v2  ;;  %4094 = vmax.xlane.f32.xlu1 %v4093_v28  ;;  %v6630_v10 = vpop.eup %6629  ;;  %6639 = vrcp.f32 %v7709_v37 }
0x3218   :  { %v4102_v18 = vsel %vm2467_vm4, %v7733_v57, -inf  ;;  %v6171_v28 = vpack.c.bf16 %v6386_v58, %v6385_v47  ;;  %v6632_v44 = vpop.eup %6631  ;;  %v3628_v39 = vmul.f32 %v6630_v10, %v7652_v27 }
0x3219   :  { %v6374_v60 = vpop.permute.xlu0 %6373  ;;  %5739 = vmatmul.mubr.msk.f32.gmra.mrb[50].mxu0 %vm2313_vm2, %v7450_v7  ;;  %v5841_v6 = vpop.f32.mrb[60].mxu1  ;;  %v4099_v32 = vsel %vm2467_vm4, %v7742_v16, -inf  ;;  %4103 = vmax.xlane.f32.xlu0 %v4102_v18  ;;  %v6694_v7 = vld [vmem:[%s7990_s2 + $0x20] sm:$0xff]  ;;  %v3629_v30 = vmul.f32 %v6632_v44, %v7658_v23  ;;  %v7812_v23 = vld [vmem:[%s7986_s3 + $0xb0] sm:$0xff] }
0x321a   :  { %v6376_v55 = vunpack.i.h.bf16 %v6374_v60  ;;  %v6375_v40 = vunpack.i.l.bf16 %v6374_v60  ;;  %5741 = vmatprep.mubr.msk.f32.mxu0 %vm2313_vm2, %v7456_v41  ;;  %v7755_v36 = vadd.f32 %v6693_v34, %v5841_v6  ;;  %v4074_v9 = vpop.f32.mrb[61].mxu1  ;;  %v6634_v18 = vpop.eup %6633 }
0x321b   :  { %v7760_v3 = vadd.f32 %v6694_v7, %v4074_v9  ;;  %4100 = vmax.xlane.f32.xlu1 %v4099_v32  ;;  %v6636_v60 = vpop.eup %6635  ;;  %v3630_v49 = vmul.f32 %v6634_v18, %v7656_v5 }
0x321c   :  { %v6163_v31 = vpack.c.bf16 %v6376_v55, %v6375_v40  ;;  %v4108_v41 = vsel %vm2467_vm4, %v7755_v36, -inf }
0x321d   :  { %5742 = vmatmul.mubr.msk.f32.gmra.mrb[52].mxu0 %vm2313_vm2, %v7454_v17  ;;  %v5844_v33 = vpop.f32.mrb[62].mxu1  ;;  %v4105_v1 = vsel %vm2467_vm4, %v7760_v3, -inf  ;;  %4109 = vmax.xlane.f32.xlu0 %v4108_v41  ;;  %v6696_v17 = vld [vmem:[%s7990_s2 + $0x30] sm:$0xff]  ;;  %s6708_s2 = smov 72  }
0x321e   :  { %5744 = vmatprep.mubr.msk.f32.mxu0 %vm2313_vm2, %v7460_v43  ;;  %v7773_v15 = vadd.f32 %v6695_v54, %v5844_v33  ;;  %v4084_v26 = vpop.f32.mrb[63].mxu1  ;;  %6164 = vmatprep.subr.bf16.mxu0 %v6163_v31 }
0x321f   :  { %v7778_v56 = vadd.f32 %v6696_v17, %v4084_v26  ;;  %4106 = vmax.xlane.f32.xlu1 %v4105_v1  ;;  %6166 = vmatpush3.bf16.msra.mxu0 %v6163_v31 }
0x3220   :  { %v4114_v43 = vsel %vm2467_vm4, %v7773_v15, -inf  ;;  %6168 = vmatprep.subr.bf16.mxu0 %v6167_v21  ;;  %v6638_v6 = vpop.eup %6637 }
0x3221   :  { %5745 = vmatmul.mubr.msk.f32.gmra.mrb[54].mxu0 %vm2313_vm2, %v7458_v42  ;;  %v4111_v2 = vsel %vm2467_vm4, %v7778_v56, -inf  ;;  %4115 = vmax.xlane.f32.xlu0 %v4114_v43  ;;  %v3627_v42 = vmul.f32 %v6628_v29, %v7642_v25  ;;  %v3631_v25 = vmul.f32 %v6636_v60, %v7664_v19  ;;  %v6640_v37 = vpop.eup %6639  ;;  %v3632_v27 = vmul.f32 %v6638_v6, %v7678_v0  ;;  %v7868_v6 = vld [vmem:[%s7986_s3 + $0xf0] sm:$0xff] }
0x3222   :  { %5791 = vmatprep.mubr.msk.f32.mxu0 %vm2467_vm4, %v3626_v12  ;;  %v3633_v5 = vmul.f32 %v6640_v37, %v7668_v50 }
0x3223   :  { %4112 = vmax.xlane.f32.xlu1 %v4111_v2  ;;  %6170 = vmatpush3.bf16.msra.mxu0 %v6167_v21 }
0x3224   :  { %6172 = vmatprep.subr.bf16.mxu0 %v6171_v28 }
0x3227   :  { %6174 = vmatpush3.bf16.msra.mxu0 %v6171_v28 }
0x3228   :  { %5803 = vmatprep.subr.mxu0 %v7812_v23 }
0x322a   :  { %5792 = vmatmul.mubr.msk.f32.vlgmr.msra.gmra.mrb[56].mxu0 %vm2467_vm4, %v3627_v42 }
0x322b   :  { %5794 = vmatprep.mubr.msk.f32.mxu0 %vm2467_vm4, %v3628_v39  ;;  %5804 = vmatpush3.msra.mxu0 %v7812_v23 }
0x322e   :  { %5795 = vmatmul.mubr.msk.f32.gmra.mrb[58].mxu0 %vm2467_vm4, %v3629_v30 }
0x322f   :  { %5797 = vmatprep.mubr.msk.f32.mxu0 %vm2467_vm4, %v3630_v49  ;;  %v6407_v49 = vpack.i.bf16 %v7673_v20, %v7684_v63 }
0x3232   :  { %5798 = vmatmul.mubr.msk.f32.gmra.mrb[60].mxu0 %vm2467_vm4, %v3631_v25  ;;  %v6412_v25 = vpack.i.bf16 %v7868_v6, %v7812_v23 }
0x3233   :  { %5800 = vmatprep.mubr.msk.f32.mxu0 %vm2467_vm4, %v3632_v27 }
0x3234   :  { %6388 = vrot.lane.b32.xlu1 %v7133_v61, %s6708_s2 }
0x3236   :  { %5801 = vmatmul.mubr.msk.f32.gmra.mrb[62].mxu0 %vm2467_vm4, %v3633_v5 }
0x32a2   :  { %v4098_v19 = vpop.xlane.xlu0 %4097 }
0x32a3   :  { %v4118_v0 = vsub.f32 %v7717_v11, %v4098_v19 }
0x32a4   :  { %v4095_v32 = vpop.xlane.xlu1 %4094 }
0x32a5   :  { %v4117_v55 = vsub.f32 %v7722_v13, %v4095_v32  ;;  %v4127_v61 = vmul.f32 1.442695, %v4118_v0 }
0x32a6   :  { %v4104_v50 = vpop.xlane.xlu0 %4103 }
0x32a7   :  { %v4125_v40 = vmul.f32 1.442695, %v4117_v55  ;;  %6641 = vpow2.f32 %v4127_v61  ;;  %v4120_v34 = vsub.f32 %v7733_v57, %v4104_v50 }
0x32a8   :  { %v4101_v9 = vpop.xlane.xlu1 %4100 }
0x32a9   :  { %6643 = vpow2.f32 %v4125_v40  ;;  %v4119_v38 = vsub.f32 %v7742_v16, %v4101_v9  ;;  %v4131_v51 = vmul.f32 1.442695, %v4120_v34 }
0x32aa   :  { %v4110_v59 = vpop.xlane.xlu0 %4109 }
0x32ab   :  { %v4129_v7 = vmul.f32 1.442695, %v4119_v38  ;;  %6645 = vpow2.f32 %v4131_v51  ;;  %v4122_v31 = vsub.f32 %v7755_v36, %v4110_v59 }
0x32ac   :  { %v4107_v11 = vpop.xlane.xlu1 %4106 }
0x32ad   :  { %6647 = vpow2.f32 %v4129_v7  ;;  %v4121_v13 = vsub.f32 %v7760_v3, %v4107_v11  ;;  %v4135_v41 = vmul.f32 1.442695, %v4122_v31 }
0x32ae   :  { %v4116_v33 = vpop.xlane.xlu0 %4115 }
0x32af   :  { %v4133_v14 = vmul.f32 1.442695, %v4121_v13  ;;  %6649 = vpow2.f32 %v4135_v41  ;;  %v4124_v57 = vsub.f32 %v7773_v15, %v4116_v33 }
0x32b0   :  { %v4113_v1 = vpop.xlane.xlu1 %4112 }
0x32b1   :  { %6651 = vpow2.f32 %v4133_v14  ;;  %v4123_v16 = vsub.f32 %v7778_v56, %v4113_v1  ;;  %v7824_v54 = vpop.eup %6641  ;;  %v4139_v26 = vmul.f32 1.442695, %v4124_v57 }
0x32b2   :  { %v4144_v58 = vsel %vm2467_vm4, %v7824_v54, 0.0 }
0x32b3   :  { %v7826_v21 = vpop.eup %6643  ;;  %v4137_v36 = vmul.f32 1.442695, %v4123_v16  ;;  %6653 = vpow2.f32 %v4139_v26  ;;  %4145 = vadd.xlane.f32.xlu0 %v4144_v58 }
0x32b4   :  { %v6389_v3 = vpop.permute.xlu1 %6388  ;;  %v4141_v47 = vsel %vm2467_vm4, %v7826_v21, 0.0 }
0x32b5   :  { %v6391_v15 = vunpack.i.h.bf16 %v6389_v3  ;;  %v6390_v17 = vunpack.i.l.bf16 %v6389_v3  ;;  %4142 = vadd.xlane.f32.xlu1 %v4141_v47  ;;  %v7832_v43 = vpop.eup %6645  ;;  %6655 = vpow2.f32 %v4137_v36 }
0x32b6   :  { %v4150_v2 = vsel %vm2467_vm4, %v7832_v43, 0.0 }
0x32b7   :  { %v7834_v56 = vpop.eup %6647  ;;  %v6199_v12 = vpack.c.bf16 %v6391_v15, %v6390_v17  ;;  %4151 = vadd.xlane.f32.xlu0 %v4150_v2 }
0x32b8   :  { %v4147_v28 = vsel %vm2467_vm4, %v7834_v56, 0.0 }
0x32b9   :  { %4148 = vadd.xlane.f32.xlu1 %v4147_v28  ;;  %6200 = vmatprep.subr.bf16.mxu0 %v6199_v12  ;;  %v7840_v29 = vpop.eup %6649 }
0x32ba   :  { %v4156_v42 = vsel %vm2467_vm4, %v7840_v29, 0.0 }
0x32bb   :  { %v7842_v10 = vpop.eup %6651  ;;  %4157 = vadd.xlane.f32.xlu0 %v4156_v42 }
0x32bc   :  { %v4153_v44 = vsel %vm2467_vm4, %v7842_v10, 0.0 }
0x32bd   :  { %4154 = vadd.xlane.f32.xlu1 %v4153_v44  ;;  %v7848_v39 = vpop.eup %6653 }
0x32be   :  { %v4162_v18 = vsel %vm2467_vm4, %v7848_v39, 0.0 }
0x32bf   :  { %v7852_v30 = vpop.eup %6655  ;;  %4163 = vadd.xlane.f32.xlu0 %v4162_v18 }
0x32c0   :  { %v4159_v60 = vsel %vm2467_vm4, %v7852_v30, 0.0 }
0x32c3   :  { %4160 = vadd.xlane.f32.xlu0 %v4159_v60 }
0x32ce   :  { %6398 = vrot.lane.b32.xlu1 %v7144_v8, %s6708_s2 }
0x32d2   :  { %6403 = vrot.lane.b32.xlu1 %v7150_v4, %s6708_s2 }
0x32d6   :  { %6408 = vrot.lane.b32.xlu1 %v6407_v49, %s6702_s14 }
0x32d9   :  { %6393 = vrot.lane.b32.xlu0 %v7140_v62, %s6708_s2 }
0x32da   :  { %6413 = vrot.lane.b32.xlu1 %v6412_v25, %s6702_s14 }
0x32fd   :  { %v5793_v8 = vpop.f32.mrb[56].mxu0 }
0x32fe   :  { %v3748_v20 = vpop.f32.mrb[57].mxu0 }
0x32ff   :  { %5805 = vmatprep.mubr.msk.f32.mxu0 %vm2313_vm2, %v3748_v20 }
0x3300   :  { %5806 = vmatmul.mubr.msk.f32.vlgmr.msra.gmra.mrb[48].mxu0 %vm2313_vm2, %v5793_v8 }
0x3301   :  { %6202 = vmatpush3.bf16.msra.mxu0 %v6199_v12  ;;  %v5796_v4 = vpop.f32.mrb[58].mxu0 }
0x3302   :  { %v3758_v63 = vpop.f32.mrb[59].mxu0 }
0x3303   :  { %5808 = vmatprep.mubr.msk.f32.mxu0 %vm2313_vm2, %v3758_v63 }
0x3304   :  { %5809 = vmatmul.mubr.msk.f32.gmra.mrb[50].mxu0 %vm2313_vm2, %v5796_v4 }
0x3305   :  { %v5799_v62 = vpop.f32.mrb[60].mxu0 }
0x3306   :  { %v3768_v37 = vpop.f32.mrb[61].mxu0 }
0x3307   :  { %5811 = vmatprep.mubr.msk.f32.mxu0 %vm2313_vm2, %v3768_v37 }
0x3308   :  { %5812 = vmatmul.mubr.msk.f32.gmra.mrb[52].mxu0 %vm2313_vm2, %v5799_v62 }
0x3309   :  { %v5802_v27 = vpop.f32.mrb[62].mxu0 }
0x330a   :  { %v3778_v5 = vpop.f32.mrb[63].mxu0 }
0x330b   :  { %5814 = vmatprep.mubr.msk.f32.mxu0 %vm2313_vm2, %v3778_v5 }
0x330c   :  { %5815 = vmatmul.mubr.msk.f32.gmra.mrb[54].mxu0 %vm2313_vm2, %v5802_v27 }
0x3340   :  { %v4146_v23 = vpop.xlane.xlu0 %4145 }
0x3342   :  { %v4143_v19 = vpop.xlane.xlu1 %4142 }
0x3343   :  { %6657 = vrcp.f32 %v4143_v19 }
0x3344   :  { %v4152_v0 = vpop.xlane.xlu0 %4151  ;;  %6659 = vrcp.f32 %v4146_v23 }
0x3346   :  { %v4149_v32 = vpop.xlane.xlu1 %4148 }
0x3347   :  { %6661 = vrcp.f32 %v4149_v32 }
0x3348   :  { %v4158_v55 = vpop.xlane.xlu0 %4157  ;;  %6663 = vrcp.f32 %v4152_v0 }
0x334a   :  { %v4155_v61 = vpop.xlane.xlu1 %4154 }
0x334b   :  { %6665 = vrcp.f32 %v4155_v61 }
0x334c   :  { %v4164_v50 = vpop.xlane.xlu0 %4163  ;;  %6667 = vrcp.f32 %v4158_v55 }
0x334d   :  { %v6658_v40 = vpop.eup %6657 }
0x334e   :  { %v4173_v34 = vmul.f32 %v6658_v40, %v7826_v21  ;;  %v6399_v9 = vpop.permute.xlu1 %6398  ;;  %v6660_v16 = vpop.eup %6659 }
0x334f   :  { %v6401_v7 = vunpack.i.h.bf16 %v6399_v9  ;;  %v6400_v59 = vunpack.i.l.bf16 %v6399_v9  ;;  %v4174_v21 = vmul.f32 %v6660_v16, %v7824_v54 }
0x3350   :  { %5861 = vmatprep.mubr.msk.f32.mxu0 %vm2467_vm4, %v4173_v34  ;;  %v4161_v38 = vpop.xlane.xlu0 %4160 }
0x3351   :  { %v6207_v14 = vpack.c.bf16 %v6401_v7, %v6400_v59  ;;  %6669 = vrcp.f32 %v4161_v38  ;;  %v6662_v26 = vpop.eup %6661  ;;  %v48_v7 = vld [vmem:[%s7986_s3 + $0x38] sm:$0xff] }
0x3352   :  { %v6404_v13 = vpop.permute.xlu1 %6403  ;;  %6671 = vrcp.f32 %v4164_v50  ;;  %v6664_v36 = vpop.eup %6663  ;;  %v4175_v58 = vmul.f32 %v6662_v26, %v7834_v56  ;;  %v49_v59 = vld [vmem:[%s7986_s3 + $0x78] sm:$0xff] }
0x3353   :  { %v6406_v33 = vunpack.i.h.bf16 %v6404_v13  ;;  %v6405_v57 = vunpack.i.l.bf16 %v6404_v13  ;;  %v4176_v47 = vmul.f32 %v6664_v36, %v7832_v43  ;;  %v51_v13 = vld [vmem:[%s7986_s3 + $0xf8] sm:$0xff] }
0x3354   :  { %v6394_v51 = vpop.permute.xlu0 %6393 }
0x3355   :  { %v6396_v31 = vunpack.i.h.bf16 %v6394_v51  ;;  %v6395_v11 = vunpack.i.l.bf16 %v6394_v51  ;;  %v6211_v1 = vpack.c.bf16 %v6406_v33, %v6405_v57  ;;  %v6666_v3 = vpop.eup %6665 }
0x3356   :  { %v6668_v15 = vpop.eup %6667  ;;  %v4177_v17 = vmul.f32 %v6666_v3, %v7842_v10  ;;  %v6409_v43 = vpop.permute.xlu1 %6408 }
0x3357   :  { %v6203_v41 = vpack.c.bf16 %v6396_v31, %v6395_v11  ;;  %v4178_v54 = vmul.f32 %v6668_v15, %v7840_v29  ;;  %v6411_v10 = vunpack.i.h.bf16 %v6409_v43  ;;  %v6410_v42 = vunpack.i.l.bf16 %v6409_v43  ;;  %v50_v31 = vld [vmem:[%s7986_s3 + $0xb8] sm:$0xff] }
0x3358   :  { %v6223_v11 = vpack.c.bf16 %v49_v59, %v48_v7 }
0x3359   :  { %6204 = vmatprep.subr.bf16.mxu0 %v6203_v41  ;;  %v6215_v44 = vpack.c.bf16 %v6411_v10, %v6410_v42 }
0x335a   :  { %6206 = vmatpush3.bf16.msra.mxu0 %v6203_v41  ;;  %v6414_v18 = vpop.permute.xlu1 %6413  ;;  %v6227_v41 = vpack.c.bf16 %v51_v13, %v50_v31 }
0x335b   :  { %6208 = vmatprep.subr.bf16.mxu0 %v6207_v14  ;;  %v6670_v12 = vpop.eup %6669  ;;  %6216 = vmatprep.subr.bf16.mxu1 %v6215_v44  ;;  %v6416_v60 = vunpack.i.h.bf16 %v6414_v18  ;;  %v6415_v49 = vunpack.i.l.bf16 %v6414_v18 }
0x335c   :  { %v6672_v56 = vpop.eup %6671  ;;  %v4179_v2 = vmul.f32 %v6670_v12, %v7852_v30  ;;  %6218 = vmatpush3.bf16.msra.mxu1 %v6215_v44 }
0x335d   :  { %v4180_v28 = vmul.f32 %v6672_v56, %v7848_v39  ;;  %v6219_v29 = vpack.c.bf16 %v6416_v60, %v6415_v49  ;;  %v5026_v49 = vld [vmem:[%s7988_s4 + $0x2] ss:$0 sm:$0xff] }
0x335e   :  { %6210 = vmatpush3.bf16.msra.mxu0 %v6207_v14 }
0x335f   :  { %6212 = vmatprep.subr.bf16.mxu0 %v6211_v1  ;;  %6220 = vmatprep.subr.bf16.mxu1 %v6219_v29 }
0x3360   :  { %6222 = vmatpush3.bf16.msra.mxu1 %v6219_v29 }
0x3361   :  { %6224 = vmatprep.subr.bf16.mxu1 %v6223_v11 }
0x3362   :  { %6214 = vmatpush3.bf16.msra.mxu0 %v6211_v1 }
0x3363   :  { %5873 = vmatprep.subr.mxu0 %v7868_v6 }
0x3365   :  { %5862 = vmatmul.mubr.msk.f32.vlgmr.msra.gmra.mrb[64].mxu0 %vm2467_vm4, %v4174_v21 }
0x3366   :  { %5864 = vmatprep.mubr.msk.f32.mxu0 %vm2467_vm4, %v4175_v58  ;;  %5874 = vmatpush3.msra.mxu0 %v7868_v6 }
0x3369   :  { %5865 = vmatmul.mubr.msk.f32.gmra.mrb[66].mxu0 %vm2467_vm4, %v4176_v47 }
0x336a   :  { %5867 = vmatprep.mubr.msk.f32.mxu0 %vm2467_vm4, %v4177_v17 }
0x336d   :  { %5868 = vmatmul.mubr.msk.f32.gmra.mrb[68].mxu0 %vm2467_vm4, %v4178_v54 }
0x336e   :  { %5870 = vmatprep.mubr.msk.f32.mxu0 %vm2467_vm4, %v4179_v2 }
0x3371   :  { %5871 = vmatmul.mubr.msk.f32.gmra.mrb[70].mxu0 %vm2467_vm4, %v4180_v28 }
0x3438   :  { %v5863_v30 = vpop.f32.mrb[64].mxu0 }
0x3439   :  { %v4295_v6 = vpop.f32.mrb[65].mxu0 }
0x343a   :  { %5875 = vmatprep.mubr.msk.f32.mxu0 %vm2313_vm2, %v4295_v6 }
0x343b   :  { %5876 = vmatmul.mubr.msk.f32.vlgmr.msra.gmra.mrb[48].mxu0 %vm2313_vm2, %v5863_v30 }
0x343c   :  { %v5866_v39 = vpop.f32.mrb[66].mxu0 }
0x343d   :  { %v4305_v25 = vpop.f32.mrb[67].mxu0 }
0x343e   :  { %5878 = vmatprep.mubr.msk.f32.mxu0 %vm2313_vm2, %v4305_v25 }
0x343f   :  { %5879 = vmatmul.mubr.msk.f32.gmra.mrb[50].mxu0 %vm2313_vm2, %v5866_v39 }
0x3440   :  { %v5869_v8 = vpop.f32.mrb[68].mxu0 }
0x3441   :  { %v4315_v20 = vpop.f32.mrb[69].mxu0 }
0x3442   :  { %5881 = vmatprep.mubr.msk.f32.mxu0 %vm2313_vm2, %v4315_v20 }
0x3443   :  { %5882 = vmatmul.mubr.msk.f32.gmra.mrb[52].mxu0 %vm2313_vm2, %v5869_v8 }
0x3444   :  { %v5872_v4 = vpop.f32.mrb[70].mxu0 }
0x3445   :  { %v4325_v63 = vpop.f32.mrb[71].mxu0 }
0x3446   :  { %5884 = vmatprep.mubr.msk.f32.mxu0 %vm2313_vm2, %v4325_v63 }
0x3447   :  { %5885 = vmatmul.mubr.msk.f32.gmra.mrb[54].mxu0 %vm2313_vm2, %v5872_v4 }
0x350e   :  { %v5877_v62 = vpop.f32.mrb[48].mxu0 }
0x350f   :  { %v4424_v37 = vpop.f32.mrb[49].mxu0 }
0x3510   :  { %5895 = vmatprep.mubr.msk.f32.mxu1 %vm67_vm0, %v4424_v37 }
0x3511   :  { %5896 = vmatmul.mubr.msk.f32.vlgmr.msra.gmra.mrb[64].mxu1 %vm67_vm0, %v5877_v62 }
0x3512   :  { %v5880_v27 = vpop.f32.mrb[50].mxu0  ;;  %6226 = vmatpush3.bf16.msra.mxu1 %v6223_v11 }
0x3513   :  { %v4434_v5 = vpop.f32.mrb[51].mxu0  ;;  %6228 = vmatprep.subr.bf16.mxu1 %v6227_v41 }
0x3514   :  { %5898 = vmatprep.mubr.msk.f32.mxu1 %vm67_vm0, %v4434_v5 }
0x3515   :  { %5899 = vmatmul.mubr.msk.f32.gmra.mrb[66].mxu1 %vm67_vm0, %v5880_v27 }
0x3516   :  { %v5883_v23 = vpop.f32.mrb[52].mxu0  ;;  %6230 = vmatpush3.bf16.msra.mxu1 %v6227_v41 }
0x3517   :  { %v4444_v19 = vpop.f32.mrb[53].mxu0 }
0x3518   :  { %5901 = vmatprep.mubr.msk.f32.mxu1 %vm67_vm0, %v4444_v19 }
0x3519   :  { %5902 = vmatmul.mubr.msk.f32.gmra.mrb[68].mxu1 %vm67_vm0, %v5883_v23 }
0x351a   :  { %v5886_v0 = vpop.f32.mrb[54].mxu0 }
0x351b   :  { %v4454_v32 = vpop.f32.mrb[55].mxu0 }
0x351c   :  { %5904 = vmatprep.mubr.msk.f32.mxu1 %vm67_vm0, %v4454_v32 }
0x351d   :  { %5905 = vmatmul.mubr.msk.f32.gmra.mrb[70].mxu1 %vm67_vm0, %v5886_v0 }
0x35e4   :  { %v5897_v55 = vpop.f32.mrb[64].mxu1 }
0x35e5   :  { %4626 = vrot.lane.b32.xlu1 %v5897_v55, %s6701_s27  ;;  %v4577_v61 = vpop.f32.mrb[65].mxu1 }
0x35e6   :  { %4624 = vrot.lane.b32.xlu0 %v4577_v61, %s6701_s27 }
0x35e8   :  { %v5900_v40 = vpop.f32.mrb[66].mxu1 }
0x35e9   :  { %4630 = vrot.lane.b32.xlu1 %v5900_v40, %s6701_s27  ;;  %v4587_v50 = vpop.f32.mrb[67].mxu1 }
0x35ea   :  { %4628 = vrot.lane.b32.xlu0 %v4587_v50, %s6701_s27 }
0x35ec   :  { %v5903_v34 = vpop.f32.mrb[68].mxu1 }
0x35ed   :  { %4634 = vrot.lane.b32.xlu1 %v5903_v34, %s6701_s27  ;;  %v4597_v9 = vpop.f32.mrb[69].mxu1 }
0x35ee   :  { %4632 = vrot.lane.b32.xlu0 %v4597_v9, %s6701_s27 }
0x35f0   :  { %v5906_v38 = vpop.f32.mrb[70].mxu1 }
0x35f1   :  { %4638 = vrot.lane.b32.xlu1 %v5906_v38, %s6701_s27  ;;  %v4607_v51 = vpop.f32.mrb[71].mxu1 }
0x35f2   :  { %4636 = vrot.lane.b32.xlu0 %v4607_v51, %s6701_s27 }
0x3657   :  { %v4627_v14 = vpop.permute.xlu1 %4626 }
0x3658   :  { %v4649_v33 = vadd.f32 %v7187_v45, %v4627_v14  ;;  %v4625_v57 = vpop.permute.xlu0 %4624 }
0x3659   :  { %v4648_v1 = vadd.f32 %v4625_v57, %v7189_v24 }
0x365a   :  { %6673 = vtanh.f32 %v4649_v33 }
0x365b   :  { %6675 = vtanh.f32 %v4648_v1  ;;  %v4631_v16 = vpop.permute.xlu1 %4630 }
0x365c   :  { %v4651_v26 = vadd.f32 %v7195_v46, %v4631_v16  ;;  %v4629_v21 = vpop.permute.xlu0 %4628 }
0x365d   :  { %v4650_v36 = vadd.f32 %v4629_v21, %v7197_v35 }
0x365e   :  { %6677 = vtanh.f32 %v4651_v26 }
0x365f   :  { %6679 = vtanh.f32 %v4650_v36  ;;  %v4635_v58 = vpop.permute.xlu1 %4634 }
0x3660   :  { %v4653_v3 = vadd.f32 %v7204_v22, %v4635_v58  ;;  %v4633_v47 = vpop.permute.xlu0 %4632 }
0x3661   :  { %v4652_v15 = vadd.f32 %v4633_v47, %v7206_v48 }
0x3662   :  { %6681 = vtanh.f32 %v4653_v3 }
0x3663   :  { %6683 = vtanh.f32 %v4652_v15  ;;  %v4639_v45 = vpop.permute.xlu1 %4638 }
0x3664   :  { %v6674_v24 = vpop.eup %6673  ;;  %v4655_v17 = vadd.f32 %v7282_v52, %v4639_v45  ;;  %v4637_v12 = vpop.permute.xlu0 %4636 }
0x3665   :  { %v6676_v54 = vpop.eup %6675  ;;  %v4654_v46 = vadd.f32 %v4637_v12, %v7284_v53  ;;  %4678 = vrot.lane.b32.xlu1 %v6674_v24, %s6702_s14 }
0x3666   :  { %6685 = vtanh.f32 %v4655_v17  ;;  %4676 = vrot.lane.b32.xlu0 %v6676_v54, %s6702_s14 }
0x3667   :  { %6687 = vtanh.f32 %v4654_v46 }
0x3668   :  { %v6678_v35 = vpop.eup %6677 }
0x3669   :  { %v6680_v22 = vpop.eup %6679  ;;  %4682 = vrot.lane.b32.xlu1 %v6678_v35, %s6702_s14 }
0x366a   :  { %4680 = vrot.lane.b32.xlu0 %v6680_v22, %s6702_s14 }
0x366c   :  { %v6682_v48 = vpop.eup %6681 }
0x366d   :  { %v6684_v56 = vpop.eup %6683  ;;  %4686 = vrot.lane.b32.xlu1 %v6682_v48, %s6702_s14 }
0x366e   :  { %4684 = vrot.lane.b32.xlu0 %v6684_v56, %s6702_s14 }
0x3670   :  { %v6686_v52 = vpop.eup %6685 }
0x3671   :  { %v6688_v53 = vpop.eup %6687  ;;  %4690 = vrot.lane.b32.xlu1 %v6686_v52, %s6702_s14 }
0x3672   :  { %4688 = vrot.lane.b32.xlu0 %v6688_v53, %s6702_s14 }
0x36d7   :  { %v4679_v2 = vpop.permute.xlu1 %4678 }
0x36d8   :  { %v4677_v28 = vpop.permute.xlu0 %4676 }
0x36d9   :  { %5915 = vmatprep.mubr.msk.f32.mxu1 %vm67_vm0, %v4677_v28 }
0x36da   :  { %5916 = vmatmul.mubr.msk.f32.vlgmr.msra.gmra.mrb[72].mxu1 %vm67_vm0, %v4679_v2 }
0x36db   :  { %v4683_v43 = vpop.permute.xlu1 %4682 }
0x36dc   :  { %v4681_v10 = vpop.permute.xlu0 %4680 }
0x36dd   :  { %5918 = vmatprep.mubr.msk.f32.mxu1 %vm67_vm0, %v4681_v10 }
0x36de   :  { %5919 = vmatmul.mubr.msk.f32.gmra.mrb[74].mxu1 %vm67_vm0, %v4683_v43 }
0x36df   :  { %v4687_v42 = vpop.permute.xlu1 %4686 }
0x36e0   :  { %v4685_v44 = vpop.permute.xlu0 %4684 }
0x36e1   :  { %5921 = vmatprep.mubr.msk.f32.mxu1 %vm67_vm0, %v4685_v44 }
0x36e2   :  { %5922 = vmatmul.mubr.msk.f32.gmra.mrb[76].mxu1 %vm67_vm0, %v4687_v42 }
0x36e3   :  { %v4691_v60 = vpop.permute.xlu1 %4690 }
0x36e4   :  { %v4689_v18 = vpop.permute.xlu0 %4688 }
0x36e5   :  { %5924 = vmatprep.mubr.msk.f32.mxu1 %vm67_vm0, %v4689_v18 }
0x36e6   :  { %5925 = vmatmul.mubr.msk.f32.gmra.mrb[78].mxu1 %vm67_vm0, %v4691_v60 }
0x37ad   :  { %v5917_v29 = vpop.f32.mrb[72].mxu1 }
0x37ae   :  { %v4780_v30 = vadd.f32 %v5917_v29, %v5026_v49  ;;  %v4774_v6 = vpop.f32.mrb[73].mxu1 }
0x37af   :  { %v4775_v39 = vadd.f32 %v5026_v49, %v4774_v6 }
0x37b0   :  { %4814 = vst [vmem:[%s7991_s5 + $0x8] sm:$0xff] %v4780_v30 }
0x37b1   :  { %4813 = vst [vmem:[%s7991_s5] sm:$0xff] %v4775_v39  ;;  %v5920_v25 = vpop.f32.mrb[74].mxu1 }
0x37b2   :  { %v4790_v8 = vadd.f32 %v5920_v25, %v5026_v49  ;;  %v4784_v20 = vpop.f32.mrb[75].mxu1 }
0x37b3   :  { %v4785_v4 = vadd.f32 %v5026_v49, %v4784_v20 }
0x37b4   :  { %4816 = vst [vmem:[%s7991_s5 + $0x18] sm:$0xff] %v4790_v8 }
0x37b5   :  { %4815 = vst [vmem:[%s7991_s5 + $0x10] sm:$0xff] %v4785_v4  ;;  %v5923_v63 = vpop.f32.mrb[76].mxu1 }
0x37b6   :  { %v4800_v62 = vadd.f32 %v5923_v63, %v5026_v49  ;;  %v4794_v37 = vpop.f32.mrb[77].mxu1 }
0x37b7   :  { %v4795_v27 = vadd.f32 %v5026_v49, %v4794_v37 }
0x37b8   :  { %4818 = vst [vmem:[%s7991_s5 + $0x28] sm:$0xff] %v4800_v62 }
0x37b9   :  { %4817 = vst [vmem:[%s7991_s5 + $0x20] sm:$0xff] %v4795_v27  ;;  %v5926_v5 = vpop.f32.mrb[78].mxu1 }
0x37ba   :  { %v4810_v23 = vadd.f32 %v5926_v5, %v5026_v49  ;;  %v4804_v19 = vpop.f32.mrb[79].mxu1 }
0x37bb   :  { %v4805_v0 = vadd.f32 %v5026_v49, %v4804_v19 }
0x37bc   :  { %4820 = vst [vmem:[%s7991_s5 + $0x38] sm:$0xff] %v4810_v23 }
0x37bd   :  { %4819 = vst [vmem:[%s7991_s5 + $0x30] sm:$0xff] %v4805_v0 }

</bundles_post_ra>
